<compile_context>
chip_gen: v7x
topology: tpu7x:2x2x1
jax: 0.10.0
libtpu: 0.0.40
codegen_flags: <defaults>
</compile_context>

<pallas_src>
import math

import numpy as np
import jax
import jax.numpy as jnp
from jax.experimental import pallas as pl
from jax.experimental.pallas import tpu as pltpu

_LANE = 128
_SUBLANE = 8
_VMEM_BUDGET = 16 * 1024 * 1024   # bytes budgeted for per-step buffers/temps
_VMEM_LIMIT = 32 * 1024 * 1024    # scoped-VMEM limit handed to Mosaic (safe on v5e/v6e/v7x)
_MAX_BT = 1 << 16                 # hard cap on batch lanes per grid step


def _round_up(x: int, m: int) -> int:
    return (x + m - 1) // m * m


def _choose_batch_tile(batch: int, two_l: int, out_itemsize: int) -> int:
    """Pick the batch-lane tile from a VMEM byte budget.

    Accounts for the lane padding of the transposed (bt, 2L) output block
    (minor dim 2L < 128 pads to 128 lanes in VMEM) so the double-buffered
    blocks + in-kernel temporaries stay within the scoped-VMEM budget on all
    generations (v7x has only 64 MiB physical VMEM).
    """
    b128 = _round_up(batch, _LANE)
    lanes_pad = _round_up(two_l, _LANE)         # minor-dim padding of the (bt, 2L) block
    sub_pad = _round_up(two_l, _SUBLANE)
    per_lane = (2 * lanes_pad * out_itemsize    # double-buffered (bt, 2L) output block
                + lanes_pad * 4                 # transposed f32 temporary before the store
                + 2 * sub_pad * 4               # (2L, bt) f32 temporaries (t, sin(t))
                + 2 * _SUBLANE * 4)             # double-buffered (1, bt) position block
    bt = int(_VMEM_BUDGET // per_lane)
    bt = max(_LANE, (bt // _LANE) * _LANE)
    bt = min(bt, _MAX_BT)
    # v7x megacore: keep >= 2 grid steps so the "parallel" axis can span both
    # TensorCores (no-op on v5e/v6e which have a single TC).
    if b128 >= 2 * _LANE:
        bt = min(bt, _round_up(b128 // 2, _LANE))
    return min(bt, b128)


def _pe_kernel(freq_ref, phase_ref, pos_ref, out_ref):
    # freq_ref / phase_ref: (2L, 1) constants (host-precomputed in float64).
    # pos_ref:              (1, bt) positions, batch on the LANE axis.
    # out_ref:              (bt, 2L) interleaved sin/cos for this batch tile.
    #
    # Lane-dense compute: (2L, 1) * (1, bt) + (2L, 1) -> (2L, bt).  cos is
    # fused as sin(x + pi/2), so row 2i is sin and row 2i+1 is cos -- the
    # PyTorch interleaving falls out of the row order.
    t = freq_ref[...] * pos_ref[...] + phase_ref[...]
    s = jnp.sin(t)                       # full-vreg EUP pushes (8x128 per vreg)
    # In-kernel transpose (XLU slot, hidden under the EUP work) so the HBM
    # output is already (batch, 2L) and no wrapper-side XLA transpose / extra
    # HBM round trip is needed.
    out_ref[...] = s.T.astype(out_ref.dtype)


class PositionalEncoding:
    """JAX/Pallas port of the PyTorch NeRV PositionalEncoding module."""

    def __init__(self, pe_embed: str, *, out_dtype=jnp.float32,
                 min_pallas_batch: int = 1024):
        # `min_pallas_batch`: below this, a plain-jnp fast path is used (Pallas
        # launch + pad/slice overhead is not worth it).  Kept modest so the
        # kernel path is exercised at small demo sizes; raise to ~8-16K in
        # production per the perf review.
        self.pe_embed = pe_embed.lower()
        self.out_dtype = out_dtype
        self.min_pallas_batch = min_pallas_batch
        if self.pe_embed == "none":
            self.embed_length = 1
            self.lbase = None
            self.levels = 0
            self._freq = None
            self._phase = None
        else:
            lbase, levels = [float(x) for x in pe_embed.split("_")]
            self.lbase = lbase
            self.levels = int(levels)
            self.embed_length = 2 * self.levels
            # Host-side float64 constants: row j -> level j//2, phase (j%2)*pi/2.
            j = np.arange(self.embed_length)
            freq64 = (lbase ** (j // 2).astype(np.float64)) * np.pi
            phase64 = (j % 2).astype(np.float64) * (np.pi / 2.0)
            self._freq = np.asarray(freq64, dtype=np.float32).reshape(-1, 1)
            self._phase = np.asarray(phase64, dtype=np.float32).reshape(-1, 1)

    def __call__(self, pos: jax.Array) -> jax.Array:
        if self.pe_embed == "none":
            return pos[:, None]

        pos = pos.astype(jnp.float32)
        B = pos.shape[0]
        two_l = self.embed_length

        # Small-batch fast path: one fused XLA pass, no Pallas launch overhead.
        if B < self.min_pallas_batch:
            t = pos[:, None] * jnp.asarray(self._freq[:, 0]) + jnp.asarray(self._phase[:, 0])
            return jnp.sin(t).astype(self.out_dtype)

        bt = _choose_batch_tile(B, two_l, np.dtype(self.out_dtype).itemsize)
        b_pad = _round_up(B, bt)
        grid = (b_pad // bt,)

        # Positions as a lane-major row; pad only when actually needed.
        pos_row = pos if b_pad == B else jnp.pad(pos, (0, b_pad - B))
        pos_row = pos_row.reshape(1, b_pad)

        freq = jnp.asarray(self._freq)      # (2L, 1)
        phase = jnp.asarray(self._phase)    # (2L, 1)

        out = pl.pallas_call(
            _pe_kernel,
            out_shape=jax.ShapeDtypeStruct((b_pad, two_l), self.out_dtype),
            grid_spec=pltpu.PrefetchScalarGridSpec(
                num_scalar_prefetch=0,
                grid=grid,
                in_specs=[
                    pl.BlockSpec((two_l, 1), lambda i: (0, 0)),   # freq (tiny, constant)
                    pl.BlockSpec((two_l, 1), lambda i: (0, 0)),   # phase (tiny, constant)
                    pl.BlockSpec((1, bt), lambda i: (0, i)),      # positions, lane tile
                ],
                out_specs=pl.BlockSpec((bt, two_l), lambda i: (i, 0)),
            ),
            compiler_params=pltpu.CompilerParams(
                dimension_semantics=("parallel",),
                vmem_limit_bytes=_VMEM_LIMIT,
            ),
        )(freq, phase, pos_row)

        # Drop padded rows (contiguous slice; no transpose needed any more).
        return out if b_pad == B else out[:B]


def _reference(pos, lbase, levels):
    pe_list = []
    for i in range(levels):
        t = pos * (lbase ** i) * math.pi
        pe_list += [jnp.sin(t), jnp.cos(t)]
    return jnp.stack(pe_list, axis=1)


if __name__ == "__main__":
    pe = PositionalEncoding("1.25_8")   # lbase=1.25, levels=8 -> embed_length=16

    # Pallas-kernel path (batch above the small-B fast-path threshold).
    B = 4096
    pos = jax.random.uniform(jax.random.PRNGKey(0), (B,), dtype=jnp.float32)
    out = jax.block_until_ready(pe(pos))
    assert out.shape == (B, pe.embed_length), out.shape
    ref = _reference(pos, 1.25, 8)
    assert jnp.allclose(out, ref, atol=1e-5, rtol=1e-5), "mismatch vs reference (B=4096)"

    # Padding / multi-tile path (B not a multiple of the batch tile).
    B2 = 4500
    pos2 = jax.random.uniform(jax.random.PRNGKey(1), (B2,), dtype=jnp.float32)
    out2 = jax.block_until_ready(pe(pos2))
    ref2 = _reference(pos2, 1.25, 8)
    assert out2.shape == (B2, pe.embed_length)
    assert jnp.allclose(out2, ref2, atol=1e-5, rtol=1e-5), "mismatch vs reference (B=4500)"

    # Small-batch fast path (plain jnp, no Pallas launch).
    B3 = 300
    pos3 = jax.random.uniform(jax.random.PRNGKey(2), (B3,), dtype=jnp.float32)
    out3 = jax.block_until_ready(pe(pos3))
    ref3 = _reference(pos3, 1.25, 8)
    assert out3.shape == (B3, pe.embed_length)
    assert jnp.allclose(out3, ref3, atol=1e-5, rtol=1e-5), "mismatch vs reference (B=300)"

    # 'none' branch (identity-like expansion, no kernel).
    pe_none = PositionalEncoding("none")
    out_none = jax.block_until_ready(pe_none(pos3))
    assert out_none.shape == (B3, 1)

    print("KERNEL_OK")
</pallas_src>

<mosaic_0001>
module attributes {stable_mosaic.version = 11 : i64} {
  func.func @_pe_kernel(%arg0: i32, %arg1: memref<16x1xf32, #tpu.memory_space<vmem>>, %arg2: memref<16x1xf32, #tpu.memory_space<vmem>>, %arg3: memref<1x2048xf32, #tpu.memory_space<vmem>>, %arg4: memref<2048x16xf32, #tpu.memory_space<vmem>>) attributes {dimension_semantics = [#tpu.dimension_semantics<parallel>], iteration_bounds = array<i64: 2>, scalar_prefetch = 0 : i64, scratch_operands = 0 : i64, tpu.core_type = #tpu.core_type<tc>, window_params = [{pipeline_mode = #tpu.pipeline_mode<synchronous>, transform_indices = @transform_0, window_bounds = array<i64: 16, 1>}, {pipeline_mode = #tpu.pipeline_mode<synchronous>, transform_indices = @transform_1, window_bounds = array<i64: 16, 1>}, {transform_indices = @transform_2, window_bounds = array<i64: 1, 2048>}, {transform_indices = @transform_3, window_bounds = array<i64: 2048, 16>}]} {
    %c0 = arith.constant 0 : index
    %c0_0 = arith.constant 0 : index
    %0 = vector.load %arg1[%c0, %c0_0] : memref<16x1xf32, #tpu.memory_space<vmem>>, vector<16x1xf32>
    %c0_1 = arith.constant 0 : index
    %c0_2 = arith.constant 0 : index
    %1 = vector.load %arg3[%c0_1, %c0_2] : memref<1x2048xf32, #tpu.memory_space<vmem>>, vector<1x2048xf32>
    %2 = vector.broadcast %0 : vector<16x1xf32> to vector<16x2048xf32>
    %3 = vector.broadcast %1 : vector<1x2048xf32> to vector<16x2048xf32>
    %4 = arith.mulf %2, %3 : vector<16x2048xf32>
    %c0_3 = arith.constant 0 : index
    %c0_4 = arith.constant 0 : index
    %5 = vector.load %arg2[%c0_3, %c0_4] : memref<16x1xf32, #tpu.memory_space<vmem>>, vector<16x1xf32>
    %6 = vector.broadcast %5 : vector<16x1xf32> to vector<16x2048xf32>
    %7 = arith.addf %4, %6 : vector<16x2048xf32>
    %8 = math.sin %7 : vector<16x2048xf32>
    %9 = tpu.transpose %8, [1, 0] : vector<16x2048xf32> -> vector<2048x16xf32>
    %c0_5 = arith.constant 0 : index
    %c0_6 = arith.constant 0 : index
    %10 = vector.load %arg4[%c0_5, %c0_6] : memref<2048x16xf32, #tpu.memory_space<vmem>>, vector<2048x16xf32>
    tpu.vector_store %arg4[%c0_5, %c0_6], %9 {strides = array<i32>} : memref<2048x16xf32, #tpu.memory_space<vmem>>, vector<2048x16xf32>,
    return
  }
  func.func @transform_0(%arg0: i32) -> (i32, i32) {
    %c0_i32 = arith.constant 0 : i32
    %c0_i32_0 = arith.constant 0 : i32
    %c0_i32_1 = arith.constant 0 : i32
    return %c0_i32, %c0_i32_0 : i32, i32
  }
  func.func @transform_1(%arg0: i32) -> (i32, i32) {
    %c0_i32 = arith.constant 0 : i32
    %c0_i32_0 = arith.constant 0 : i32
    %c0_i32_1 = arith.constant 0 : i32
    return %c0_i32, %c0_i32_0 : i32, i32
  }
  func.func @transform_2(%arg0: i32) -> (i32, i32) {
    %c0_i32 = arith.constant 0 : i32
    %c0_i32_0 = arith.constant 0 : i32
    return %c0_i32, %arg0 : i32, i32
  }
  func.func @transform_3(%arg0: i32) -> (i32, i32) {
    %c0_i32 = arith.constant 0 : i32
    %c0_i32_0 = arith.constant 0 : i32
    return %arg0, %c0_i32 : i32, i32
  }
}

</mosaic_0001>

<bundles_post_ra>
// kernel: tpu_custom_call.1
= control target key start
LH: loop header
LB: loop body
LE: loop exit
PB: predicated region body
PF: predicated region fallthrough
CT: control target
= control target key end

     0   :  { %8 = vsyncpa [#allocation3], 0  ;;  %s8641_s0 = inlined_call_operand.vmem [shape: f32[16,1], index: 0, kind: input, shape index: {}]   ;;  %s8642_s1 = inlined_call_operand.vmem [shape: f32[16,1], index: 1, kind: input, shape index: {}]   ;;  %s8643_s2 = inlined_call_operand.hbm [shape: f32[1,4096], index: 2, kind: input, shape index: {}]   ;;  %s8644_s3 = inlined_call_operand.vmem [shape: f32[4096,16], index: 3, kind: output, shape index: {}]  }
   0x1   :  { %10 = vsyncpa [#allocation3 + $0x1], 0  ;;  %s5071_s12 = smov 0   ;;  %s5073_s13 = smov 0  }
   0x2   :  { %s5075_s14 = smov 0   ;;  %s5077_s15 = smov 0  }
   0x3 LB: > { %s4527_s16 = sadd.s32 4294967295, %s5041_s15   ;;  %s5091_s17 = sadd.s32 1, %s5041_s15   ;;  %s5041_s15 = sphi %s5077_s15, %s8712_s15   ;;  %s5037_s14 = sphi %s5075_s14, %s8711_s14   ;;  %s5033_s13 = sphi %s5073_s13, %s8710_s13   ;;  %s5029_s12 = sphi %s5071_s12, %s8709_s12  }
   0x4   : > { %s62_s18 = ssub.s32 %s5041_s15, %s5091_s17  ;;  %s65_s19 = sadd.s32 1, %s5037_s14 }
   0x5   : > { %p63_p0 = scmp.eq.s32.totalorder %s62_s18, 0  ;;  %p72_p1 = scmp.ne.s32.totalorder %s5037_s14, %s5033_s13 }
   0x6   : > { %p73_p2 = scmp.eq.s32.totalorder %s5041_s15, 0  ;;  %p78_p3 = scmp.ne.s32.totalorder %s5033_s13, %s5029_s12 }
   0x7   : > { %s5101_s20 = scalar_select %p63_p0, %s5037_s14, %s65_s19  }
   0x8   : > { %p74_p4 = por %p73_p2, %p72_p1  ;;  %p79_p5 = scmp.eq.s32.totalorder %s4527_s16, 0 }
   0x9   : > { %p4803_p6 = scmp.lt.s32.totalorder %s5041_s15, 2  ;;  %s134_s22 = sand.u32 1, %s5037_s14  }
   0xa   : > { %p5106_p7 = por %p79_p5, %p78_p3  ;;  %s4531_s23 = sshll.u32 %s134_s22, 4 }
   0xb   : > { %s4668_s24 = sshll.u32 %s5041_s15, 8  ;;  %s138_s28 = scalar_lea.vmem [#allocation2], %s4531_s23 }
   0xc   : > { %s5115_s27 = scalar_lea.hbm %s8643_s2, %s4668_s24  ;;  %s146_s29 = sshll.u32 %s138_s28, 4  ;;  %s5117_s29 = int_to_ptr.vmem [resolvable:$true] %s146_s29 }
   0xd   : > { %p5119_p8 = pnand %p4803_p6, %p74_p4  ;;  %s135_s4 = scalar_lea.sflag [#allocation3], %s134_s22 }
   0xe   : > { %s4977_s5 = scalar_lea.hbm %s5115_s27, 256  ;;  %s4982_s8 = scalar_lea.hbm %s8643_s2, 512 }
   0xf   : > { %p4978_p11 = scmp.ne.s32.totalorder %s5115_s27, %s4977_s5  ;;  %p4979_p12 = pneg %p5119_p8 }
  0x10   : > { %p4983_p1 = scmp.lt.u32.totalorder %s5115_s27, %s8643_s2  ;;  %p4984_p2 = scmp.lt.u32.totalorder %s4982_s8, %s4977_s5 }
  0x11   : > { %p4980_p13 = pnand %p4979_p12, %p4978_p11  ;;  %p4986_p4 = scmp.lt.u32.totalorder %s4977_s5, %s5115_s27 }
  0x12   : > { %p4985_p3 = por %p4984_p2, %p4983_p1 }
  0x13   : > { %p4981_p0 = pneg %p4980_p13 }
  0x14   : > { %p4987_p5 = por %p4986_p4, %p4985_p3 }
  0x16   : > { %p4988_p6 = pnand %p4987_p5, %p4981_p0 }
  0x18   : > { %4991 = shalt.err (!%p4988_p6)
}
  0x19   : > { %s4992_s11 = scalar_lea.vmem %s5117_s29, 256  ;;  %s5043_s12 = smov [#allocation2]  }
  0x1a   : > { %p4993_p11 = scmp.ne.s32.totalorder %s5117_s29, %s4992_s11  ;;  %s4997_s18 = sshll.u32 %s5043_s12, 4  ;;  %s4998_s18 = int_to_ptr.vmem [resolvable:$false] %s4997_s18 }
  0x1b   : > { %s4999_s19 = scalar_lea.vmem %s4998_s18, 512  ;;  %p5000_p10 = scmp.lt.s32.totalorder %s5117_s29, %s4998_s18 }
  0x1c   : > { %p4995_p13 = pnand %p4993_p11, %p4979_p12  ;;  %p5001_p1 = scmp.lt.s32.totalorder %s4999_s19, %s4992_s11 }
  0x1e   : > { %p4996_p9 = pneg %p4995_p13  ;;  %p5002_p2 = por %p5001_p1, %p5000_p10 }
  0x20   : > { %p5003_p3 = pnand %p5002_p2, %p4996_p9 }
  0x22   : > { %5006 = shalt.err (!%p5003_p3)
}
  0x23   : > { %4802 = dma.hbm_to_vmem [thread:$0]  (!%p5119_p8), %s5115_s27, 256, %s5117_s29, %s135_s4  }
  0x24   : > { %p8647_p0 = scmp.lt.s32.totalorder %s5041_s15, 3  ;;  %p8648_p4 = scmp.ge.s32.totalorder %s5041_s15, 1 }
  0x26   : > { %p152_p12 = pnand %p8648_p4, %p8647_p0 }
  0x27   : > { %s157_s22 = sand.u32 (!%p152_p12), 1, %s5033_s13  }
  0x28   : > { %155 = sbr.rel (%p152_p12) target bundleno = 1207 (0x4b7), region = 32  ;;  %s4535_s23 = sshll.u32 (!%p152_p12), %s157_s22, 4 }
  0x29   : > { %s158_s24 = scalar_lea.sflag (!%p152_p12), [#allocation3], %s157_s22  ;;  %s5155_s25 = scalar_lea.vmem (!%p152_p12), [#allocation2], %s4535_s23 }
  0x2f   : > { %5024 = dma.done.wait (%p5106_p7), %s158_s24, 256  }
  0x30   : > { %5026 = vsyncadd (%p5106_p7), %s158_s24, 4294967040  ;;  %v5044_v0 = vmov 0   ;;  %v319_v1 = vld [vmem:[%s8642_s1] sm:$0xff]  ;;  %v320_v3 = vld [vmem:[%s8642_s1 + $0x8] sm:$0xff]  ;;  %v207_v5 = vlaneseq  ;;  %v5045_v53 = vmov 683565275  }
  0x31   : > { %4845 = vset.pattern.permute.xlu1 %v5044_v0  ;;  %4844 = vset.pattern.permute.xlu0 %v5044_v0  ;;  %v191_v2 = vld [vmem:[%s8641_s0] sm:$0xff]  ;;  %v192_v4 = vld [vmem:[%s8641_s0 + $0x8] sm:$0xff]  ;;  %v5046_v57 = vmov 2475754826   ;;  %v5047_v59 = vmov 2131351028  }
  0x32   : > { %323 = vperm.xlu1 %4845, %v319_v1   ;;  %197 = vperm.xlu0 %4844, %v191_v2   ;;  %v5173_v6 = vshrl.u32 %v207_v5, 7  ;;  %v193_v9 = vld [vmem:[%s5155_s25] sm:$0xff]  ;;  %v5048_v61 = vmov 2102212464   ;;  %v5049_v63 = vmov 920167782  }
  0x33   : > { %s5943_s6 = sshll.u32 %s4527_s16, 8 }
  0x34   : > { %v213_v7 = vsub.s32 1, %v5173_v6  ;;  %v209_v8 = vsub.s32 0, %v5173_v6  ;;  %v221_v31 = vsub.s32 3, %v5173_v6  ;;  %v217_v33 = vsub.s32 2, %v5173_v6  ;;  %p186_p7 = scmp.lt.s32.totalorder %s5943_s6, 511 }
  0x36   : > { %328 = vperm.xlu1 %4845, %v320_v3   ;;  %202 = vperm.xlu0 %4844, %v192_v4   ;;  %v214_v10 = vrot.slane %v193_v9, %v213_v7  ;;  %v210_v11 = vrot.slane %v193_v9, %v209_v8  ;;  %v5216_v40 = vrot.slane %v193_v9, %v221_v31  ;;  %s8714_s6 = smov (!%p186_p7, %s5943_s6), 511 }
  0x37   : > { %v5220_v43 = vrot.slane %v193_v9, %v217_v33  ;;  %v5050_v9 = vmov 1326507024   ;;  %s4537_s15 = sshll.u32 %s8714_s6, 3 }
  0x38   : > { %s6001_s8 = scalar_lea.vmem %s8644_s3, %s4537_s15 }
  0xb1   : > { %v5182_v12 = vpop.permute.xlu0 %197  ;;  %v5186_v15 = vpop.permute.xlu1 %323 }
  0xb2   : > { %v288_v13 = vmul.f32 %v214_v10, %v5182_v12  ;;  %v287_v14 = vmul.f32 %v210_v11, %v5182_v12 }
  0xb4   : > { %v5189_v16 = vadd.f32 %v5186_v15, %v288_v13  ;;  %v5192_v17 = vadd.f32 %v5186_v15, %v287_v14 }
  0xb5   : > { %v5194_v18 = vpop.permute.xlu0 %202  ;;  %v5203_v26 = vpop.permute.xlu1 %328 }
  0xb6   : > { %v467_v19 = vand.u32 2147483647, %v5189_v16  ;;  %v470_v20 = vand.u32 2139095040, %v5189_v16  ;;  %v363_v21 = vand.u32 2147483647, %v5192_v17  ;;  %v366_v22 = vand.u32 2139095040, %v5192_v17 }
  0xb7   : > { %v304_v25 = vmul.f32 %v214_v10, %v5194_v18  ;;  %v5223_v47 = vmul.f32 %v210_v11, %v5194_v18  ;;  %vm469_vm13 = vcmp.lt.s32.totalorder %v5189_v16, 0  ;;  %vm365_vm14 = vcmp.lt.s32.totalorder %v5192_v17, 0 }
  0xb8   : > { %v471_v23 = vshrl.u32 %v470_v20, 23  ;;  %v474_v24 = vand.u32 8388607, %v467_v19  ;;  %v367_v27 = vshrl.u32 %v366_v22, 23  ;;  %v370_v28 = vand.u32 8388607, %v363_v21 }
  0xb9   : > { %v5208_v30 = vadd.f32 %v5203_v26, %v304_v25 }
  0xba   : > { %v4542_v29 = vadd.s32 4294967169, %v471_v23  ;;  %v4538_v32 = vadd.s32 4294967169, %v367_v27  ;;  %v475_v34 = vor.u32 8388608, %v474_v24  ;;  %v371_v36 = vor.u32 8388608, %v370_v28 }
  0xbb   : > { %v2131_v38 = vand.u32 2147483647, %v5208_v30  ;;  %v2134_v39 = vand.u32 2139095040, %v5208_v30 }
  0xbc   : > { %v477_v35 = vadd.s32 1, %v4542_v29  ;;  %v373_v37 = vadd.s32 1, %v4538_v32  ;;  %v5225_v48 = vshll.u32 %v475_v34, 8  ;;  %v5229_v50 = vshll.u32 %v371_v36, 8 }
  0xbd   : > { %v2135_v42 = vshrl.u32 %v2134_v39, 23  ;;  %v5233_v51 = vand.u32 8388607, %v2131_v38 }
  0xbe   : > { %vm478_vm0 = vcmp.gt.s32.totalorder %v477_v35, 0  ;;  %vm374_vm1 = vcmp.gt.s32.totalorder %v373_v37, 0 }
  0xbf   : > { %v479_v41 = vsel %vm478_vm0, %v477_v35, 0  ;;  %v375_v46 = vsel %vm374_vm1, %v373_v37, 0  ;;  %v5236_v56 = vadd.s32 4294967169, %v2135_v42  ;;  %vm5354_vm1 = vcmp.le.f32.partialorder %v467_v19, 0.7853982 }
  0xc0   : > { %v480_v44 = vshrl.u32 %v479_v41, 5  ;;  %v481_v45 = vand.u32 31, %v479_v41  ;;  %v5227_v49 = vshrl.u32 %v375_v46, 5  ;;  %v377_v55 = vand.u32 31, %v375_v46 }
  0xc2   : > { %v482_v52 = vsub.s32 32, %v481_v45  ;;  %v484_v54 = vshll.u32 %v5045_v53, %v481_v45  ;;  %v487_v58 = vshll.u32 %v5046_v57, %v481_v45  ;;  %v490_v60 = vshll.u32 %v5047_v59, %v481_v45 }
  0xc3   : > { %v493_v62 = vshll.u32 %v5048_v61, %v481_v45  ;;  %v496_v0 = vshll.u32 %v5049_v63, %v481_v45  ;;  %vm499_vm2 = vcmp.lt.s32.totalorder %v480_v44, 1  ;;  %vm500_vm3 = vcmp.lt.s32.totalorder %v480_v44, 2 }
  0xc4   : > { %v485_v1 = vshrl.u32 %v5046_v57, %v482_v52  ;;  %v488_v2 = vshrl.u32 %v5047_v59, %v482_v52  ;;  %v491_v3 = vshrl.u32 %v5048_v61, %v482_v52  ;;  %v483_v4 = vshrl.u32 %v5045_v53, %v482_v52 }
  0xc5   : > { %v494_v5 = vshrl.u32 %v5049_v63, %v482_v52  ;;  %v497_v10 = vshrl.u32 %v5050_v9, %v482_v52  ;;  %v378_v20 = vsub.s32 32, %v377_v55  ;;  %vm501_vm4 = vcmp.lt.s32.totalorder %v480_v44, 3 }
  0xc6   : > { %v486_v11 = vor.u32 %v485_v1, %v484_v54  ;;  %v489_v13 = vor.u32 %v488_v2, %v487_v58  ;;  %v492_v14 = vor.u32 %v491_v3, %v490_v60  ;;  %vm502_vm5 = vcmp.lt.s32.totalorder %v480_v44, 4 }
  0xc7   : > { %v495_v22 = vor.u32 %v494_v5, %v493_v62  ;;  %v498_v23 = vor.u32 %v497_v10, %v496_v0  ;;  %v380_v35 = vshll.u32 %v5045_v53, %v377_v55  ;;  %v381_v39 = vshrl.u32 %v5046_v57, %v378_v20 }
  0xc8   : > { %v503_v24 = vsel %vm499_vm2, %v483_v4, %v486_v11  ;;  %v504_v25 = vsel %vm502_vm5, %v492_v14, 2102212464  ;;  %v507_v27 = vsel %vm499_vm2, %v486_v11, %v489_v13  ;;  %v511_v28 = vsel %vm499_vm2, %v489_v13, %v492_v14 }
  0xc9   : > { %v505_v29 = vsel %vm501_vm4, %v489_v13, %v504_v25  ;;  %v508_v32 = vsel %vm502_vm5, %v495_v22, 920167782  ;;  %v512_v34 = vsel %vm502_vm5, %v498_v23, 1326507024  ;;  %v383_v41 = vshll.u32 %v5046_v57, %v377_v55 }
  0xca   : > { %v509_v36 = vsel %vm501_vm4, %v492_v14, %v508_v32  ;;  %v513_v37 = vsel %vm501_vm4, %v495_v22, %v512_v34  ;;  %v506_v42 = vsel %vm500_vm3, %v503_v24, %v505_v29  ;;  %v384_v52 = vshrl.u32 %v5047_v59, %v378_v20 }
  0xcb   : > { %v510_v45 = vsel %vm500_vm3, %v507_v27, %v509_v36  ;;  %v514_v46 = vsel %vm500_vm3, %v511_v28, %v513_v37  ;;  %v382_v0 = vor.u32 %v381_v39, %v380_v35  ;;  %v386_v2 = vshll.u32 %v5047_v59, %v377_v55 }
  0xcc   : > { %v5259_v54 = vmul.u32.u64.low %v5225_v48, %v514_v46  ;;  %v5260_v58 = vmul.u32.u64.high %v5225_v48, %v514_v46, %v5259_v54  ;;  %v5263_v60 = vmul.u32.u64.low %v5225_v48, %v510_v45  ;;  %v5264_v62 = vmul.u32.u64.high %v5225_v48, %v510_v45, %v5263_v60 }
  0xcd   : > { %v385_v1 = vor.u32 %v384_v52, %v383_v41  ;;  %v387_v3 = vshrl.u32 %v5048_v61, %v378_v20  ;;  %v379_v4 = vshrl.u32 %v5045_v53, %v378_v20  ;;  %v389_v44 = vshll.u32 %v5048_v61, %v377_v55 }
  0xce   : > { %v390_v5 = vshrl.u32 %v5049_v63, %v378_v20  ;;  %v393_v10 = vshrl.u32 %v5050_v9, %v378_v20  ;;  %v522_v11 = vmul.u32 %v5225_v48, %v506_v42  ;;  %v392_v14 = vshll.u32 %v5049_v63, %v377_v55 }
  0xcf   : > { %v388_v13 = vor.u32 %v387_v3, %v386_v2  ;;  %vm395_vm6 = vcmp.lt.s32.totalorder %v5227_v49, 1  ;;  %vm524_vm7 = vc.u32 %v5260_v58, %v5263_v60  ;;  %v525_v22 = vadd.s32 1, %v5264_v62 }
  0xd0   : > { %v391_v23 = vor.u32 %v390_v5, %v389_v44  ;;  %vm396_vm8 = vcmp.lt.s32.totalorder %v5227_v49, 2  ;;  %v394_v24 = vor.u32 %v393_v10, %v392_v14  ;;  %vm397_vm9 = vcmp.lt.s32.totalorder %v5227_v49, 3 }
  0xd1   : > { %vm398_vm10 = vcmp.lt.s32.totalorder %v5227_v49, 4  ;;  %v403_v20 = vsel %vm395_vm6, %v382_v0, %v385_v1  ;;  %v526_v48 = vsel %vm524_vm7, %v525_v22, %v5264_v62  ;;  %v407_v55 = vsel %vm395_vm6, %v385_v1, %v388_v13 }
  0xd2   : > { %v400_v25 = vsel %vm398_vm10, %v388_v13, 2102212464  ;;  %v404_v27 = vsel %vm398_vm10, %v391_v23, 920167782  ;;  %v527_v28 = vadd.s32 %v526_v48, %v522_v11  ;;  %v399_v29 = vsel %vm395_vm6, %v379_v4, %v382_v0 }
  0xd3   : > { %v405_v32 = vsel %vm397_vm9, %v388_v13, %v404_v27  ;;  %v408_v34 = vsel %vm398_vm10, %v394_v24, 1326507024  ;;  %v401_v35 = vsel %vm397_vm9, %v385_v1, %v400_v25  ;;  %v2141_v39 = vadd.s32 1, %v5236_v56 }
  0xd4   : > { %v406_v36 = vsel %vm396_vm8, %v403_v20, %v405_v32  ;;  %v409_v37 = vsel %vm397_vm9, %v391_v23, %v408_v34  ;;  %v528_v41 = vadd.s32 536870912, %v527_v28  ;;  %v402_v0 = vsel %vm396_vm8, %v399_v29, %v401_v35 }
  0xd5   : > { %v410_v42 = vsel %vm396_vm8, %v407_v55, %v409_v37  ;;  %v5287_v45 = vmul.u32.u64.low %v5229_v50, %v406_v36  ;;  %v5288_v46 = vmul.u32.u64.high %v5229_v50, %v406_v36, %v5287_v45  ;;  %vm2142_vm11 = vcmp.gt.s32.totalorder %v2141_v39, 0 }
  0xd6   : > { %v5292_v52 = vmul.u32.u64.low %v5229_v50, %v410_v42  ;;  %v5293_v54 = vmul.u32.u64.high %v5229_v50, %v410_v42, %v5292_v52  ;;  %v529_v62 = vshrl.u32 %v528_v41, 30  ;;  %v2143_v1 = vsel %vm2142_vm11, %v2141_v39, 0 }
  0xd7   : > { %v5299_v56 = vadd.f32 %v5203_v26, %v5223_v47  ;;  %v2145_v2 = vand.u32 31, %v2143_v1  ;;  %v290_v3 = vmul.f32 %v5216_v40, %v5182_v12  ;;  %v289_v4 = vmul.f32 %v5220_v43, %v5182_v12 }
  0xd8   : > { %v530_v44 = vshll.u32 %v529_v62, 30  ;;  %v421_v5 = vadd.s32 1, %v5288_v46  ;;  %v2139_v10 = vor.u32 8388608, %v5233_v51  ;;  %v418_v49 = vmul.u32 %v5229_v50, %v402_v0 }
  0xd9   : > { %vm420_vm12 = vc.u32 %v5293_v54, %v5287_v45  ;;  %v2146_v11 = vsub.s32 32, %v2145_v2  ;;  %v2027_v14 = vand.u32 2147483647, %v5299_v56  ;;  %v5315_v23 = vadd.f32 %v5186_v15, %v290_v3 }
  0xda   : > { %v5310_v47 = vsub.s32 %v527_v28, %v530_v44  ;;  %v422_v13 = vsel %vm420_vm12, %v421_v5, %v5288_v46  ;;  %v5318_v24 = vadd.f32 %v5186_v15, %v289_v4  ;;  %v523_v50 = vadd.s32 %v5263_v60, %v5260_v58 }
  0xdb   : > { %v423_v22 = vadd.s32 %v422_v13, %v418_v49  ;;  %v5323_v20 = vshll.u32 %v2139_v10, 8  ;;  %v5325_v25 = vshrl.u32 %v2143_v1, 5  ;;  %v2149_v27 = vshrl.u32 %v5046_v57, %v2146_v11 }
  0xdc   : > { %v533_v51 = vsub.s32 0, %v5310_v47  ;;  %v2030_v55 = vand.u32 2139095040, %v5299_v56  ;;  %v2152_v29 = vshrl.u32 %v5047_v59, %v2146_v11  ;;  %v2155_v32 = vshrl.u32 %v5048_v61, %v2146_v11 }
  0xdd   : > { %v424_v48 = vadd.s32 536870912, %v423_v22  ;;  %v5334_v58 = vand.u32 8388607, %v2027_v14  ;;  %v553_v60 = vsub.s32 4, %v529_v62  ;;  %v2148_v35 = vshll.u32 %v5045_v53, %v2145_v2 }
  0xde   : > { %v4543_v28 = vmin.u32 %v533_v51, %v5310_v47  ;;  %v2158_v36 = vshrl.u32 %v5049_v63, %v2146_v11  ;;  %v2151_v39 = vshll.u32 %v5046_v57, %v2145_v2  ;;  %v2154_v41 = vshll.u32 %v5047_v59, %v2145_v2 }
  0xdf   : > { %v425_v34 = vshrl.u32 %v424_v48, 30  ;;  %v2161_v42 = vshrl.u32 %v5050_v9, %v2146_v11  ;;  %v2150_v52 = vor.u32 %v2149_v27, %v2148_v35  ;;  %v2157_v0 = vshll.u32 %v5048_v61, %v2145_v2 }
  0xe0   : > { %v535_v37 = vclz %v4543_v28  ;;  %v2031_v1 = vshrl.u32 %v2030_v55, 23  ;;  %v2153_v4 = vor.u32 %v2152_v29, %v2151_v39  ;;  %v2156_v44 = vor.u32 %v2155_v32, %v2154_v41 }
  0xe1   : > { %v426_v46 = vshll.u32 %v425_v34, 30  ;;  %v2160_v5 = vshll.u32 %v5049_v63, %v2145_v2  ;;  %v5345_v10 = vsel %vm469_vm13, %v553_v60, %v529_v62  ;;  %v2147_v13 = vshrl.u32 %v5045_v53, %v2146_v11 }
  0xe2   : > { %v4544_v3 = vadd.s32 4294967294, %v535_v37  ;;  %v2159_v51 = vor.u32 %v2158_v36, %v2157_v0  ;;  %v449_v48 = vsub.s32 4, %v425_v34  ;;  %vm2163_vm0 = vcmp.lt.s32.totalorder %v5325_v25, 1 }
  0xe3   : > { %v5348_v49 = vsub.s32 %v423_v22, %v426_v46  ;;  %v2162_v27 = vor.u32 %v2161_v42, %v2160_v5  ;;  %vm2165_vm2 = vcmp.lt.s32.totalorder %v5325_v25, 3  ;;  %vm2166_vm3 = vcmp.lt.s32.totalorder %v5325_v25, 4 }
  0xe4   : > { %vm4545_vm15 = vcmp.lt.s32.totalorder %v4544_v3, 0  ;;  %vm5363_vm4 = vcmp.le.f32.partialorder %v363_v21, 0.7853982  ;;  %v2168_v29 = vsel %vm2166_vm3, %v2156_v44, 2102212464  ;;  %v2171_v19 = vsel %vm2163_vm0, %v2150_v52, %v2153_v4 }
  0xe5   : > { %v538_v62 = vsel %vm4545_vm15, 0, %v4544_v3  ;;  %v429_v55 = vsub.s32 0, %v5348_v49  ;;  %v2172_v35 = vsel %vm2166_vm3, %v2159_v51, 920167782  ;;  %v2175_v36 = vsel %vm2163_vm0, %v2153_v4, %v2156_v44 }
  0xe6   : > { %v539_v11 = vsub.s32 32, %v538_v62  ;;  %v543_v22 = vsub.s32 4294967266, %v538_v62  ;;  %v540_v32 = vshll.u32 %v5310_v47, %v538_v62  ;;  %v2173_v21 = vsel %vm2165_vm2, %v2156_v44, %v2172_v35 }
  0xe7   : > { %v4539_v60 = vmin.u32 %v429_v55, %v5348_v49  ;;  %v2176_v41 = vsel %vm2166_vm3, %v2162_v27, 1326507024  ;;  %vm2164_vm5 = vcmp.lt.s32.totalorder %v5325_v25, 2  ;;  %v2167_v46 = vsel %vm2163_vm0, %v2147_v13, %v2150_v52 }
  0xe8   : > { %v541_v37 = vshrl.u32 %v523_v50, %v539_v11  ;;  %v544_v39 = vadd.s32 127, %v543_v22  ;;  %v2169_v47 = vsel %vm2165_vm2, %v2153_v4, %v2168_v29  ;;  %v2174_v5 = vsel %vm2164_vm5, %v2171_v19, %v2173_v21 }
  0xe9   : > { %v431_v42 = vclz %v4539_v60  ;;  %v2177_v50 = vsel %vm2165_vm2, %v2159_v51, %v2176_v41  ;;  %v5383_v44 = vmul.u32.u64.low %v5323_v20, %v2174_v5  ;;  %v5384_v27 = vmul.u32.u64.high %v5323_v20, %v2174_v5, %v5383_v44 }
  0xea   : > { %v542_v0 = vor.u32 %v541_v37, %v540_v32  ;;  %v545_v3 = vshll.u32 %v544_v39, 23  ;;  %v2178_v55 = vsel %vm2164_vm5, %v2175_v36, %v2177_v50  ;;  %v450_v22 = vsel %vm365_vm14, %v449_v48, %v425_v34 }
  0xeb   : > { %v4540_v62 = vadd.s32 4294967294, %v431_v42  ;;  %v5389_v52 = vmul.u32.u64.low %v5323_v20, %v2178_v55  ;;  %v5390_v13 = vmul.u32.u64.high %v5323_v20, %v2178_v55, %v5389_v52  ;;  %v419_v4 = vadd.s32 %v5287_v45, %v5293_v54 }
  0xec   : > { %v546_v11 = vor.u32 4788187, %v545_v3  ;;  %v2170_v25 = vsel %vm2164_vm5, %v2167_v46, %v2169_v47  ;;  %v4602_v51 = vadd.s32 4294967169, %v2031_v1  ;;  %v549_v19 = vcvt.s32.f32 %v542_v0 }
  0xed   : > { %vm4541_vm6 = vcmp.lt.s32.totalorder %v4540_v62, 0  ;;  %v556_v32 = vsel %vm5354_vm1, 0, %v5345_v10  ;;  %v452_v34 = vsel %vm5363_vm4, 0, %v450_v22  ;;  %v2189_v48 = vadd.s32 1, %v5384_v27 }
  0xee   : > { %v547_v29 = vand.u32 2147483647, %v546_v11  ;;  %v434_v60 = vsel %vm4541_vm6, 0, %v4540_v62  ;;  %v2186_v45 = vmul.u32 %v5323_v20, %v2170_v25  ;;  %vm2188_vm7 = vc.u32 %v5390_v13, %v5383_v44 }
  0xef   : > { %v435_v35 = vsub.s32 32, %v434_v60  ;;  %v439_v36 = vsub.s32 4294967266, %v434_v60  ;;  %v2037_v54 = vadd.s32 1, %v4602_v51  ;;  %v436_v1 = vshll.u32 %v5348_v49, %v434_v60 }
  0xf0   : > { %v550_v37 = vmul.f32 %v549_v19, %v547_v29  ;;  %v2190_v10 = vsel %vm2188_vm7, %v2189_v48, %v5384_v27  ;;  %v560_v42 = vadd.s32 3, %v556_v32  ;;  %v456_v3 = vadd.s32 3, %v452_v34 }
  0xf1   : > { %v437_v39 = vshrl.u32 %v419_v4, %v435_v35  ;;  %v440_v21 = vadd.s32 127, %v439_v36  ;;  %v2191_v46 = vadd.s32 %v2190_v10, %v2186_v45  ;;  %vm2038_vm8 = vcmp.gt.s32.totalorder %v2037_v54, 0 }
  0xf2   : > { %v551_v41 = vxor.u32 2147483648, %v550_v37  ;;  %v2039_v5 = vsel %vm2038_vm8, %v2037_v54, 0  ;;  %v678_v55 = vand.u32 2139095040, %v5315_v23  ;;  %v2035_v11 = vor.u32 8388608, %v5334_v58 }
  0xf3   : > { %v438_v47 = vor.u32 %v437_v39, %v436_v1  ;;  %v441_v0 = vshll.u32 %v440_v21, 23  ;;  %v2192_v50 = vadd.s32 536870912, %v2191_v46  ;;  %v2041_v62 = vand.u32 31, %v2039_v5 }
  0xf4   : > { %v552_v20 = vsel %vm469_vm13, %v551_v41, %v550_v37  ;;  %v675_v22 = vand.u32 2147483647, %v5315_v23  ;;  %v5412_v52 = vand.u32 3, %v560_v42  ;;  %vm2133_vm9 = vcmp.lt.s32.totalorder %v5208_v30, 0 }
  0xf5   : > { %v555_v49 = vsel %vm5354_vm1, %v5189_v16, %v552_v20  ;;  %v442_v27 = vor.u32 4788187, %v441_v0  ;;  %v2193_v4 = vshrl.u32 %v2192_v50, 30  ;;  %v2042_v25 = vsub.s32 32, %v2041_v62 }
  0xf6   : > { %4846 = vcosq.f32 %v555_v49  ;;  %v445_v29 = vcvt.s32.f32 %v438_v47  ;;  %v5415_v19 = vand.u32 3, %v456_v3  ;;  %v5418_v2 = vadd.s32 %v5383_v44, %v5390_v13 }
  0xf7   : > { %4848 = vsinq.f32 %v555_v49  ;;  %v443_v51 = vand.u32 2147483647, %v442_v27  ;;  %v2194_v32 = vshll.u32 %v2193_v4, 30  ;;  %v679_v60 = vshrl.u32 %v678_v55, 23 }
  0xf8   : > { %v2045_v35 = vshrl.u32 %v5046_v57, %v2042_v25  ;;  %v2048_v36 = vshrl.u32 %v5047_v59, %v2042_v25  ;;  %v5422_v34 = vshll.u32 %v2035_v11, 8  ;;  %vm566_vm10 = vcmp.eq.s32.totalorder %v5412_v52, 2 }
  0xf9   : > { %v446_v58 = vmul.f32 %v445_v29, %v443_v51  ;;  %v5425_v48 = vsub.s32 %v2191_v46, %v2194_v32  ;;  %v5427_v37 = vshrl.u32 %v2039_v5, 5  ;;  %v2044_v45 = vshll.u32 %v5045_v53, %v2041_v62 }
  0xfa   : > { %v2054_v44 = vshrl.u32 %v5049_v63, %v2042_v25  ;;  %vm563_vm11 = vcmp.eq.s32.totalorder %v5412_v52, 0  ;;  %v2217_v54 = vsub.s32 4, %v2193_v4  ;;  %v2047_v1 = vshll.u32 %v5046_v57, %v2041_v62 }
  0xfb   : > { %v447_v13 = vxor.u32 2147483648, %v446_v58  ;;  %v2051_v39 = vshrl.u32 %v5048_v61, %v2042_v25  ;;  %vm562_vm12 = vcmp.lt.s32.totalorder %v5412_v52, 2  ;;  %v2197_v21 = vsub.s32 0, %v5425_v48 }
  0xfc   : > { %v2050_v10 = vshll.u32 %v5047_v59, %v2041_v62  ;;  %v2053_v41 = vshll.u32 %v5048_v61, %v2041_v62  ;;  %v4550_v42 = vadd.s32 4294967169, %v679_v60  ;;  %vm559_vm13 = vweird.f32 %v5189_v16 }
  0xfd   : > { %v448_v46 = vsel %vm365_vm14, %v447_v13, %v446_v58  ;;  %v2046_v47 = vor.u32 %v2045_v35, %v2044_v45  ;;  %v2049_v0 = vor.u32 %v2048_v36, %v2047_v1  ;;  %v2057_v3 = vshrl.u32 %v5050_v9, %v2042_v25 }
  0xfe   : > { %v451_v5 = vsel %vm5363_vm4, %v5192_v17, %v448_v46  ;;  %v4607_v20 = vmin.u32 %v2197_v21, %v5425_v48  ;;  %v2055_v50 = vor.u32 %v2054_v44, %v2053_v41  ;;  %v2056_v55 = vshll.u32 %v5049_v63, %v2041_v62 }
  0xff   : > { %4850 = vcosq.f32 %v451_v5  ;;  %v2218_v49 = vsel %vm2133_vm9, %v2217_v54, %v2193_v4  ;;  %v2043_v27 = vshrl.u32 %v5045_v53, %v2042_v25  ;;  %v2052_v11 = vor.u32 %v2051_v39, %v2050_v10 }
 0x100   : > { %v4847_v51 = vpop.eup %4846  ;;  %4852 = vsinq.f32 %v451_v5  ;;  %vm5452_vm14 = vcmp.le.f32.partialorder %v2131_v38, 0.7853982  ;;  %v2199_v28 = vclz %v4607_v20  ;;  %v2058_v32 = vor.u32 %v2057_v3, %v2056_v55 }
 0x101   : > { %vm2059_vm15 = vcmp.lt.s32.totalorder %v5427_v37, 1  ;;  %v4849_v62 = vpop.eup %4848  ;;  %v567_v60 = vxor.u32 2147483648, %v4847_v51  ;;  %vm2060_vm0 = vcmp.lt.s32.totalorder %v5427_v37, 2  ;;  %vm2062_vm1 = vcmp.lt.s32.totalorder %v5427_v37, 4 }
 0x102   : > { %v2067_v4 = vsel %vm2059_vm15, %v2046_v47, %v2049_v0  ;;  %v564_v25 = vxor.u32 2147483648, %v4849_v62  ;;  %v4608_v58 = vadd.s32 4294967294, %v2199_v28  ;;  %vm2061_vm2 = vcmp.lt.s32.totalorder %v5427_v37, 3 }
 0x103   : > { %v2068_v38 = vsel %vm2062_vm1, %v2055_v50, 920167782  ;;  %v568_v35 = vsel %vm566_vm10, %v567_v60, %v4849_v62  ;;  %v2064_v36 = vsel %vm2062_vm1, %v2052_v11, 2102212464  ;;  %v2071_v44 = vsel %vm2059_vm15, %v2049_v0, %v2052_v11 }
 0x104   : > { %v2069_v45 = vsel %vm2061_vm2, %v2052_v11, %v2068_v38  ;;  %v565_v13 = vsel %vm563_vm11, %v4847_v51, %v564_v25  ;;  %vm4609_vm3 = vcmp.lt.s32.totalorder %v4608_v58, 0  ;;  %v2072_v1 = vsel %vm2062_vm1, %v2058_v32, 1326507024 }
 0x105   : > { %v2070_v54 = vsel %vm2060_vm0, %v2067_v4, %v2069_v45  ;;  %v569_v39 = vsel %vm562_vm12, %v565_v13, %v568_v35  ;;  %v2202_v21 = vsel %vm4609_vm3, 0, %v4608_v58  ;;  %v2063_v10 = vsel %vm2059_vm15, %v2043_v27, %v2046_v47 }
 0x106   : > { %v2073_v41 = vsel %vm2061_vm2, %v2055_v50, %v2072_v1  ;;  %v570_v46 = vsel %vm559_vm13, nan, %v569_v39  ;;  %vm455_vm4 = vweird.f32 %v5192_v17  ;;  %v2203_v3 = vsub.s32 32, %v2202_v21 }
 0x107   : > { %v2207_v5 = vsub.s32 4294967266, %v2202_v21  ;;  %v2065_v20 = vsel %vm2061_vm2, %v2049_v0, %v2064_v36  ;;  %3723 = vxpose.xlu1.b32.start [1/2] (short) %v570_v46, 128  ;;  %v2204_v52 = vshll.u32 %v5425_v48, %v2202_v21  ;;  %v2074_v55 = vsel %vm2060_vm0, %v2071_v44, %v2073_v41 }
 0x108   : > { %v5487_v47 = vmul.u32.u64.low %v5422_v34, %v2070_v54  ;;  %v5488_v27 = vmul.u32.u64.high %v5422_v34, %v2070_v54, %v5487_v47  ;;  %v2205_v16 = vshrl.u32 %v5418_v2, %v2203_v3  ;;  %vm458_vm5 = vcmp.lt.s32.totalorder %v5415_v19, 2 }
 0x109   : > { %v2208_v50 = vadd.s32 127, %v2207_v5  ;;  %v5493_v11 = vmul.u32.u64.low %v5422_v34, %v2074_v55  ;;  %v5494_v51 = vmul.u32.u64.high %v5422_v34, %v2074_v55, %v5493_v11  ;;  %v4851_v28 = vpop.eup %4850  ;;  %vm459_vm6 = vcmp.eq.s32.totalorder %v5415_v19, 0 }
 0x10a   : > { %v2220_v48 = vsel %vm5452_vm14, 0, %v2218_v49  ;;  %v685_v0 = vadd.s32 1, %v4550_v42  ;;  %v4853_v32 = vpop.eup %4852  ;;  %v463_v62 = vxor.u32 2147483648, %v4851_v28  ;;  %v2206_v60 = vor.u32 %v2205_v16, %v2204_v52 }
 0x10b   : > { %v2209_v4 = vshll.u32 %v2208_v50, 23  ;;  %v2066_v2 = vsel %vm2060_vm0, %v2063_v10, %v2065_v20  ;;  %v460_v25 = vxor.u32 2147483648, %v4853_v32  ;;  %vm462_vm7 = vcmp.eq.s32.totalorder %v5415_v19, 2 }
 0x10c   : > { %v2085_v58 = vadd.s32 1, %v5488_v27  ;;  %vm686_vm8 = vcmp.gt.s32.totalorder %v685_v0, 0  ;;  %v464_v38 = vsel %vm462_vm7, %v463_v62, %v4853_v32  ;;  %v2224_v36 = vadd.s32 3, %v2220_v48 }
 0x10d   : > { %v2210_v35 = vor.u32 4788187, %v2209_v4  ;;  %v682_v49 = vand.u32 8388607, %v675_v22  ;;  %v461_v42 = vsel %vm459_vm6, %v4851_v28, %v460_v25  ;;  %v2082_v45 = vmul.u32 %v5422_v34, %v2066_v2 }
 0x10e   : > { %vm2084_vm10 = vc.u32 %v5494_v51, %v5487_v47  ;;  %v687_v37 = vsel %vm686_vm8, %v685_v0, 0  ;;  %v465_v44 = vsel %vm458_vm5, %v461_v42, %v464_v38  ;;  %v2213_v54 = vcvt.s32.f32 %v2206_v60 }
 0x10f   : > { %v2211_v13 = vand.u32 2147483647, %v2210_v35  ;;  %v2086_v1 = vsel %vm2084_vm10, %v2085_v58, %v5488_v27  ;;  %v466_v39 = vsel %vm455_vm4, nan, %v465_v44  ;;  %v689_v10 = vand.u32 31, %v687_v37 }
 0x110   : > { %v2087_v21 = vadd.s32 %v2086_v1, %v2082_v45  ;;  %3691 = vxpose.xlu0.b32.start [1/2] (short) %v466_v39, 128  ;;  %v5516_v46 = vand.u32 3, %v2224_v36  ;;  %v683_v34 = vor.u32 8388608, %v682_v49  ;;  %v688_v5 = vshrl.u32 %v687_v37, 5 }
 0x111   : > { %v2214_v41 = vmul.f32 %v2213_v54, %v2211_v13  ;;  %v690_v20 = vsub.s32 32, %v689_v10  ;;  %v574_v19 = vand.u32 2139095040, %v5318_v24  ;;  %v692_v55 = vshll.u32 %v5045_v53, %v689_v10 }
 0x112   : > { %v2088_v3 = vadd.s32 536870912, %v2087_v21  ;;  %v695_v27 = vshll.u32 %v5046_v57, %v689_v10  ;;  %v698_v17 = vshll.u32 %v5047_v59, %v689_v10  ;;  %v701_v28 = vshll.u32 %v5048_v61, %v689_v10 }
 0x113   : > { %v2215_v52 = vxor.u32 2147483648, %v2214_v41  ;;  %v693_v50 = vshrl.u32 %v5046_v57, %v690_v20  ;;  %v696_v11 = vshrl.u32 %v5047_v59, %v690_v20  ;;  %v699_v0 = vshrl.u32 %v5048_v61, %v690_v20 }
 0x114   : > { %v2089_v16 = vshrl.u32 %v2088_v3, 30  ;;  %v702_v32 = vshrl.u32 %v5049_v63, %v690_v20  ;;  %v705_v62 = vshrl.u32 %v5050_v9, %v690_v20  ;;  %v704_v25 = vshll.u32 %v5049_v63, %v689_v10 }
 0x115   : > { %v2216_v48 = vsel %vm2133_vm9, %v2215_v52, %v2214_v41  ;;  %v694_v2 = vor.u32 %v693_v50, %v692_v55  ;;  %v697_v58 = vor.u32 %v696_v11, %v695_v27  ;;  %v700_v38 = vor.u32 %v699_v0, %v698_v17 }
 0x116   : > { %v2219_v60 = vsel %vm5452_vm14, %v5208_v30, %v2216_v48  ;;  %v2090_v4 = vshll.u32 %v2089_v16, 30  ;;  %v703_v35 = vor.u32 %v702_v32, %v701_v28  ;;  %v706_v49 = vor.u32 %v705_v62, %v704_v25 }
 0x117   : > { %4854 = vcosq.f32 %v2219_v60  ;;  %vm707_vm9 = vcmp.lt.s32.totalorder %v688_v5, 1  ;;  %vm709_vm11 = vcmp.lt.s32.totalorder %v688_v5, 3  ;;  %vm710_vm12 = vcmp.lt.s32.totalorder %v688_v5, 4 }
 0x118   : > { %4856 = vsinq.f32 %v2219_v60  ;;  %v5534_v36 = vsub.s32 %v2087_v21, %v2090_v4  ;;  %v715_v42 = vsel %vm707_vm9, %v694_v2, %v697_v58  ;;  %v723_v45 = vshll.u32 %v683_v34, 8 }
 0x119   : > { %v691_v37 = vshrl.u32 %v5045_v53, %v690_v20  ;;  %v712_v44 = vsel %vm710_vm12, %v700_v38, 2102212464  ;;  %v716_v13 = vsel %vm710_vm12, %v703_v35, 920167782  ;;  %vm708_vm13 = vcmp.lt.s32.totalorder %v688_v5, 2 }
 0x11a   : > { %v2093_v29 = vsub.s32 0, %v5534_v36  ;;  %v717_v54 = vsel %vm709_vm11, %v700_v38, %v716_v13  ;;  %v720_v1 = vsel %vm710_vm12, %v706_v49, 1326507024  ;;  %v575_v39 = vshrl.u32 %v574_v19, 23 }
 0x11b   : > { %v711_v10 = vsel %vm707_vm9, %v691_v37, %v694_v2  ;;  %v718_v41 = vsel %vm708_vm13, %v715_v42, %v717_v54  ;;  %v719_v3 = vsel %vm707_vm9, %v697_v58, %v700_v38  ;;  %v713_v34 = vsel %vm709_vm11, %v697_v58, %v712_v44 }
 0x11c   : > { %v4603_v21 = vmin.u32 %v2093_v29, %v5534_v36  ;;  %v721_v52 = vsel %vm709_vm11, %v703_v35, %v720_v1  ;;  %v5546_v20 = vmul.u32.u64.low %v723_v45, %v718_v41  ;;  %v5547_v55 = vmul.u32.u64.high %v723_v45, %v718_v41, %v5546_v20 }
 0x11d   : > { %vm2223_vm14 = vweird.f32 %v5208_v30  ;;  %vm2029_vm15 = vcmp.lt.s32.totalorder %v5299_v56, 0  ;;  %v2113_v27 = vsub.s32 4, %v2089_v16  ;;  %vm2226_vm0 = vcmp.lt.s32.totalorder %v5516_v46, 2 }
 0x11e   : > { %v2095_v19 = vclz %v4603_v21  ;;  %v722_v17 = vsel %vm708_vm13, %v719_v3, %v721_v52  ;;  %v571_v50 = vand.u32 2147483647, %v5318_v24  ;;  %v4546_v11 = vadd.s32 4294967169, %v575_v39 }
 0x11f   : > { %v714_v48 = vsel %vm708_vm13, %v711_v10, %v713_v34  ;;  %v5556_v0 = vmul.u32.u64.low %v723_v45, %v722_v17  ;;  %v5557_v32 = vmul.u32.u64.high %v723_v45, %v722_v17, %v5556_v0  ;;  %vm2227_vm1 = vcmp.eq.s32.totalorder %v5516_v46, 0 }
 0x120   : > { %v4604_v28 = vadd.s32 4294967294, %v2095_v19  ;;  %vm2230_vm2 = vcmp.eq.s32.totalorder %v5516_v46, 2  ;;  %v2083_v60 = vadd.s32 %v5487_v47, %v5494_v51  ;;  %v581_v4 = vadd.s32 1, %v4546_v11 }
 0x121   : > { %v4855_v62 = vpop.eup %4854  ;;  %v2114_v58 = vsel %vm2029_vm15, %v2113_v27, %v2089_v16  ;;  %v733_v5 = vadd.s32 1, %v5547_v55  ;;  %v730_v49 = vmul.u32 %v723_v45, %v714_v48  ;;  %v578_v44 = vand.u32 8388607, %v571_v50 }
 0x122   : > { %v4857_v2 = vpop.eup %4856  ;;  %v2231_v25 = vxor.u32 2147483648, %v4855_v62  ;;  %vm4605_vm3 = vcmp.lt.s32.totalorder %v4604_v28, 0  ;;  %vm582_vm4 = vcmp.gt.s32.totalorder %v581_v4, 0  ;;  %vm732_vm5 = vc.u32 %v5557_v32, %v5546_v20 }
 0x123   : > { %v2228_v38 = vxor.u32 2147483648, %v4857_v2  ;;  %v2098_v35 = vsel %vm4605_vm3, 0, %v4604_v28  ;;  %v583_v16 = vsel %vm582_vm4, %v581_v4, 0  ;;  %v734_v1 = vsel %vm732_vm5, %v733_v5, %v5547_v55 }
 0x124   : > { %v2232_v42 = vsel %vm2230_vm2, %v2231_v25, %v4857_v2  ;;  %v2099_v29 = vsub.s32 32, %v2098_v35  ;;  %v2103_v37 = vsub.s32 4294967266, %v2098_v35  ;;  %v2100_v51 = vshll.u32 %v5534_v36, %v2098_v35 }
 0x125   : > { %v2229_v47 = vsel %vm2227_vm1, %v4855_v62, %v2228_v38  ;;  %v735_v21 = vadd.s32 %v734_v1, %v730_v49  ;;  %v585_v10 = vand.u32 31, %v583_v16  ;;  %vm5580_vm6 = vcmp.le.f32.partialorder %v2027_v14, 0.7853982 }
 0x126   : > { %v2233_v13 = vsel %vm2226_vm0, %v2229_v47, %v2232_v42  ;;  %v2101_v45 = vshrl.u32 %v2083_v60, %v2099_v29  ;;  %v2104_v54 = vadd.s32 127, %v2103_v37  ;;  %v2116_v46 = vsel %vm5580_vm6, 0, %v2114_v58 }
 0x127   : > { %v2234_v39 = vsel %vm2223_vm14, nan, %v2233_v13  ;;  %v736_v34 = vadd.s32 536870912, %v735_v21  ;;  %v586_v52 = vsub.s32 32, %v585_v10  ;;  %v579_v19 = vor.u32 8388608, %v578_v44 }
 0x128   : > { %3724 = vxpose.xlu1.b32.end [2/2] (short) %v2234_v39, 128  ;;  %v2102_v41 = vor.u32 %v2101_v45, %v2100_v51  ;;  %v2105_v3 = vshll.u32 %v2104_v54, 23  ;;  %v584_v30 = vshrl.u32 %v583_v16, 5  ;;  %v306_v27 = vmul.f32 %v5216_v40, %v5194_v18 }
 0x129   : > { %v737_v11 = vshrl.u32 %v736_v34, 30  ;;  %v589_v14 = vshrl.u32 %v5046_v57, %v586_v52  ;;  %v592_v28 = vshrl.u32 %v5047_v59, %v586_v52  ;;  %v595_v0 = vshrl.u32 %v5048_v61, %v586_v52 }
 0x12a   : > { %v2106_v55 = vor.u32 4788187, %v2105_v3  ;;  %v2109_v17 = vcvt.s32.f32 %v2102_v41  ;;  %v597_v62 = vshll.u32 %v5048_v61, %v585_v10  ;;  %v598_v60 = vshrl.u32 %v5049_v63, %v586_v52 }
 0x12b   : > { %v738_v4 = vshll.u32 %v737_v11, 30  ;;  %v588_v2 = vshll.u32 %v5045_v53, %v585_v10  ;;  %v591_v25 = vshll.u32 %v5046_v57, %v585_v10  ;;  %v594_v40 = vshll.u32 %v5047_v59, %v585_v10 }
 0x12c   : > { %v2107_v48 = vand.u32 2147483647, %v2106_v55  ;;  %v2120_v5 = vadd.s32 3, %v2116_v46  ;;  %v599_v38 = vor.u32 %v598_v60, %v597_v62  ;;  %v601_v35 = vshrl.u32 %v5050_v9, %v586_v52 }
 0x12d   : > { %vm677_vm7 = vcmp.lt.s32.totalorder %v5315_v23, 0  ;;  %v5598_v49 = vsub.s32 %v735_v21, %v738_v4  ;;  %v590_v42 = vor.u32 %v589_v14, %v588_v2  ;;  %v593_v29 = vor.u32 %v592_v28, %v591_v25 }
 0x12e   : > { %v2110_v58 = vmul.f32 %v2109_v17, %v2107_v48  ;;  %v596_v37 = vor.u32 %v595_v0, %v594_v40  ;;  %v600_v47 = vshll.u32 %v5049_v63, %v585_v10  ;;  %v5602_v51 = vadd.f32 %v5203_v26, %v306_v27 }
 0x12f   : > { %v305_v16 = vmul.f32 %v5220_v43, %v5194_v18  ;;  %v741_v13 = vsub.s32 0, %v5598_v49  ;;  %vm603_vm8 = vcmp.lt.s32.totalorder %v584_v30, 1  ;;  %vm606_vm10 = vcmp.lt.s32.totalorder %v584_v30, 4 }
 0x130   : > { %v2111_v44 = vxor.u32 2147483648, %v2110_v58  ;;  %v619_v45 = vshll.u32 %v579_v19, 8  ;;  %v602_v1 = vor.u32 %v601_v35, %v600_v47  ;;  %vm605_vm9 = vcmp.lt.s32.totalorder %v584_v30, 3 }
 0x131   : > { %v612_v39 = vsel %vm606_vm10, %v599_v38, 920167782  ;;  %vm5615_vm11 = vcmp.le.f32.partialorder %v675_v22, 0.7853982  ;;  %v4551_v10 = vmin.u32 %v741_v13, %v5598_v49  ;;  %v608_v41 = vsel %vm606_vm10, %v596_v37, 2102212464 }
 0x132   : > { %v2112_v54 = vsel %vm2029_vm15, %v2111_v44, %v2110_v58  ;;  %v611_v3 = vsel %vm603_vm8, %v590_v42, %v593_v29  ;;  %v761_v46 = vsub.s32 4, %v737_v11  ;;  %v587_v34 = vshrl.u32 %v5045_v53, %v586_v52 }
 0x133   : > { %v2115_v21 = vsel %vm5580_vm6, %v5299_v56, %v2112_v54  ;;  %v613_v55 = vsel %vm605_vm9, %v596_v37, %v612_v39  ;;  %v743_v36 = vclz %v4551_v10  ;;  %vm604_vm12 = vcmp.lt.s32.totalorder %v584_v30, 2 }
 0x134   : > { %4858 = vcosq.f32 %v2115_v21  ;;  %v615_v22 = vsel %vm603_vm8, %v593_v29, %v596_v37  ;;  %v607_v19 = vsel %vm603_vm8, %v587_v34, %v590_v42  ;;  %v609_v27 = vsel %vm605_vm9, %v593_v29, %v608_v41 }
 0x135   : > { %4860 = vsinq.f32 %v2115_v21  ;;  %v614_v17 = vsel %vm604_vm12, %v611_v3, %v613_v55  ;;  %v616_v14 = vsel %vm606_vm10, %v602_v1, 1326507024  ;;  %v4552_v28 = vadd.s32 4294967294, %v743_v36 }
 0x136   : > { %v617_v48 = vsel %vm605_vm9, %v599_v38, %v616_v14  ;;  %v5629_v0 = vmul.u32.u64.low %v619_v45, %v614_v17  ;;  %v5630_v62 = vmul.u32.u64.high %v619_v45, %v614_v17, %v5629_v0  ;;  %v2121_v52 = vand.u32 3, %v2120_v5 }
 0x137   : > { %v762_v60 = vsel %vm677_vm7, %v761_v46, %v737_v11  ;;  %v618_v4 = vsel %vm604_vm12, %v615_v22, %v617_v48  ;;  %v2342_v2 = vand.u32 2139095040, %v5602_v51  ;;  %vm4553_vm13 = vcmp.lt.s32.totalorder %v4552_v28, 0 }
 0x138   : > { %v610_v25 = vsel %vm604_vm12, %v607_v19, %v609_v27  ;;  %v5636_v40 = vmul.u32.u64.low %v619_v45, %v618_v4  ;;  %v5637_v58 = vmul.u32.u64.high %v619_v45, %v618_v4, %v5636_v40  ;;  %v746_v35 = vsel %vm4553_vm13, 0, %v4552_v28 }
 0x139   : > { %v2339_v30 = vand.u32 2147483647, %v5602_v51  ;;  %v2343_v38 = vshrl.u32 %v2342_v2, 23  ;;  %v5641_v42 = vadd.f32 %v5203_v26, %v305_v16  ;;  %vm2119_vm14 = vweird.f32 %v5299_v56 }
 0x13a   : > { %v731_v11 = vadd.s32 %v5546_v20, %v5557_v32  ;;  %v747_v5 = vsub.s32 32, %v746_v35  ;;  %v751_v29 = vsub.s32 4294967266, %v746_v35  ;;  %v629_v37 = vadd.s32 1, %v5630_v62 }
 0x13b   : > { %vm2122_vm15 = vcmp.lt.s32.totalorder %v2121_v52, 2  ;;  %v764_v44 = vsel %vm5615_vm11, 0, %v762_v60  ;;  %v626_v47 = vmul.u32 %v619_v45, %v610_v25  ;;  %v4614_v13 = vadd.s32 4294967169, %v2343_v38 }
 0x13c   : > { %v748_v54 = vshll.u32 %v5598_v49, %v746_v35  ;;  %v749_v1 = vshrl.u32 %v731_v11, %v747_v5  ;;  %v752_v16 = vadd.s32 127, %v751_v29  ;;  %vm628_vm0 = vc.u32 %v5637_v58, %v5629_v0 }
 0x13d   : > { %v630_v20 = vsel %vm628_vm0, %v629_v37, %v5630_v62  ;;  %v2346_v32 = vand.u32 8388607, %v2339_v30  ;;  %v2349_v21 = vadd.s32 1, %v4614_v13  ;;  %v2238_v10 = vand.u32 2139095040, %v5641_v42 }
 0x13e   : > { %v4859_v39 = vpop.eup %4858  ;;  %v750_v45 = vor.u32 %v749_v1, %v748_v54  ;;  %v753_v46 = vshll.u32 %v752_v16, 23  ;;  %v631_v34 = vadd.s32 %v630_v20, %v626_v47  ;;  %vm2123_vm1 = vcmp.eq.s32.totalorder %v2121_v52, 0 }
 0x13f   : > { %v4861_v41 = vpop.eup %4860  ;;  %v2127_v3 = vxor.u32 2147483648, %v4859_v39  ;;  %vm2126_vm2 = vcmp.eq.s32.totalorder %v2121_v52, 2  ;;  %vm2350_vm3 = vcmp.gt.s32.totalorder %v2349_v21, 0  ;;  %v768_v22 = vadd.s32 3, %v764_v44 }
 0x140   : > { %v2124_v49 = vxor.u32 2147483648, %v4861_v41  ;;  %v754_v36 = vor.u32 4788187, %v753_v46  ;;  %v632_v19 = vadd.s32 536870912, %v631_v34  ;;  %v2347_v17 = vor.u32 8388608, %v2346_v32 }
 0x141   : > { %v2128_v55 = vsel %vm2126_vm2, %v2127_v3, %v4861_v41  ;;  %v2351_v14 = vsel %vm2350_vm3, %v2349_v21, 0  ;;  %v2239_v28 = vshrl.u32 %v2238_v10, 23  ;;  %v757_v60 = vcvt.s32.f32 %v750_v45 }
 0x142   : > { %v2125_v27 = vsel %vm2123_vm1, %v4859_v39, %v2124_v49  ;;  %v755_v62 = vand.u32 2147483647, %v754_v36  ;;  %v5657_v4 = vshrl.u32 %v632_v19, 30  ;;  %v2353_v25 = vand.u32 31, %v2351_v14 }
 0x143   : > { %v2129_v48 = vsel %vm2122_vm15, %v2125_v27, %v2128_v55  ;;  %v5662_v38 = vand.u32 3, %v768_v22  ;;  %v5664_v5 = vshll.u32 %v2347_v17, 8  ;;  %v229_v52 = vsub.s32 5, %v5173_v6 }
 0x144   : > { %v2130_v2 = vsel %vm2119_vm14, nan, %v2129_v48  ;;  %v758_v40 = vmul.f32 %v757_v60, %v755_v62  ;;  %v634_v35 = vshll.u32 %v5657_v4, 30  ;;  %v2354_v11 = vsub.s32 32, %v2353_v25 }
 0x145   : > { %3692 = vxpose.xlu0.b32.end [2/2] (short) %v2130_v2, 128  ;;  %v5669_v44 = vshrl.u32 %v2351_v14, 5  ;;  %v4610_v47 = vadd.s32 4294967169, %v2239_v28  ;;  %v2356_v56 = vshll.u32 %v5045_v53, %v2353_v25  ;;  %v2359_v54 = vshll.u32 %v5046_v57, %v2353_v25 }
 0x146   : > { %v759_v29 = vxor.u32 2147483648, %v758_v40  ;;  %v5667_v37 = vsub.s32 %v631_v34, %v634_v35  ;;  %v2357_v13 = vshrl.u32 %v5046_v57, %v2354_v11  ;;  %v2360_v1 = vshrl.u32 %v5047_v59, %v2354_v11 }
 0x147   : > { %v2362_v20 = vshll.u32 %v5047_v59, %v2353_v25  ;;  %v2363_v32 = vshrl.u32 %v5048_v61, %v2354_v11  ;;  %v2365_v41 = vshll.u32 %v5048_v61, %v2353_v25  ;;  %v2366_v3 = vshrl.u32 %v5049_v63, %v2354_v11 }
 0x148   : > { %v760_v16 = vsel %vm677_vm7, %v759_v29, %v758_v40  ;;  %v637_v39 = vsub.s32 0, %v5667_v37  ;;  %v2358_v10 = vor.u32 %v2357_v13, %v2356_v56  ;;  %v2361_v46 = vor.u32 %v2360_v1, %v2359_v54 }
 0x149   : > { %v763_v21 = vsel %vm5615_vm11, %v5315_v23, %v760_v16  ;;  %v2364_v34 = vor.u32 %v2363_v32, %v2362_v20  ;;  %v2367_v49 = vor.u32 %v2366_v3, %v2365_v41  ;;  %v2368_v55 = vshll.u32 %v5049_v63, %v2353_v25 }
 0x14a   : > { %4862 = vcosq.f32 %v763_v21  ;;  %v4547_v45 = vmin.u32 %v637_v39, %v5667_v37  ;;  %v2369_v36 = vshrl.u32 %v5050_v9, %v2354_v11  ;;  %v627_v43 = vadd.s32 %v5629_v0, %v5637_v58 }
 0x14b   : > { %4864 = vsinq.f32 %v763_v21  ;;  %v2235_v19 = vand.u32 2147483647, %v5641_v42  ;;  %v2245_v27 = vadd.s32 1, %v4610_v47  ;;  %vm573_vm4 = vcmp.lt.s32.totalorder %v5318_v24, 0 }
 0x14c   : > { %v639_v22 = vclz %v4547_v45  ;;  %v657_v17 = vsub.s32 4, %v5657_v4  ;;  %v2355_v14 = vshrl.u32 %v5045_v53, %v2354_v11  ;;  %v2370_v28 = vor.u32 %v2369_v36, %v2368_v55 }
 0x14d   : > { %vm2371_vm5 = vcmp.lt.s32.totalorder %v5669_v44, 1  ;;  %vm774_vm6 = vcmp.eq.s32.totalorder %v5662_v38, 2  ;;  %vm2373_vm7 = vcmp.lt.s32.totalorder %v5669_v44, 3  ;;  %vm2374_vm8 = vcmp.lt.s32.totalorder %v5669_v44, 4 }
 0x14e   : > { %v4548_v48 = vadd.s32 4294967294, %v639_v22  ;;  %v2379_v0 = vsel %vm2371_vm5, %v2358_v10, %v2361_v46  ;;  %v2376_v58 = vsel %vm2374_vm8, %v2364_v34, 2102212464  ;;  %v2380_v62 = vsel %vm2374_vm8, %v2367_v49, 920167782 }
 0x14f   : > { %v2383_v60 = vsel %vm2371_vm5, %v2361_v46, %v2364_v34  ;;  %v2384_v2 = vsel %vm2374_vm8, %v2370_v28, 1326507024  ;;  %vm5704_vm10 = vcmp.le.f32.partialorder %v571_v50, 0.7853982  ;;  %vm2372_vm11 = vcmp.lt.s32.totalorder %v5669_v44, 2 }
 0x150   : > { %vm4549_vm9 = vcmp.lt.s32.totalorder %v4548_v48, 0  ;;  %v2381_v40 = vsel %vm2373_vm7, %v2364_v34, %v2380_v62  ;;  %v2385_v35 = vsel %vm2373_vm7, %v2367_v49, %v2384_v2  ;;  %v2375_v29 = vsel %vm2371_vm5, %v2355_v14, %v2358_v10 }
 0x151   : > { %v642_v11 = vsel %vm4549_vm9, 0, %v4548_v48  ;;  %v2382_v47 = vsel %vm2372_vm11, %v2379_v0, %v2381_v40  ;;  %v2386_v50 = vsel %vm2372_vm11, %v2383_v60, %v2385_v35  ;;  %v2377_v54 = vsel %vm2373_vm7, %v2361_v46, %v2376_v58 }
 0x152   : > { %v643_v56 = vsub.s32 32, %v642_v11  ;;  %v647_v13 = vsub.s32 4294967266, %v642_v11  ;;  %vm2246_vm12 = vcmp.gt.s32.totalorder %v2245_v27, 0  ;;  %v644_v21 = vshll.u32 %v5667_v37, %v642_v11 }
 0x153   : > { %v5722_v1 = vmul.u32.u64.low %v5664_v5, %v2386_v50  ;;  %v5723_v16 = vmul.u32.u64.high %v5664_v5, %v2386_v50, %v5722_v1  ;;  %v5726_v39 = vmul.u32.u64.low %v5664_v5, %v2382_v47  ;;  %v5727_v20 = vmul.u32.u64.high %v5664_v5, %v2382_v47, %v5726_v39 }
 0x154   : > { %v4863_v32 = vpop.eup %4862  ;;  %v645_v10 = vshrl.u32 %v627_v43, %v643_v56  ;;  %v648_v41 = vadd.s32 127, %v647_v13  ;;  %v2247_v3 = vsel %vm2246_vm12, %v2245_v27, 0  ;;  %v2378_v46 = vsel %vm2372_vm11, %v2375_v29, %v2377_v54 }
 0x155   : > { %v4865_v45 = vpop.eup %4864  ;;  %v775_v34 = vxor.u32 2147483648, %v4863_v32  ;;  %v2242_v49 = vand.u32 8388607, %v2235_v19  ;;  %v2249_v55 = vand.u32 31, %v2247_v3  ;;  %vm767_vm13 = vweird.f32 %v5315_v23  ;;  %v5770_v23 = vld [vmem:[%s5155_s25] sm:$0xff] }
 0x156   : > { %v772_v36 = vxor.u32 2147483648, %v4865_v45  ;;  %v646_v22 = vor.u32 %v645_v10, %v644_v21  ;;  %v649_v14 = vshll.u32 %v648_v41, 23  ;;  %v658_v37 = vsel %vm573_vm4, %v657_v17, %v5657_v4 }
 0x157   : > { %vm771_vm14 = vcmp.eq.s32.totalorder %v5662_v38, 0  ;;  %v776_v43 = vsel %vm774_vm6, %v775_v34, %v4865_v45  ;;  %vm2396_vm15 = vc.u32 %v5723_v16, %v5726_v39  ;;  %v2397_v44 = vadd.s32 1, %v5727_v20 }
 0x158   : > { %v773_v27 = vsel %vm771_vm14, %v4863_v32, %v772_v36  ;;  %v650_v28 = vor.u32 4788187, %v649_v14  ;;  %v2394_v48 = vmul.u32 %v5664_v5, %v2378_v46  ;;  %v2250_v0 = vsub.s32 32, %v2249_v55 }
 0x159   : > { %vm770_vm0 = vcmp.lt.s32.totalorder %v5662_v38, 2  ;;  %v660_v4 = vsel %vm5704_vm10, 0, %v658_v37  ;;  %v2398_v17 = vsel %vm2396_vm15, %v2397_v44, %v5727_v20  ;;  %v2243_v58 = vor.u32 8388608, %v2242_v49 }
 0x15a   : > { %v777_v62 = vsel %vm770_vm0, %v773_v27, %v776_v43  ;;  %v651_v60 = vand.u32 2147483647, %v650_v28  ;;  %v653_v2 = vcvt.s32.f32 %v646_v22  ;;  %v2399_v40 = vadd.s32 %v2398_v17, %v2394_v48 }
 0x15b   : > { %v2252_v35 = vshll.u32 %v5045_v53, %v2249_v55  ;;  %v2253_v11 = vshrl.u32 %v5046_v57, %v2250_v0  ;;  %v2255_v29 = vshll.u32 %v5046_v57, %v2249_v55  ;;  %v2256_v5 = vshrl.u32 %v5047_v59, %v2250_v0 }
 0x15c   : > { %v654_v47 = vmul.f32 %v653_v2, %v651_v60  ;;  %v2400_v38 = vadd.s32 536870912, %v2399_v40  ;;  %v2259_v50 = vshrl.u32 %v5048_v61, %v2250_v0  ;;  %v2262_v56 = vshrl.u32 %v5049_v63, %v2250_v0 }
 0x15d   : > { %v2248_v13 = vshrl.u32 %v2247_v3, 5  ;;  %v2254_v54 = vor.u32 %v2253_v11, %v2252_v35  ;;  %v2258_v1 = vshll.u32 %v5047_v59, %v2249_v55  ;;  %v2261_v20 = vshll.u32 %v5048_v61, %v2249_v55 }
 0x15e   : > { %v655_v32 = vxor.u32 2147483648, %v654_v47  ;;  %v2401_v21 = vshrl.u32 %v2400_v38, 30  ;;  %v2257_v10 = vor.u32 %v2256_v5, %v2255_v29  ;;  %v2265_v41 = vshrl.u32 %v5050_v9, %v2250_v0 }
 0x15f   : > { %v778_v45 = vsel %vm767_vm13, nan, %v777_v62  ;;  %v2263_v34 = vor.u32 %v2262_v56, %v2261_v20  ;;  %v2264_v46 = vshll.u32 %v5049_v63, %v2249_v55  ;;  %v5762_v49 = vshll.u32 %v2243_v58, 8 }
 0x160   : > { %v656_v3 = vsel %vm573_vm4, %v655_v32, %v654_v47  ;;  %v664_v36 = vadd.s32 3, %v660_v4  ;;  %v2402_v22 = vshll.u32 %v2401_v21, 30  ;;  %v2260_v14 = vor.u32 %v2259_v50, %v2258_v1 }
 0x161   : > { %3787 = vxpose.xlu1.b32.start [1/2] (short) %v778_v45, 128  ;;  %v659_v37 = vsel %vm5704_vm10, %v5318_v24, %v656_v3  ;;  %v2266_v43 = vor.u32 %v2265_v41, %v2264_v46  ;;  %vm2267_vm1 = vcmp.lt.s32.totalorder %v2248_v13, 1  ;;  %v5775_v55 = vrot.slane %v5770_v23, %v229_v52 }
 0x162   : > { %4866 = vcosq.f32 %v659_v37  ;;  %v5777_v44 = vsub.s32 %v2399_v40, %v2402_v22  ;;  %vm2270_vm2 = vcmp.lt.s32.totalorder %v2248_v13, 4  ;;  %v2275_v27 = vsel %vm2267_vm1, %v2254_v54, %v2257_v10 }
 0x163   : > { %4868 = vsinq.f32 %v659_v37  ;;  %vm2269_vm3 = vcmp.lt.s32.totalorder %v2248_v13, 3  ;;  %v2276_v28 = vsel %vm2270_vm2, %v2263_v34, 920167782  ;;  %v225_v25 = vsub.s32 4, %v5173_v6 }
 0x164   : > { %v2405_v48 = vsub.s32 0, %v5777_v44  ;;  %vm2268_vm4 = vcmp.lt.s32.totalorder %v2248_v13, 2  ;;  %v2277_v4 = vsel %vm2269_vm3, %v2260_v14, %v2276_v28  ;;  %v2279_v17 = vsel %vm2267_vm1, %v2257_v10, %v2260_v14 }
 0x165   : > { %v2272_v58 = vsel %vm2270_vm2, %v2260_v14, 2102212464  ;;  %v2278_v62 = vsel %vm2268_vm4, %v2275_v27, %v2277_v4  ;;  %v2280_v60 = vsel %vm2270_vm2, %v2266_v43, 1326507024  ;;  %v292_v2 = vmul.f32 %v5775_v55, %v5182_v12 }
 0x166   : > { %v4615_v40 = vmin.u32 %v2405_v48, %v5777_v44  ;;  %v2425_v35 = vsub.s32 4, %v2401_v21  ;;  %v2251_v11 = vshrl.u32 %v5045_v53, %v2250_v0  ;;  %v2281_v29 = vsel %vm2269_vm3, %v2263_v34, %v2280_v60 }
 0x167   : > { %v2282_v5 = vsel %vm2268_vm4, %v2279_v17, %v2281_v29  ;;  %v5792_v47 = vmul.u32.u64.low %v5762_v49, %v2278_v62  ;;  %v5793_v38 = vmul.u32.u64.high %v5762_v49, %v2278_v62, %v5792_v47  ;;  %v5796_v50 = vadd.f32 %v5186_v15, %v292_v2 }
 0x168   : > { %v665_v56 = vand.u32 3, %v664_v36  ;;  %v2407_v1 = vclz %v4615_v40  ;;  %v2271_v20 = vsel %vm2267_vm1, %v2251_v11, %v2254_v54  ;;  %v2273_v32 = vsel %vm2269_vm3, %v2257_v10, %v2272_v58 }
 0x169   : > { %vm2341_vm5 = vcmp.lt.s32.totalorder %v5602_v51, 0  ;;  %v5802_v0 = vmul.u32.u64.low %v5762_v49, %v2282_v5  ;;  %v5803_v41 = vmul.u32.u64.high %v5762_v49, %v2282_v5, %v5802_v0  ;;  %v886_v46 = vand.u32 2139095040, %v5796_v50 }
 0x16a   : > { %v4616_v45 = vadd.s32 4294967294, %v2407_v1  ;;  %v2426_v34 = vsel %vm2341_vm5, %v2425_v35, %v2401_v21  ;;  %vm5810_vm6 = vcmp.le.f32.partialorder %v2339_v30, 0.7853982  ;;  %v2274_v54 = vsel %vm2268_vm4, %v2271_v20, %v2273_v32 }
 0x16b   : > { %v2293_v10 = vadd.s32 1, %v5793_v38  ;;  %v5819_v36 = vrot.slane %v5770_v23, %v225_v25  ;;  %vm670_vm7 = vcmp.eq.s32.totalorder %v665_v56, 2  ;;  %v2395_v21 = vadd.s32 %v5726_v39, %v5723_v16 }
 0x16c   : > { %v4867_v22 = vpop.eup %4866  ;;  %vm4617_vm8 = vcmp.lt.s32.totalorder %v4616_v45, 0  ;;  %v887_v14 = vshrl.u32 %v886_v46, 23  ;;  %v2428_v13 = vsel %vm5810_vm6, 0, %v2426_v34  ;;  %vm2292_vm10 = vc.u32 %v5803_v41, %v5792_v47 }
 0x16d   : > { %v4869_v30 = vpop.eup %4868  ;;  %v671_v37 = vxor.u32 2147483648, %v4867_v22  ;;  %v2410_v43 = vsel %vm4617_vm8, 0, %v4616_v45  ;;  %v2290_v4 = vmul.u32 %v5762_v49, %v2274_v54  ;;  %v2294_v17 = vsel %vm2292_vm10, %v2293_v10, %v5793_v38 }
 0x16e   : > { %v668_v27 = vxor.u32 2147483648, %v4869_v30  ;;  %v2411_v28 = vsub.s32 32, %v2410_v43  ;;  %v2415_v48 = vsub.s32 4294967266, %v2410_v43  ;;  %v883_v58 = vand.u32 2147483647, %v5796_v50 }
 0x16f   : > { %v4558_v16 = vadd.s32 4294967169, %v887_v14  ;;  %v291_v39 = vmul.f32 %v5819_v36, %v5182_v12  ;;  %v2412_v62 = vshll.u32 %v5777_v44, %v2410_v43  ;;  %v2295_v40 = vadd.s32 %v2294_v17, %v2290_v4 }
 0x170   : > { %v2413_v60 = vshrl.u32 %v2395_v21, %v2411_v28  ;;  %v2416_v2 = vadd.s32 127, %v2415_v48  ;;  %vm667_vm9 = vcmp.eq.s32.totalorder %v665_v56, 0  ;;  %v672_v35 = vsel %vm670_vm7, %v671_v37, %v4869_v30 }
 0x171   : > { %v893_v11 = vadd.s32 1, %v4558_v16  ;;  %v669_v29 = vsel %vm667_vm9, %v4867_v22, %v668_v27  ;;  %v2296_v1 = vadd.s32 536870912, %v2295_v40  ;;  %vm666_vm11 = vcmp.lt.s32.totalorder %v665_v56, 2 }
 0x172   : > { %v2414_v5 = vor.u32 %v2413_v60, %v2412_v62  ;;  %v2417_v49 = vshll.u32 %v2416_v2, 23  ;;  %v2432_v38 = vadd.s32 3, %v2428_v13  ;;  %v890_v20 = vand.u32 8388607, %v883_v58 }
 0x173   : > { %vm894_vm12 = vcmp.gt.s32.totalorder %v893_v11, 0  ;;  %v5835_v0 = vshrl.u32 %v2296_v1, 30  ;;  %v5838_v45 = vadd.f32 %v5186_v15, %v291_v39  ;;  %v673_v34 = vsel %vm666_vm11, %v669_v29, %v672_v35 }
 0x174   : > { %v2418_v32 = vor.u32 4788187, %v2417_v49  ;;  %v895_v44 = vsel %vm894_vm12, %v893_v11, 0  ;;  %vm663_vm13 = vweird.f32 %v5318_v24  ;;  %v2421_v10 = vcvt.s32.f32 %v2414_v5 }
 0x175   : > { %v897_v46 = vand.u32 31, %v895_v44  ;;  %v2298_v56 = vshll.u32 %v5835_v0, 30  ;;  %v5842_v22 = vand.u32 3, %v2432_v38  ;;  %v2291_v21 = vadd.s32 %v5792_v47, %v5803_v41 }
 0x176   : > { %v2419_v54 = vand.u32 2147483647, %v2418_v32  ;;  %v891_v14 = vor.u32 8388608, %v890_v20  ;;  %v674_v37 = vsel %vm663_vm13, nan, %v673_v34  ;;  %v782_v27 = vand.u32 2139095040, %v5838_v45 }
 0x177   : > { %v898_v30 = vsub.s32 32, %v897_v46  ;;  %v5845_v13 = vsub.s32 %v2295_v40, %v2298_v56  ;;  %v896_v28 = vshrl.u32 %v895_v44, 5  ;;  %v900_v48 = vshll.u32 %v5045_v53, %v897_v46 }
 0x178   : > { %v2422_v43 = vmul.f32 %v2421_v10, %v2419_v54  ;;  %v903_v47 = vshll.u32 %v5046_v57, %v897_v46  ;;  %v906_v62 = vshll.u32 %v5047_v59, %v897_v46  ;;  %v909_v60 = vshll.u32 %v5048_v61, %v897_v46 }
 0x179   : > { %v901_v24 = vshrl.u32 %v5046_v57, %v898_v30  ;;  %v904_v4 = vshrl.u32 %v5047_v59, %v898_v30  ;;  %v2301_v16 = vsub.s32 0, %v5845_v13  ;;  %v907_v41 = vshrl.u32 %v5048_v61, %v898_v30 }
 0x17a   : > { %v2423_v17 = vxor.u32 2147483648, %v2422_v43  ;;  %v910_v2 = vshrl.u32 %v5049_v63, %v898_v30  ;;  %v912_v29 = vshll.u32 %v5049_v63, %v897_v46  ;;  %v913_v38 = vshrl.u32 %v5050_v9, %v898_v30 }
 0x17b   : > { %v902_v39 = vor.u32 %v901_v24, %v900_v48  ;;  %v4611_v35 = vmin.u32 %v2301_v16, %v5845_v13  ;;  %v905_v11 = vor.u32 %v904_v4, %v903_v47  ;;  %v908_v49 = vor.u32 %v907_v41, %v906_v62 }
 0x17c   : > { %v2424_v40 = vsel %vm2341_vm5, %v2423_v17, %v2422_v43  ;;  %v911_v1 = vor.u32 %v910_v2, %v909_v60  ;;  %v931_v32 = vshll.u32 %v891_v14, 8  ;;  %v783_v44 = vshrl.u32 %v782_v27, 23 }
 0x17d   : > { %v2427_v5 = vsel %vm5810_vm6, %v5602_v51, %v2424_v40  ;;  %v2303_v20 = vclz %v4611_v35  ;;  %vm2237_vm14 = vcmp.lt.s32.totalorder %v5641_v42, 0  ;;  %v2321_v34 = vsub.s32 4, %v5835_v0 }
 0x17e   : > { %3755 = vxpose.xlu0.b32.start [1/2] (short) %v674_v37, 128  ;;  %4870 = vcosq.f32 %v2427_v5  ;;  %v899_v46 = vshrl.u32 %v5045_v53, %v898_v30  ;;  %v914_v54 = vor.u32 %v913_v38, %v912_v29  ;;  %vm915_vm15 = vcmp.lt.s32.totalorder %v896_v28, 1 }
 0x17f   : > { %4872 = vsinq.f32 %v2427_v5  ;;  %v4612_v10 = vadd.s32 4294967294, %v2303_v20  ;;  %vm917_vm0 = vcmp.lt.s32.totalorder %v896_v28, 3  ;;  %vm918_vm1 = vcmp.lt.s32.totalorder %v896_v28, 4 }
 0x180   : > { %v920_v3 = vsel %vm918_vm1, %v908_v49, 2102212464  ;;  %v923_v56 = vsel %vm915_vm15, %v902_v39, %v905_v11  ;;  %v924_v37 = vsel %vm918_vm1, %v911_v1, 920167782  ;;  %v927_v43 = vsel %vm915_vm15, %v905_v11, %v908_v49 }
 0x181   : > { %vm5870_vm2 = vcmp.le.f32.partialorder %v2235_v19, 0.7853982  ;;  %vm4613_vm3 = vcmp.lt.s32.totalorder %v4612_v10, 0  ;;  %vm916_vm4 = vcmp.lt.s32.totalorder %v896_v28, 2  ;;  %v925_v27 = vsel %vm917_vm0, %v908_v49, %v924_v37 }
 0x182   : > { %v928_v30 = vsel %vm918_vm1, %v914_v54, 1326507024  ;;  %v2306_v48 = vsel %vm4613_vm3, 0, %v4612_v10  ;;  %v919_v24 = vsel %vm915_vm15, %v899_v46, %v902_v39  ;;  %v926_v4 = vsel %vm916_vm4, %v923_v56, %v925_v27 }
 0x183   : > { %v929_v17 = vsel %vm917_vm0, %v911_v1, %v928_v30  ;;  %v2307_v16 = vsub.s32 32, %v2306_v48  ;;  %v2311_v47 = vsub.s32 4294967266, %v2306_v48  ;;  %v921_v41 = vsel %vm917_vm0, %v905_v11, %v920_v3 }
 0x184   : > { %v930_v19 = vsel %vm916_vm4, %v927_v43, %v929_v17  ;;  %v5882_v2 = vmul.u32.u64.low %v931_v32, %v926_v4  ;;  %v5883_v40 = vmul.u32.u64.high %v931_v32, %v926_v4, %v5882_v2  ;;  %v2308_v35 = vshll.u32 %v5845_v13, %v2306_v48 }
 0x185   : > { %v5879_v62 = vmul.u32.u64.low %v931_v32, %v930_v19  ;;  %v5880_v60 = vmul.u32.u64.high %v931_v32, %v930_v19, %v5879_v62  ;;  %v2309_v39 = vshrl.u32 %v2291_v21, %v2307_v16  ;;  %v2312_v29 = vadd.s32 127, %v2311_v47 }
 0x186   : > { %v4554_v5 = vadd.s32 4294967169, %v783_v44  ;;  %vm2434_vm5 = vcmp.lt.s32.totalorder %v5842_v22, 2  ;;  %vm2435_vm6 = vcmp.eq.s32.totalorder %v5842_v22, 0  ;;  %vm2438_vm7 = vcmp.eq.s32.totalorder %v5842_v22, 2 }
 0x187   : > { %v922_v11 = vsel %vm916_vm4, %v919_v24, %v921_v41  ;;  %v2310_v1 = vor.u32 %v2309_v39, %v2308_v35  ;;  %v2313_v38 = vshll.u32 %v2312_v29, 23  ;;  %v2322_v20 = vsel %vm2237_vm14, %v2321_v34, %v5835_v0 }
 0x188   : > { %v4871_v49 = vpop.eup %4870  ;;  %v789_v46 = vadd.s32 1, %v4554_v5  ;;  %vm940_vm8 = vc.u32 %v5880_v60, %v5882_v2  ;;  %v941_v44 = vadd.s32 1, %v5883_v40  ;;  %v779_v54 = vand.u32 2147483647, %v5838_v45 }
 0x189   : > { %v4873_v13 = vpop.eup %4872  ;;  %v2439_v21 = vxor.u32 2147483648, %v4871_v49  ;;  %v2314_v28 = vor.u32 4788187, %v2313_v38  ;;  %v938_v3 = vmul.u32 %v931_v32, %v922_v11  ;;  %v2324_v0 = vsel %vm5870_vm2, 0, %v2322_v20 }
 0x18a   : > { %v2436_v10 = vxor.u32 2147483648, %v4873_v13  ;;  %vm790_vm10 = vcmp.gt.s32.totalorder %v789_v46, 0  ;;  %v942_v34 = vsel %vm940_vm8, %v941_v44, %v5883_v40  ;;  %v2317_v30 = vcvt.s32.f32 %v2310_v1 }
 0x18b   : > { %v2440_v56 = vsel %vm2438_vm7, %v2439_v21, %v4873_v13  ;;  %v791_v37 = vsel %vm790_vm10, %v789_v46, 0  ;;  %v2315_v27 = vand.u32 2147483647, %v2314_v28  ;;  %v943_v48 = vadd.s32 %v942_v34, %v938_v3 }
 0x18c   : > { %v2437_v43 = vsel %vm2435_vm6, %v4871_v49, %v2436_v10  ;;  %vm2431_vm9 = vweird.f32 %v5602_v51  ;;  %v793_v24 = vand.u32 31, %v791_v37  ;;  %v308_v47 = vmul.f32 %v5775_v55, %v5194_v18 }
 0x18d   : > { %v2441_v32 = vsel %vm2434_vm5, %v2437_v43, %v2440_v56  ;;  %v2318_v17 = vmul.f32 %v2317_v30, %v2315_v27  ;;  %v944_v16 = vadd.s32 536870912, %v943_v48  ;;  %v2328_v41 = vadd.s32 3, %v2324_v0 }
 0x18e   : > { %v2442_v4 = vsel %vm2431_vm9, nan, %v2441_v32  ;;  %v786_v19 = vand.u32 8388607, %v779_v54  ;;  %v792_v62 = vshrl.u32 %v791_v37, 5  ;;  %v794_v40 = vsub.s32 32, %v793_v24 }
 0x18f   : > { %3788 = vxpose.xlu1.b32.end [2/2] (short) %v2442_v4, 128  ;;  %v2319_v35 = vxor.u32 2147483648, %v2318_v17  ;;  %v5912_v39 = vshrl.u32 %v944_v16, 30  ;;  %v796_v51 = vshll.u32 %v5045_v53, %v793_v24  ;;  %v799_v22 = vshll.u32 %v5046_v57, %v793_v24 }
 0x190   : > { %v797_v29 = vshrl.u32 %v5046_v57, %v794_v40  ;;  %v800_v5 = vshrl.u32 %v5047_v59, %v794_v40  ;;  %v802_v55 = vshll.u32 %v5047_v59, %v793_v24  ;;  %v803_v11 = vshrl.u32 %v5048_v61, %v794_v40 }
 0x191   : > { %v2320_v49 = vsel %vm2237_vm14, %v2319_v35, %v2318_v17  ;;  %v946_v1 = vshll.u32 %v5912_v39, 30  ;;  %v805_v38 = vshll.u32 %v5048_v61, %v793_v24  ;;  %v806_v20 = vshrl.u32 %v5049_v63, %v794_v40 }
 0x192   : > { %v2323_v46 = vsel %vm5870_vm2, %v5641_v42, %v2320_v49  ;;  %v798_v13 = vor.u32 %v797_v29, %v796_v51  ;;  %v804_v21 = vor.u32 %v803_v11, %v802_v55  ;;  %v307_v44 = vmul.f32 %v5819_v36, %v5194_v18 }
 0x193   : > { %4874 = vcosq.f32 %v2323_v46  ;;  %v5930_v10 = vsub.s32 %v943_v48, %v946_v1  ;;  %v801_v28 = vor.u32 %v800_v5, %v799_v22  ;;  %v807_v3 = vor.u32 %v806_v20, %v805_v38 }
 0x194   : > { %4876 = vsinq.f32 %v2323_v46  ;;  %v787_v56 = vor.u32 8388608, %v786_v19  ;;  %v808_v0 = vshll.u32 %v5049_v63, %v793_v24  ;;  %v809_v34 = vshrl.u32 %v5050_v9, %v794_v40 }
 0x195   : > { %v5934_v37 = vand.u32 3, %v2328_v41  ;;  %vm885_vm11 = vcmp.lt.s32.totalorder %v5796_v50, 0  ;;  %v949_v14 = vsub.s32 0, %v5930_v10  ;;  %vm814_vm12 = vcmp.lt.s32.totalorder %v792_v62, 4 }
 0x196   : > { %v5939_v36 = vadd.f32 %v5203_v26, %v308_v47  ;;  %v795_v43 = vshrl.u32 %v5045_v53, %v794_v40  ;;  %v810_v27 = vor.u32 %v809_v34, %v808_v0  ;;  %vm811_vm13 = vcmp.lt.s32.totalorder %v792_v62, 1 }
 0x197   : > { %v816_v30 = vsel %vm814_vm12, %v804_v21, 2102212464  ;;  %v4559_v48 = vmin.u32 %v949_v14, %v5930_v10  ;;  %vm813_vm14 = vcmp.lt.s32.totalorder %v792_v62, 3  ;;  %v819_v32 = vsel %vm811_vm13, %v798_v13, %v801_v28 }
 0x198   : > { %v820_v24 = vsel %vm814_vm12, %v807_v3, 920167782  ;;  %v823_v17 = vsel %vm811_vm13, %v801_v28, %v804_v21  ;;  %v824_v16 = vsel %vm814_vm12, %v810_v27, 1326507024  ;;  %v827_v47 = vshll.u32 %v787_v56, 8 }
 0x199   : > { %v821_v4 = vsel %vm813_vm14, %v804_v21, %v820_v24  ;;  %vm2330_vm15 = vcmp.lt.s32.totalorder %v5934_v37, 2  ;;  %vm5952_vm0 = vcmp.le.f32.partialorder %v883_v58, 0.7853982  ;;  %v951_v19 = vclz %v4559_v48 }
 0x19a   : > { %vm812_vm1 = vcmp.lt.s32.totalorder %v792_v62, 2  ;;  %v815_v40 = vsel %vm811_vm13, %v795_v43, %v798_v13  ;;  %v817_v35 = vsel %vm813_vm14, %v801_v28, %v816_v30  ;;  %vm2327_vm2 = vweird.f32 %v5641_v42 }
 0x19b   : > { %vm2331_vm3 = vcmp.eq.s32.totalorder %v5934_v37, 0  ;;  %v969_v51 = vsub.s32 4, %v5912_v39  ;;  %v822_v22 = vsel %vm812_vm1, %v819_v32, %v821_v4  ;;  %v825_v29 = vsel %vm813_vm14, %v807_v3, %v824_v16 }
 0x19c   : > { %v4560_v58 = vadd.s32 4294967294, %v951_v19  ;;  %v826_v5 = vsel %vm812_vm1, %v823_v17, %v825_v29  ;;  %v5961_v55 = vmul.u32.u64.low %v827_v47, %v822_v22  ;;  %v5962_v11 = vmul.u32.u64.high %v827_v47, %v822_v22, %v5961_v55 }
 0x19d   : > { %v818_v49 = vsel %vm812_vm1, %v815_v40, %v817_v35  ;;  %v5965_v1 = vmul.u32.u64.low %v827_v47, %v826_v5  ;;  %v5966_v38 = vmul.u32.u64.high %v827_v47, %v826_v5, %v5965_v1  ;;  %v2550_v20 = vand.u32 2139095040, %v5939_v36  ;;  %v4875_v46 = vpop.eup %4874 }
 0x19e   : > { %vm2334_vm4 = vcmp.eq.s32.totalorder %v5934_v37, 2  ;;  %v939_v62 = vadd.s32 %v5882_v2, %v5880_v60  ;;  %vm4561_vm5 = vcmp.lt.s32.totalorder %v4560_v58, 0  ;;  %v5978_v13 = vadd.f32 %v5203_v26, %v307_v44  ;;  %v4877_v21 = vpop.eup %4876 }
 0x19f   : > { %v2335_v28 = vxor.u32 2147483648, %v4875_v46  ;;  %v954_v3 = vsel %vm4561_vm5, 0, %v4560_v58  ;;  %v970_v56 = vsel %vm885_vm11, %v969_v51, %v5912_v39  ;;  %v2551_v0 = vshrl.u32 %v2550_v20, 23 }
 0x1a0   : > { %v2332_v34 = vxor.u32 2147483648, %v4877_v21  ;;  %v955_v14 = vsub.s32 32, %v954_v3  ;;  %v959_v43 = vsub.s32 4294967266, %v954_v3  ;;  %v834_v27 = vmul.u32 %v827_v47, %v818_v49 }
 0x1a1   : > { %v2336_v30 = vsel %vm2334_vm4, %v2335_v28, %v4877_v21  ;;  %v956_v60 = vshll.u32 %v5930_v10, %v954_v3  ;;  %vm836_vm6 = vc.u32 %v5966_v38, %v5961_v55  ;;  %v837_v2 = vadd.s32 1, %v5962_v11 }
 0x1a2   : > { %v2333_v44 = vsel %vm2331_vm3, %v4875_v46, %v2332_v34  ;;  %v957_v48 = vshrl.u32 %v939_v62, %v955_v14  ;;  %v960_v32 = vadd.s32 127, %v959_v43  ;;  %v4622_v39 = vadd.s32 4294967169, %v2551_v0 }
 0x1a3   : > { %v2337_v24 = vsel %vm2330_vm15, %v2333_v44, %v2336_v30  ;;  %v972_v4 = vsel %vm5952_vm0, 0, %v970_v56  ;;  %v838_v10 = vsel %vm836_vm6, %v837_v2, %v5962_v11  ;;  %v2547_v17 = vand.u32 2147483647, %v5939_v36 }
 0x1a4   : > { %v3739_v16 = vpop.trf.xlu1  ;;  %v2338_v47 = vsel %vm2327_vm2, nan, %v2337_v24  ;;  %v958_v19 = vor.u32 %v957_v48, %v956_v60  ;;  %v961_v40 = vshll.u32 %v960_v32, 23  ;;  %v839_v35 = vadd.s32 %v838_v10, %v834_v27 }
 0x1a5   : > { %3756 = vxpose.xlu0.b32.end [2/2] (short) %v2338_v47, 128  ;;  %v2557_v37 = vadd.s32 1, %v4622_v39  ;;  %vm4203_vm7 = vcmask 130048   ;;  %v976_v29 = vadd.s32 3, %v972_v4  ;;  %v6005_v42 = vand.u32 8388607, %v2547_v17 }
 0x1a6   : > { %v962_v51 = vor.u32 4788187, %v961_v40  ;;  %v840_v22 = vadd.s32 536870912, %v839_v35  ;;  %v2446_v58 = vand.u32 2139095040, %v5978_v13  ;;  %4220 = vst.msk [vmem:[%s6001_s8 + $0x80] sm:$0xff] %vm4203_vm7, %v3739_v16  ;;  %v965_v49 = vcvt.s32.f32 %v958_v19 }
 0x1a7   : > { %vm2558_vm8 = vcmp.gt.s32.totalorder %v2557_v37, 0  ;;  %v237_v28 = vsub.s32 7, %v5173_v6  ;;  %v6016_v3 = vand.u32 3, %v976_v29  ;;  %v2555_v56 = vor.u32 8388608, %v6005_v42 }
 0x1a8   : > { %v3740_v5 = vpop.trf.xlu1  ;;  %v963_v11 = vand.u32 2147483647, %v962_v51  ;;  %v6010_v1 = vshrl.u32 %v840_v22, 30  ;;  %v2559_v20 = vsel %vm2558_vm8, %v2557_v37, 0  ;;  %v2443_v34 = vand.u32 2147483647, %v5978_v13 }
 0x1a9   : > { %4221 = vst.msk [vmem:[%s6001_s8 + $0x88] sm:$0xff] %vm4203_vm7, %v3740_v5  ;;  %v2561_v46 = vand.u32 31, %v2559_v20  ;;  %v2560_v30 = vshrl.u32 %v2559_v20, 5  ;;  %v2447_v60 = vshrl.u32 %v2446_v58, 23  ;;  %v835_v58 = vadd.s32 %v5961_v55, %v5966_v38 }
 0x1aa   : > { %v966_v62 = vmul.f32 %v965_v49, %v963_v11  ;;  %v842_v21 = vshll.u32 %v6010_v1, 30  ;;  %vm781_vm12 = vcmp.lt.s32.totalorder %v5838_v45, 0  ;;  %vm979_vm14 = vcmp.eq.s32.totalorder %v6016_v3, 0 }
 0x1ab   : > { %v2562_v0 = vsub.s32 32, %v2561_v46  ;;  %v2564_v2 = vshll.u32 %v5045_v53, %v2561_v46  ;;  %v2567_v48 = vshll.u32 %v5046_v57, %v2561_v46  ;;  %v2570_v4 = vshll.u32 %v5047_v59, %v2561_v46 }
 0x1ac   : > { %v3741_v14 = vpop.trf.xlu1  ;;  %v967_v43 = vxor.u32 2147483648, %v966_v62  ;;  %v6020_v27 = vsub.s32 %v839_v35, %v842_v21  ;;  %v2573_v19 = vshll.u32 %v5048_v61, %v2561_v46  ;;  %v2576_v42 = vshll.u32 %v5049_v63, %v2561_v46 }
 0x1ad   : > { %4222 = vst.msk [vmem:[%s6001_s8 + $0x90] sm:$0xff] %vm4203_vm7, %v3741_v14  ;;  %v2565_v44 = vshrl.u32 %v5046_v57, %v2562_v0  ;;  %v2568_v32 = vshrl.u32 %v5047_v59, %v2562_v0  ;;  %v2571_v10 = vshrl.u32 %v5048_v61, %v2562_v0  ;;  %v2574_v40 = vshrl.u32 %v5049_v63, %v2562_v0 }
 0x1ae   : > { %v968_v39 = vsel %vm885_vm11, %v967_v43, %v966_v62  ;;  %v845_v24 = vsub.s32 0, %v6020_v27  ;;  %v2577_v41 = vshrl.u32 %v5050_v9, %v2562_v0  ;;  %v2563_v11 = vshrl.u32 %v5045_v53, %v2562_v0 }
 0x1af   : > { %v971_v16 = vsel %vm5952_vm0, %v5796_v50, %v968_v39  ;;  %v2566_v47 = vor.u32 %v2565_v44, %v2564_v2  ;;  %v2569_v51 = vor.u32 %v2568_v32, %v2567_v48  ;;  %v2572_v22 = vor.u32 %v2571_v10, %v2570_v4 }
 0x1b0   : > { %v3742_v35 = vpop.trf.xlu1  ;;  %4878 = vcosq.f32 %v971_v16  ;;  %v4555_v37 = vmin.u32 %v845_v24, %v6020_v27  ;;  %v2575_v29 = vor.u32 %v2574_v40, %v2573_v19  ;;  %v4618_v49 = vadd.s32 4294967169, %v2447_v60 }
 0x1b1   : > { %4223 = vst.msk [vmem:[%s6001_s8 + $0x98] sm:$0xff] %vm4203_vm7, %v3742_v35  ;;  %4880 = vsinq.f32 %v971_v16  ;;  %v2578_v20 = vor.u32 %v2577_v41, %v2576_v42  ;;  %vm2579_vm10 = vcmp.lt.s32.totalorder %v2560_v30, 1  ;;  %vm2580_vm9 = vcmp.lt.s32.totalorder %v2560_v30, 2 }
 0x1b2   : > { %v847_v5 = vclz %v4555_v37  ;;  %vm2581_vm11 = vcmp.lt.s32.totalorder %v2560_v30, 3  ;;  %vm2582_vm13 = vcmp.lt.s32.totalorder %v2560_v30, 4  ;;  %v2583_v46 = vsel %vm2579_vm10, %v2563_v11, %v2566_v47 }
 0x1b3   : > { %v2587_v14 = vsel %vm2579_vm10, %v2566_v47, %v2569_v51  ;;  %v2584_v55 = vsel %vm2582_vm13, %v2572_v22, 2102212464  ;;  %v2588_v38 = vsel %vm2582_vm13, %v2575_v29, 920167782  ;;  %v2591_v0 = vsel %vm2579_vm10, %v2569_v51, %v2572_v22 }
 0x1b4   : > { %v3743_v62 = vpop.trf.xlu1  ;;  %v4556_v21 = vadd.s32 4294967294, %v847_v5  ;;  %v2592_v43 = vsel %vm2582_vm13, %v2578_v20, 1326507024  ;;  %v2585_v60 = vsel %vm2581_vm11, %v2569_v51, %v2584_v55  ;;  %v2589_v2 = vsel %vm2581_vm11, %v2572_v22, %v2588_v38 }
 0x1b5   : > { %4224 = vst.msk [vmem:[%s6001_s8 + $0xa0] sm:$0xff] %vm4203_vm7, %v3743_v62  ;;  %v2593_v44 = vsel %vm2581_vm11, %v2575_v29, %v2592_v43  ;;  %v2590_v32 = vsel %vm2580_vm9, %v2587_v14, %v2589_v2  ;;  %v2595_v24 = vshll.u32 %v2555_v56, 8  ;;  %v865_v47 = vsub.s32 4, %v6010_v1 }
 0x1b6   : > { %vm4557_vm15 = vcmp.lt.s32.totalorder %v4556_v21, 0  ;;  %v2594_v39 = vsel %vm2580_vm9, %v2591_v0, %v2593_v44  ;;  %v2586_v19 = vsel %vm2580_vm9, %v2583_v46, %v2585_v60  ;;  %v2453_v41 = vadd.s32 1, %v4618_v49 }
 0x1b7   : > { %v850_v48 = vsel %vm4557_vm15, 0, %v4556_v21  ;;  %v6059_v40 = vmul.u32.u64.low %v2595_v24, %v2594_v39  ;;  %v6060_v35 = vmul.u32.u64.high %v2595_v24, %v2594_v39, %v6059_v40  ;;  %vm982_vm0 = vcmp.eq.s32.totalorder %v6016_v3, 2 }
 0x1b8   : > { %v3744_v4 = vpop.trf.xlu1  ;;  %v851_v10 = vsub.s32 32, %v850_v48  ;;  %v855_v16 = vsub.s32 4294967266, %v850_v48  ;;  %v6062_v37 = vmul.u32.u64.low %v2595_v24, %v2590_v32  ;;  %v6063_v51 = vmul.u32.u64.high %v2595_v24, %v2590_v32, %v6062_v37 }
 0x1b9   : > { %4225 = vst.msk [vmem:[%s6001_s8 + $0xa8] sm:$0xff] %vm4203_vm7, %v3744_v4  ;;  %v852_v56 = vshll.u32 %v6020_v27, %v850_v48  ;;  %v6070_v11 = vand.u32 8388607, %v2443_v34  ;;  %v6075_v62 = vrot.slane %v5770_v23, %v237_v28  ;;  %vm975_vm1 = vweird.f32 %v5796_v50 }
 0x1ba   : > { %v4879_v22 = vpop.eup %4878  ;;  %v853_v29 = vshrl.u32 %v835_v58, %v851_v10  ;;  %v856_v42 = vadd.s32 127, %v855_v16  ;;  %vm2454_vm2 = vcmp.gt.s32.totalorder %v2453_v41, 0  ;;  %v866_v49 = vsel %vm781_vm12, %v865_v47, %v6010_v1 }
 0x1bb   : > { %v4881_v5 = vpop.eup %4880  ;;  %v983_v30 = vxor.u32 2147483648, %v4879_v22  ;;  %v2602_v46 = vmul.u32 %v2595_v24, %v2586_v19  ;;  %vm2604_vm3 = vc.u32 %v6060_v35, %v6062_v37  ;;  %v2605_v14 = vadd.s32 1, %v6063_v51 }
 0x1bc   : > { %v3745_v20 = vpop.trf.xlu1  ;;  %v980_v27 = vxor.u32 2147483648, %v4881_v5  ;;  %v854_v58 = vor.u32 %v853_v29, %v852_v56  ;;  %v857_v21 = vshll.u32 %v856_v42, 23  ;;  %v2455_v43 = vsel %vm2454_vm2, %v2453_v41, 0 }
 0x1bd   : > { %4226 = vst.msk [vmem:[%s6001_s8 + $0xb0] sm:$0xff] %vm4203_vm7, %v3745_v20  ;;  %v984_v38 = vsel %vm982_vm0, %v983_v30, %v4881_v5  ;;  %vm978_vm4 = vcmp.lt.s32.totalorder %v6016_v3, 2  ;;  %vm6093_vm5 = vcmp.le.f32.partialorder %v779_v54, 0.7853982  ;;  %v2606_v60 = vsel %vm2604_vm3, %v2605_v14, %v6063_v51 }
 0x1be   : > { %v981_v55 = vsel %vm979_vm14, %v4879_v22, %v980_v27  ;;  %v858_v0 = vor.u32 4788187, %v857_v21  ;;  %v2457_v2 = vand.u32 31, %v2455_v43  ;;  %v861_v32 = vcvt.s32.f32 %v854_v58 }
 0x1bf   : > { %v2607_v39 = vadd.s32 %v2606_v60, %v2602_v46  ;;  %v2451_v24 = vor.u32 8388608, %v6070_v11  ;;  %v985_v10 = vsel %vm978_vm4, %v981_v55, %v984_v38  ;;  %v868_v3 = vsel %vm6093_vm5, 0, %v866_v49 }
 0x1c0   : > { %v3746_v44 = vpop.trf.xlu1  ;;  %v859_v48 = vand.u32 2147483647, %v858_v0  ;;  %v6103_v54 = vsub.s32 32, %v2457_v2  ;;  %v294_v16 = vmul.f32 %v6075_v62, %v5182_v12  ;;  %v6109_v40 = vshrl.u32 %v2455_v43, 5 }
 0x1c1   : > { %v3707_v4 = vpop.trf.xlu0  ;;  %4227 = vst.msk [vmem:[%s6001_s8 + $0xb8] sm:$0xff] %vm4203_vm7, %v3746_v44  ;;  %v2608_v19 = vadd.s32 536870912, %v2607_v39  ;;  %v2460_v51 = vshll.u32 %v5045_v53, %v2457_v2  ;;  %v2463_v56 = vshll.u32 %v5046_v57, %v2457_v2  ;;  %v986_v58 = vsel %vm975_vm1, nan, %v985_v10 }
 0x1c2   : > { %4204 = vst.msk [vmem:[%s6001_s8] sm:$0xff] %vm4203_vm7, %v3707_v4  ;;  %v862_v47 = vmul.f32 %v861_v32, %v859_v48  ;;  %v2461_v22 = vshrl.u32 %v5046_v57, %v6103_v54  ;;  %v2464_v29 = vshrl.u32 %v5047_v59, %v6103_v54  ;;  %v2467_v42 = vshrl.u32 %v5048_v61, %v6103_v54 }
 0x1c3   : > { %v6119_v30 = vshrl.u32 %v2608_v19, 30  ;;  %v2470_v11 = vshrl.u32 %v5049_v63, %v6103_v54  ;;  %v2473_v20 = vshrl.u32 %v5050_v9, %v6103_v54  ;;  %v2466_v21 = vshll.u32 %v5047_v59, %v2457_v2 }
 0x1c4   : > { %v3747_v41 = vpop.trf.xlu1  ;;  %v863_v5 = vxor.u32 2147483648, %v862_v47  ;;  %v2469_v49 = vshll.u32 %v5048_v61, %v2457_v2  ;;  %v2472_v46 = vshll.u32 %v5049_v63, %v2457_v2  ;;  %v2462_v38 = vor.u32 %v2461_v22, %v2460_v51 }
 0x1c5   : > { %v3708_v27 = vpop.trf.xlu0  ;;  %4228 = vst.msk [vmem:[%s6001_s8 + $0xc0] sm:$0xff] %vm4203_vm7, %v3747_v41  ;;  %v2610_v55 = vshll.u32 %v6119_v30, 30  ;;  %v2465_v0 = vor.u32 %v2464_v29, %v2463_v56  ;;  %v2468_v43 = vor.u32 %v2467_v42, %v2466_v21  ;;  %v233_v4 = vsub.s32 6, %v5173_v6 }
 0x1c6   : > { %4205 = vst.msk [vmem:[%s6001_s8 + $0x8] sm:$0xff] %vm4203_vm7, %v3708_v27  ;;  %v864_v14 = vsel %vm781_vm12, %v863_v5, %v862_v47  ;;  %v2471_v60 = vor.u32 %v2470_v11, %v2469_v49  ;;  %v2474_v44 = vor.u32 %v2473_v20, %v2472_v46  ;;  %v872_v10 = vadd.s32 3, %v868_v3 }
 0x1c7   : > { %v867_v50 = vsel %vm6093_vm5, %v5838_v45, %v864_v14  ;;  %v6140_v2 = vsub.s32 %v2607_v39, %v2610_v55  ;;  %vm2475_vm6 = vcmp.lt.s32.totalorder %v6109_v40, 1  ;;  %v6146_v1 = vshll.u32 %v2451_v24, 8 }
 0x1c8   : > { %v3748_v48 = vpop.trf.xlu1  ;;  %3851 = vxpose.xlu1.b32.start [1/2] (short) %v986_v58, 128  ;;  %4882 = vcosq.f32 %v867_v50  ;;  %vm2478_vm8 = vcmp.lt.s32.totalorder %v6109_v40, 4  ;;  %v2483_v39 = vsel %vm2475_vm6, %v2462_v38, %v2465_v0  ;;  %v6155_v19 = vadd.f32 %v5186_v15, %v294_v16 }
 0x1c9   : > { %v3709_v32 = vpop.trf.xlu0  ;;  %4229 = vst.msk [vmem:[%s6001_s8 + $0xc8] sm:$0xff] %vm4203_vm7, %v3748_v48  ;;  %4884 = vsinq.f32 %v867_v50  ;;  %v2613_v47 = vsub.s32 0, %v6140_v2  ;;  %vm2477_vm10 = vcmp.lt.s32.totalorder %v6109_v40, 3  ;;  %v2484_v3 = vsel %vm2478_vm8, %v2471_v60, 920167782 }
 0x1ca   : > { %4206 = vst.msk [vmem:[%s6001_s8 + $0x10] sm:$0xff] %vm4203_vm7, %v3709_v32  ;;  %v2487_v24 = vsel %vm2475_vm6, %v2465_v0, %v2468_v43  ;;  %v2488_v51 = vsel %vm2478_vm8, %v2474_v44, 1326507024  ;;  %vm2476_vm9 = vcmp.lt.s32.totalorder %v6109_v40, 2  ;;  %v2485_v29 = vsel %vm2477_vm10, %v2468_v43, %v2484_v3 }
 0x1cb   : > { %v4623_v56 = vmin.u32 %v2613_v47, %v6140_v2  ;;  %v2489_v16 = vsel %vm2477_vm10, %v2471_v60, %v2488_v51  ;;  %v6168_v41 = vand.u32 3, %v872_v10  ;;  %v2480_v5 = vsel %vm2478_vm8, %v2468_v43, 2102212464 }
 0x1cc   : > { %v3749_v22 = vpop.trf.xlu1  ;;  %v2486_v11 = vsel %vm2476_vm9, %v2483_v39, %v2485_v29  ;;  %v2490_v20 = vsel %vm2476_vm9, %v2487_v24, %v2489_v16  ;;  %v2633_v58 = vsub.s32 4, %v6119_v30  ;;  %v2459_v21 = vshrl.u32 %v5045_v53, %v6103_v54 }
 0x1cd   : > { %v3710_v42 = vpop.trf.xlu0  ;;  %4230 = vst.msk [vmem:[%s6001_s8 + $0xd0] sm:$0xff] %vm4203_vm7, %v3749_v22  ;;  %v2615_v27 = vclz %v4623_v56  ;;  %v6180_v49 = vmul.u32.u64.low %v6146_v1, %v2490_v20  ;;  %v6181_v46 = vmul.u32.u64.high %v6146_v1, %v2490_v20, %v6180_v49  ;;  %v2481_v44 = vsel %vm2477_vm10, %v2465_v0, %v2480_v5 }
 0x1ce   : > { %4207 = vst.msk [vmem:[%s6001_s8 + $0x18] sm:$0xff] %vm4203_vm7, %v3710_v42  ;;  %v6184_v14 = vmul.u32.u64.low %v6146_v1, %v2486_v11  ;;  %v6185_v55 = vmul.u32.u64.high %v6146_v1, %v2486_v11, %v6184_v14  ;;  %v2479_v60 = vsel %vm2475_vm6, %v2459_v21, %v2462_v38  ;;  %v1094_v54 = vand.u32 2139095040, %v6155_v19 }
 0x1cf   : > { %v4624_v43 = vadd.s32 4294967294, %v2615_v27  ;;  %vm875_vm11 = vcmp.eq.s32.totalorder %v6168_v41, 0  ;;  %vm6198_vm12 = vcmp.le.f32.partialorder %v2547_v17, 0.7853982  ;;  %vm2549_vm13 = vcmp.lt.s32.totalorder %v5939_v36, 0 }
 0x1d0   : > { %v3750_v50 = vpop.trf.xlu1  ;;  %v6208_v38 = vrot.slane %v5770_v23, %v233_v4  ;;  %vm878_vm14 = vcmp.eq.s32.totalorder %v6168_v41, 2  ;;  %v2634_v17 = vsel %vm2549_vm13, %v2633_v58, %v6119_v30  ;;  %v1095_v10 = vshrl.u32 %v1094_v54, 23 }
 0x1d1   : > { %v3711_v48 = vpop.trf.xlu0  ;;  %4231 = vst.msk [vmem:[%s6001_s8 + $0xd8] sm:$0xff] %vm4203_vm7, %v3750_v50  ;;  %vm4625_vm15 = vcmp.lt.s32.totalorder %v4624_v43, 0  ;;  %v2603_v3 = vadd.s32 %v6062_v37, %v6060_v35  ;;  %v2482_v23 = vsel %vm2476_vm9, %v2479_v60, %v2481_v44  ;;  %vm2500_vm0 = vc.u32 %v6181_v46, %v6184_v14 }
 0x1d2   : > { %4208 = vst.msk [vmem:[%s6001_s8 + $0x20] sm:$0xff] %vm4203_vm7, %v3711_v48  ;;  %v4883_v0 = vpop.eup %4882  ;;  %v2618_v24 = vsel %vm4625_vm15, 0, %v4624_v43  ;;  %v2636_v30 = vsel %vm6198_vm12, 0, %v2634_v17  ;;  %v2501_v42 = vadd.s32 1, %v6185_v55  ;;  %v1091_v35 = vand.u32 2147483647, %v6155_v19 }
 0x1d3   : > { %v4885_v47 = vpop.eup %4884  ;;  %v879_v39 = vxor.u32 2147483648, %v4883_v0  ;;  %v2619_v56 = vsub.s32 32, %v2618_v24  ;;  %v2623_v29 = vsub.s32 4294967266, %v2618_v24  ;;  %v4566_v37 = vadd.s32 4294967169, %v1095_v10 }
 0x1d4   : > { %v3751_v51 = vpop.trf.xlu1  ;;  %v876_v22 = vxor.u32 2147483648, %v4885_v47  ;;  %v2620_v40 = vshll.u32 %v6140_v2, %v2618_v24  ;;  %v2498_v20 = vmul.u32 %v6146_v1, %v2482_v23  ;;  %v2502_v21 = vsel %vm2500_vm0, %v2501_v42, %v6185_v55 }
 0x1d5   : > { %v3712_v16 = vpop.trf.xlu0  ;;  %4232 = vst.msk [vmem:[%s6001_s8 + $0xe0] sm:$0xff] %vm4203_vm7, %v3751_v51  ;;  %v2621_v5 = vshrl.u32 %v2603_v3, %v2619_v56  ;;  %v2624_v11 = vadd.s32 127, %v2623_v29  ;;  %v880_v58 = vsel %vm878_vm14, %v879_v39, %v4885_v47  ;;  %v1101_v50 = vadd.s32 1, %v4566_v37 }
 0x1d6   : > { %4209 = vst.msk [vmem:[%s6001_s8 + $0x28] sm:$0xff] %vm4203_vm7, %v3712_v16  ;;  %v877_v27 = vsel %vm875_vm11, %v4883_v0, %v876_v22  ;;  %vm874_vm1 = vcmp.lt.s32.totalorder %v6168_v41, 2  ;;  %v2503_v2 = vadd.s32 %v2502_v21, %v2498_v20  ;;  %v2640_v48 = vadd.s32 3, %v2636_v30 }
 0x1d7   : > { %v2622_v43 = vor.u32 %v2621_v5, %v2620_v40  ;;  %v2625_v60 = vshll.u32 %v2624_v11, 23  ;;  %v1098_v1 = vand.u32 8388607, %v1091_v35  ;;  %vm1102_vm2 = vcmp.gt.s32.totalorder %v1101_v50, 0 }
 0x1d8   : > { %v3752_v49 = vpop.trf.xlu1  ;;  %v293_v55 = vmul.f32 %v6208_v38, %v5182_v12  ;;  %v881_v54 = vsel %vm874_vm1, %v877_v27, %v880_v58  ;;  %v2504_v0 = vadd.s32 536870912, %v2503_v2  ;;  %v1103_v17 = vsel %vm1102_vm2, %v1101_v50, 0 }
 0x1d9   : > { %v3713_v44 = vpop.trf.xlu0  ;;  %4233 = vst.msk [vmem:[%s6001_s8 + $0xe8] sm:$0xff] %vm4203_vm7, %v3752_v49  ;;  %v2626_v41 = vor.u32 4788187, %v2625_v60  ;;  %vm871_vm3 = vweird.f32 %v5838_v45  ;;  %v1105_v47 = vand.u32 31, %v1103_v17  ;;  %v2629_v3 = vcvt.s32.f32 %v2622_v43 }
 0x1da   : > { %4210 = vst.msk [vmem:[%s6001_s8 + $0x30] sm:$0xff] %vm4203_vm7, %v3713_v44  ;;  %v6245_v24 = vshrl.u32 %v2504_v0, 30  ;;  %v6251_v51 = vmul.f32 %v6075_v62, %v5194_v18  ;;  %v882_v22 = vsel %vm871_vm3, nan, %v881_v54  ;;  %v6253_v56 = vand.u32 3, %v2640_v48 }
 0x1db   : > { %v2627_v39 = vand.u32 2147483647, %v2626_v41  ;;  %v1106_v29 = vsub.s32 32, %v1105_v47  ;;  %v6258_v45 = vadd.f32 %v5186_v15, %v293_v55  ;;  %v1099_v42 = vor.u32 8388608, %v1098_v1 }
 0x1dc   : > { %v3753_v10 = vpop.trf.xlu1  ;;  %v2506_v30 = vshll.u32 %v6245_v24, 30  ;;  %v1108_v37 = vshll.u32 %v5045_v53, %v1105_v47  ;;  %v1111_v40 = vshll.u32 %v5046_v57, %v1105_v47  ;;  %v1114_v49 = vshll.u32 %v5047_v59, %v1105_v47 }
 0x1dd   : > { %v3714_v23 = vpop.trf.xlu0  ;;  %4234 = vst.msk [vmem:[%s6001_s8 + $0xf0] sm:$0xff] %vm4203_vm7, %v3753_v10  ;;  %v2630_v16 = vmul.f32 %v2629_v3, %v2627_v39  ;;  %v1109_v62 = vshrl.u32 %v5046_v57, %v1106_v29  ;;  %v1112_v5 = vshrl.u32 %v5047_v59, %v1106_v29  ;;  %v1115_v11 = vshrl.u32 %v5048_v61, %v1106_v29 }
 0x1de   : > { %4211 = vst.msk [vmem:[%s6001_s8 + $0x38] sm:$0xff] %vm4203_vm7, %v3714_v23  ;;  %3819 = vxpose.xlu0.b32.start [1/2] (short) %v882_v22, 128  ;;  %v6266_v58 = vsub.s32 %v2503_v2, %v2506_v30  ;;  %v1118_v50 = vshrl.u32 %v5049_v63, %v1106_v29  ;;  %v1104_v43 = vshrl.u32 %v1103_v17, 5  ;;  %v1117_v44 = vshll.u32 %v5048_v61, %v1105_v47 }
 0x1df   : > { %v2631_v27 = vxor.u32 2147483648, %v2630_v16  ;;  %v1110_v60 = vor.u32 %v1109_v62, %v1108_v37  ;;  %v990_v48 = vand.u32 2139095040, %v6258_v45  ;;  %v1113_v55 = vor.u32 %v1112_v5, %v1111_v40 }
 0x1e0   : > { %v3754_v20 = vpop.trf.xlu1  ;;  %v2509_v1 = vsub.s32 0, %v6266_v58  ;;  %v1116_v54 = vor.u32 %v1115_v11, %v1114_v49  ;;  %v1119_v0 = vor.u32 %v1118_v50, %v1117_v44  ;;  %v1120_v17 = vshll.u32 %v5049_v63, %v1105_v47 }
 0x1e1   : > { %v3715_v21 = vpop.trf.xlu0  ;;  %4235 = vst.msk [vmem:[%s6001_s8 + $0xf8] sm:$0xff] %vm4203_vm7, %v3754_v20  ;;  %v2632_v2 = vsel %vm2549_vm13, %v2631_v27, %v2630_v16  ;;  %v1121_v10 = vshrl.u32 %v5050_v9, %v1106_v29  ;;  %v6285_v23 = vshll.u32 %v1099_v42, 8  ;;  %v987_v22 = vand.u32 2147483647, %v6258_v45 }
 0x1e2   : > { %4212 = vst.msk [vmem:[%s6001_s8 + $0x40] sm:$0xff] %vm4203_vm7, %v3715_v21  ;;  %v2635_v41 = vsel %vm6198_vm12, %v5939_v36, %v2632_v2  ;;  %v4619_v39 = vmin.u32 %v2509_v1, %v6266_v58  ;;  %v1107_v16 = vshrl.u32 %v5045_v53, %v1106_v29  ;;  %v991_v30 = vshrl.u32 %v990_v48, 23 }
 0x1e3   : > { %4886 = vcosq.f32 %v2635_v41  ;;  %v1122_v32 = vor.u32 %v1121_v10, %v1120_v17  ;;  %vm2445_vm4 = vcmp.lt.s32.totalorder %v5978_v13, 0  ;;  %vm1123_vm5 = vcmp.lt.s32.totalorder %v1104_v43, 1 }
 0x1e4   : > { %4888 = vsinq.f32 %v2635_v41  ;;  %v2511_v47 = vclz %v4619_v39  ;;  %vm1124_vm6 = vcmp.lt.s32.totalorder %v1104_v43, 2  ;;  %vm1126_vm8 = vcmp.lt.s32.totalorder %v1104_v43, 4 }
 0x1e5   : > { %v3716_v3 = vpop.trf.xlu0  ;;  %vm1125_vm10 = vcmp.lt.s32.totalorder %v1104_v43, 3  ;;  %v1128_v42 = vsel %vm1126_vm8, %v1116_v54, 2102212464  ;;  %v1131_v37 = vsel %vm1123_vm5, %v1110_v60, %v1113_v55  ;;  %v1132_v62 = vsel %vm1126_vm8, %v1119_v0, 920167782 }
 0x1e6   : > { %4213 = vst.msk [vmem:[%s6001_s8 + $0x48] sm:$0xff] %vm4203_vm7, %v3716_v3  ;;  %vm2646_vm9 = vcmp.eq.s32.totalorder %v6253_v56, 2  ;;  %v4620_v40 = vadd.s32 4294967294, %v2511_v47  ;;  %v1127_v29 = vsel %vm1123_vm5, %v1107_v16, %v1110_v60  ;;  %v1133_v11 = vsel %vm1125_vm10, %v1116_v54, %v1132_v62 }
 0x1e7   : > { %v1135_v20 = vsel %vm1123_vm5, %v1113_v55, %v1116_v54  ;;  %vm2643_vm11 = vcmp.eq.s32.totalorder %v6253_v56, 0  ;;  %vm6299_vm12 = vcmp.le.f32.partialorder %v2443_v34, 0.7853982  ;;  %v1129_v21 = vsel %vm1125_vm10, %v1113_v55, %v1128_v42 }
 0x1e8   : > { %v1134_v49 = vsel %vm1124_vm6, %v1131_v37, %v1133_v11  ;;  %v1136_v50 = vsel %vm1126_vm8, %v1122_v32, 1326507024  ;;  %v4562_v60 = vadd.s32 4294967169, %v991_v30  ;;  %vm2642_vm13 = vcmp.lt.s32.totalorder %v6253_v56, 2 }
 0x1e9   : > { %v3717_v5 = vpop.trf.xlu0  ;;  %vm4621_vm14 = vcmp.lt.s32.totalorder %v4620_v40, 0  ;;  %v1137_v44 = vsel %vm1125_vm10, %v1119_v0, %v1136_v50  ;;  %v6311_v34 = vmul.u32.u64.low %v6285_v23, %v1134_v49  ;;  %v6312_v48 = vmul.u32.u64.high %v6285_v23, %v1134_v49, %v6311_v34 }
 0x1ea   : > { %4214 = vst.msk [vmem:[%s6001_s8 + $0x50] sm:$0xff] %vm4203_vm7, %v3717_v5  ;;  %vm2639_vm15 = vweird.f32 %v5939_v36  ;;  %v2514_v2 = vsel %vm4621_vm14, 0, %v4620_v40  ;;  %v2529_v1 = vsub.s32 4, %v6245_v24  ;;  %v1138_v55 = vsel %vm1124_vm6, %v1135_v20, %v1137_v44 }
 0x1eb   : > { %v997_v54 = vadd.s32 1, %v4562_v60  ;;  %v2499_v41 = vadd.s32 %v6184_v14, %v6181_v46  ;;  %v2515_v17 = vsub.s32 32, %v2514_v2  ;;  %v2519_v10 = vsub.s32 4294967266, %v2514_v2 }
 0x1ec   : > { %v1130_v0 = vsel %vm1124_vm6, %v1127_v29, %v1129_v21  ;;  %v2516_v3 = vshll.u32 %v6266_v58, %v2514_v2  ;;  %v6325_v16 = vmul.u32.u64.low %v6285_v23, %v1138_v55  ;;  %v6326_v32 = vmul.u32.u64.high %v6285_v23, %v1138_v55, %v6325_v16 }
 0x1ed   : > { %v3718_v39 = vpop.trf.xlu0  ;;  %vm998_vm0 = vcmp.gt.s32.totalorder %v997_v54, 0  ;;  %v4887_v30 = vpop.eup %4886  ;;  %v2517_v47 = vshrl.u32 %v2499_v41, %v2515_v17  ;;  %v2520_v42 = vadd.s32 127, %v2519_v10  ;;  %v1149_v46 = vadd.s32 1, %v6312_v48 }
 0x1ee   : > { %4215 = vst.msk [vmem:[%s6001_s8 + $0x58] sm:$0xff] %vm4203_vm7, %v3718_v39  ;;  %v999_v14 = vsel %vm998_vm0, %v997_v54, 0  ;;  %v4889_v37 = vpop.eup %4888  ;;  %v2647_v62 = vxor.u32 2147483648, %v4887_v30  ;;  %v2530_v58 = vsel %vm2445_vm4, %v2529_v1, %v6245_v24  ;;  %v6334_v43 = vand.u32 8388607, %v987_v22 }
 0x1ef   : > { %v1001_v40 = vand.u32 31, %v999_v14  ;;  %v2644_v5 = vxor.u32 2147483648, %v4889_v37  ;;  %v2518_v29 = vor.u32 %v2517_v47, %v2516_v3  ;;  %v2521_v11 = vshll.u32 %v2520_v42, 23 }
 0x1f0   : > { %v6338_v21 = vadd.f32 %v5203_v26, %v6251_v51  ;;  %v2648_v49 = vsel %vm2646_vm9, %v2647_v62, %v4889_v37  ;;  %v1146_v24 = vmul.u32 %v6285_v23, %v1130_v0  ;;  %vm1148_vm1 = vc.u32 %v6326_v32, %v6311_v34 }
 0x1f1   : > { %v3719_v20 = vpop.trf.xlu0  ;;  %v1002_v50 = vsub.s32 32, %v1001_v40  ;;  %v2645_v60 = vsel %vm2643_vm11, %v4887_v30, %v2644_v5  ;;  %v2522_v44 = vor.u32 4788187, %v2521_v11  ;;  %v2532_v51 = vsel %vm6299_vm12, 0, %v2530_v58 }
 0x1f2   : > { %4216 = vst.msk [vmem:[%s6001_s8 + $0x60] sm:$0xff] %vm4203_vm7, %v3719_v20  ;;  %v1150_v2 = vsel %vm1148_vm1, %v1149_v46, %v6312_v48  ;;  %v2649_v1 = vsel %vm2642_vm13, %v2645_v60, %v2648_v49  ;;  %v995_v23 = vor.u32 8388608, %v6334_v43  ;;  %v6357_v54 = vmul.f32 %v6208_v38, %v5194_v18 }
 0x1f3   : > { %v1151_v55 = vadd.s32 %v1150_v2, %v1146_v24  ;;  %v2650_v41 = vsel %vm2639_vm15, nan, %v2649_v1  ;;  %v2523_v17 = vand.u32 2147483647, %v2522_v44  ;;  %v2525_v10 = vcvt.s32.f32 %v2518_v29 }
 0x1f4   : > { %v2755_v0 = vand.u32 2147483647, %v6338_v21  ;;  %3852 = vxpose.xlu1.b32.end [2/2] (short) %v2650_v41, 128  ;;  %v2536_v48 = vadd.s32 3, %v2532_v51  ;;  %v1005_v3 = vshrl.u32 %v5046_v57, %v1002_v50  ;;  %v1008_v16 = vshrl.u32 %v5047_v59, %v1002_v50 }
 0x1f5   : > { %v3720_v39 = vpop.trf.xlu0  ;;  %v1152_v56 = vadd.s32 536870912, %v1151_v55  ;;  %v2526_v30 = vmul.f32 %v2525_v10, %v2523_v17  ;;  %v6366_v38 = vshrl.u32 %v999_v14, 5  ;;  %v1011_v36 = vshrl.u32 %v5048_v61, %v1002_v50 }
 0x1f6   : > { %4217 = vst.msk [vmem:[%s6001_s8 + $0x68] sm:$0xff] %vm4203_vm7, %v3720_v39  ;;  %v1014_v47 = vshrl.u32 %v5049_v63, %v1002_v50  ;;  %v1004_v46 = vshll.u32 %v5045_v53, %v1001_v40  ;;  %v1007_v37 = vshll.u32 %v5046_v57, %v1001_v40  ;;  %v1010_v62 = vshll.u32 %v5047_v59, %v1001_v40 }
 0x1f7   : > { %v1153_v42 = vshrl.u32 %v1152_v56, 30  ;;  %v2527_v58 = vxor.u32 2147483648, %v2526_v30  ;;  %vm1093_vm2 = vcmp.lt.s32.totalorder %v6155_v19, 0  ;;  %v1013_v5 = vshll.u32 %v5048_v61, %v1001_v40 }
 0x1f8   : > { %v1016_v14 = vshll.u32 %v5049_v63, %v1001_v40  ;;  %v1017_v29 = vshrl.u32 %v5050_v9, %v1002_v50  ;;  %v6377_v11 = vand.u32 3, %v2536_v48  ;;  %v1006_v49 = vor.u32 %v1005_v3, %v1004_v46 }
 0x1f9   : > { %v3721_v43 = vpop.trf.xlu0  ;;  %v1154_v20 = vshll.u32 %v1153_v42, 30  ;;  %v1009_v24 = vor.u32 %v1008_v16, %v1007_v37  ;;  %v2528_v60 = vsel %vm2445_vm4, %v2527_v58, %v2526_v30  ;;  %v1012_v44 = vor.u32 %v1011_v36, %v1010_v62 }
 0x1fa   : > { %4218 = vst.msk [vmem:[%s6001_s8 + $0x70] sm:$0xff] %vm4203_vm7, %v3721_v43  ;;  %v1015_v51 = vor.u32 %v1014_v47, %v1013_v5  ;;  %v1018_v2 = vor.u32 %v1017_v29, %v1016_v14  ;;  %v2531_v40 = vsel %vm6299_vm12, %v5978_v13, %v2528_v60  ;;  %v1003_v41 = vshrl.u32 %v5045_v53, %v1002_v50 }
 0x1fb   : > { %v6386_v1 = vsub.s32 %v1151_v55, %v1154_v20  ;;  %v2758_v17 = vand.u32 2139095040, %v6338_v21  ;;  %4890 = vcosq.f32 %v2531_v40  ;;  %v1177_v10 = vsub.s32 4, %v1153_v42 }
 0x1fc   : > { %vm1019_vm3 = vcmp.lt.s32.totalorder %v6366_v38, 1  ;;  %vm1021_vm4 = vcmp.lt.s32.totalorder %v6366_v38, 3  ;;  %4892 = vsinq.f32 %v2531_v40  ;;  %vm1022_vm5 = vcmp.lt.s32.totalorder %v6366_v38, 4 }
 0x1fd   : > { %v3722_v39 = vpop.trf.xlu0  ;;  %v1157_v48 = vsub.s32 0, %v6386_v1  ;;  %v1027_v27 = vsel %vm1019_vm3, %v1006_v49, %v1009_v24  ;;  %v1024_v50 = vsel %vm1022_vm5, %v1012_v44, 2102212464  ;;  %v1028_v55 = vsel %vm1022_vm5, %v1015_v51, 920167782 }
 0x1fe   : > { %4219 = vst.msk [vmem:[%s6001_s8 + $0x78] sm:$0xff] %vm4203_vm7, %v3722_v39  ;;  %v1031_v56 = vsel %vm1019_vm3, %v1009_v24, %v1012_v44  ;;  %v1032_v3 = vsel %vm1022_vm5, %v1018_v2, 1326507024  ;;  %vm1020_vm6 = vcmp.lt.s32.totalorder %v6366_v38, 2  ;;  %v1029_v30 = vsel %vm1021_vm4, %v1012_v44, %v1028_v55 }
 0x1ff   : > { %v4567_v16 = vmin.u32 %v1157_v48, %v6386_v1  ;;  %v1033_v36 = vsel %vm1021_vm4, %v1015_v51, %v1032_v3  ;;  %v1030_v47 = vsel %vm1020_vm6, %v1027_v27, %v1029_v30  ;;  %v1035_v37 = vshll.u32 %v995_v23, 8 }
 0x200   : > { %v1034_v46 = vsel %vm1020_vm6, %v1031_v56, %v1033_v36  ;;  %v2759_v62 = vshrl.u32 %v2758_v17, 23  ;;  %v1178_v43 = vsel %vm1093_vm2, %v1177_v10, %v1153_v42  ;;  %v1023_v5 = vsel %vm1019_vm3, %v1003_v41, %v1006_v49 }
 0x201   : > { %v1159_v58 = vclz %v4567_v16  ;;  %v1025_v14 = vsel %vm1021_vm4, %v1009_v24, %v1024_v50  ;;  %v6416_v29 = vmul.u32.u64.low %v1035_v37, %v1034_v46  ;;  %v6417_v20 = vmul.u32.u64.high %v1035_v37, %v1034_v46, %v6416_v29 }
 0x202   : > { %v6419_v60 = vmul.u32.u64.low %v1035_v37, %v1030_v47  ;;  %v6420_v44 = vmul.u32.u64.high %v1035_v37, %v1030_v47, %v6419_v60  ;;  %vm2535_vm8 = vweird.f32 %v5978_v13  ;;  %vm6426_vm10 = vcmp.le.f32.partialorder %v1091_v35, 0.7853982 }
 0x203   : > { %v4568_v42 = vadd.s32 4294967294, %v1159_v58  ;;  %v4630_v49 = vadd.s32 4294967169, %v2759_v62  ;;  %v6432_v24 = vadd.f32 %v5203_v26, %v6357_v54  ;;  %vm2538_vm9 = vcmp.lt.s32.totalorder %v6377_v11, 2 }
 0x204   : > { %vm2539_vm11 = vcmp.eq.s32.totalorder %v6377_v11, 0  ;;  %vm2542_vm12 = vcmp.eq.s32.totalorder %v6377_v11, 2  ;;  %v1026_v51 = vsel %vm1020_vm6, %v1023_v5, %v1025_v14  ;;  %v1147_v35 = vadd.s32 %v6311_v34, %v6326_v32  ;;  %v6457_v14 = vld [vmem:[%s5155_s25 + $0x8] sm:$0xff] }
 0x205   : > { %vm4569_vm13 = vcmp.lt.s32.totalorder %v4568_v42, 0  ;;  %v1180_v2 = vsel %vm6426_vm10, 0, %v1178_v43  ;;  %v2765_v40 = vadd.s32 1, %v4630_v49  ;;  %v4891_v41 = vpop.eup %4890  ;;  %vm1044_vm14 = vc.u32 %v6417_v20, %v6419_v60 }
 0x206   : > { %v1162_v54 = vsel %vm4569_vm13, 0, %v4568_v42  ;;  %v1045_v17 = vadd.s32 1, %v6420_v44  ;;  %v2762_v10 = vand.u32 8388607, %v2755_v0  ;;  %v4893_v38 = vpop.eup %4892  ;;  %v2543_v39 = vxor.u32 2147483648, %v4891_v41 }
 0x207   : > { %v1163_v48 = vsub.s32 32, %v1162_v54  ;;  %v1167_v27 = vsub.s32 4294967266, %v1162_v54  ;;  %v1042_v34 = vmul.u32 %v1035_v37, %v1026_v51  ;;  %v2540_v32 = vxor.u32 2147483648, %v4893_v38 }
 0x208   : > { %v1164_v50 = vshll.u32 %v6386_v1, %v1162_v54  ;;  %v1046_v55 = vsel %vm1044_vm14, %v1045_v17, %v6420_v44  ;;  %vm2766_vm15 = vcmp.gt.s32.totalorder %v2765_v40, 0  ;;  %v2544_v56 = vsel %vm2542_vm12, %v2543_v39, %v4893_v38 }
 0x209   : > { %v1165_v3 = vshrl.u32 %v1147_v35, %v1163_v48  ;;  %v1168_v16 = vadd.s32 127, %v1167_v27  ;;  %v1047_v30 = vadd.s32 %v1046_v55, %v1042_v34  ;;  %v2541_v36 = vsel %vm2539_vm11, %v4891_v41, %v2540_v32 }
 0x20a   : > { %v1184_v47 = vadd.s32 3, %v1180_v2  ;;  %v2763_v46 = vor.u32 8388608, %v2762_v10  ;;  %v2767_v37 = vsel %vm2766_vm15, %v2765_v40, 0  ;;  %v2545_v1 = vsel %vm2538_vm9, %v2541_v36, %v2544_v56 }
 0x20b   : > { %v1166_v62 = vor.u32 %v1165_v3, %v1164_v50  ;;  %v1169_v58 = vshll.u32 %v1168_v16, 23  ;;  %v1048_v43 = vadd.s32 536870912, %v1047_v30  ;;  %v3803_v5 = vpop.trf.xlu1  ;;  %v2546_v29 = vsel %vm2535_vm8, nan, %v2545_v1 }
 0x20c   : > { %v2769_v44 = vand.u32 31, %v2767_v37  ;;  %v2654_v42 = vand.u32 2139095040, %v6432_v24  ;;  %4252 = vst.msk [vmem:[%s6001_s8 + $0x180] sm:$0xff] %vm4203_vm7, %v3803_v5  ;;  %3820 = vxpose.xlu0.b32.end [2/2] (short) %v2546_v29, 128  ;;  %v6466_v11 = vand.u32 3, %v1184_v47  ;;  %v2651_v2 = vand.u32 2147483647, %v6432_v24 }
 0x20d   : > { %v1170_v49 = vor.u32 4788187, %v1169_v58  ;;  %v6464_v51 = vshrl.u32 %v1048_v43, 30  ;;  %v6472_v13 = vrot.slane %v6457_v14, %v213_v7  ;;  %v1173_v41 = vcvt.s32.f32 %v1166_v62 }
 0x20e   : > { %v2770_v35 = vsub.s32 32, %v2769_v44  ;;  %v6475_v17 = vshll.u32 %v2763_v46, 8  ;;  %v2655_v27 = vshrl.u32 %v2654_v42, 23  ;;  %v2772_v7 = vshll.u32 %v5045_v53, %v2769_v44 }
 0x20f   : > { %v1171_v40 = vand.u32 2147483647, %v1170_v49  ;;  %v1050_v54 = vshll.u32 %v6464_v51, 30  ;;  %v3804_v10 = vpop.trf.xlu1  ;;  %v1043_v55 = vadd.s32 %v6419_v60, %v6417_v20  ;;  %v2768_v56 = vshrl.u32 %v2767_v37, 5 }
 0x210   : > { %v2773_v38 = vshrl.u32 %v5046_v57, %v2770_v35  ;;  %v2776_v39 = vshrl.u32 %v5047_v59, %v2770_v35  ;;  %v2779_v48 = vshrl.u32 %v5048_v61, %v2770_v35  ;;  %4253 = vst.msk [vmem:[%s6001_s8 + $0x188] sm:$0xff] %vm4203_vm7, %v3804_v10  ;;  %v2782_v50 = vshrl.u32 %v5049_v63, %v2770_v35 }
 0x211   : > { %v1174_v34 = vmul.f32 %v1173_v41, %v1171_v40  ;;  %v6482_v32 = vsub.s32 %v1047_v30, %v1050_v54  ;;  %v2775_v3 = vshll.u32 %v5046_v57, %v2769_v44  ;;  %v2778_v16 = vshll.u32 %v5047_v59, %v2769_v44 }
 0x212   : > { %v2774_v46 = vor.u32 %v2773_v38, %v2772_v7  ;;  %v2781_v30 = vshll.u32 %v5048_v61, %v2769_v44  ;;  %vm989_vm0 = vcmp.lt.s32.totalorder %v6258_v45, 0  ;;  %v2784_v43 = vshll.u32 %v5049_v63, %v2769_v44 }
 0x213   : > { %v1175_v36 = vxor.u32 2147483648, %v1174_v34  ;;  %v1053_v47 = vsub.s32 0, %v6482_v32  ;;  %v3805_v1 = vpop.trf.xlu1  ;;  %v2777_v62 = vor.u32 %v2776_v39, %v2775_v3  ;;  %v2780_v58 = vor.u32 %v2779_v48, %v2778_v16 }
 0x214   : > { %v2785_v20 = vshrl.u32 %v5050_v9, %v2770_v35  ;;  %4254 = vst.msk [vmem:[%s6001_s8 + $0x190] sm:$0xff] %vm4203_vm7, %v3805_v1  ;;  %v2783_v5 = vor.u32 %v2782_v50, %v2781_v30  ;;  %v4626_v29 = vadd.s32 4294967169, %v2655_v27  ;;  %v1073_v49 = vsub.s32 4, %v6464_v51 }
 0x215   : > { %v1176_v60 = vsel %vm1093_vm2, %v1175_v36, %v1174_v34  ;;  %v4563_v37 = vmin.u32 %v1053_v47, %v6482_v32  ;;  %v2771_v44 = vshrl.u32 %v5045_v53, %v2770_v35  ;;  %vm2787_vm1 = vcmp.lt.s32.totalorder %v2768_v56, 1 }
 0x216   : > { %v1179_v42 = vsel %vm6426_vm10, %v6155_v19, %v1176_v60  ;;  %v2786_v40 = vor.u32 %v2785_v20, %v2784_v43  ;;  %vm2790_vm3 = vcmp.lt.s32.totalorder %v2768_v56, 4  ;;  %vm2788_vm2 = vcmp.lt.s32.totalorder %v2768_v56, 2 }
 0x217   : > { %4894 = vcosq.f32 %v1179_v42  ;;  %v1055_v41 = vclz %v4563_v37  ;;  %v3806_v54 = vpop.trf.xlu1  ;;  %v2792_v10 = vsel %vm2790_vm3, %v2780_v58, 2102212464  ;;  %v2795_v38 = vsel %vm2787_vm1, %v2774_v46, %v2777_v62 }
 0x218   : > { %4896 = vsinq.f32 %v1179_v42  ;;  %4255 = vst.msk [vmem:[%s6001_s8 + $0x198] sm:$0xff] %vm4203_vm7, %v3806_v54  ;;  %vm2789_vm4 = vcmp.lt.s32.totalorder %v2768_v56, 3  ;;  %v2796_v23 = vsel %vm2790_vm3, %v2783_v5, 920167782  ;;  %v2799_v48 = vsel %vm2787_vm1, %v2777_v62, %v2780_v58 }
 0x219   : > { %v4564_v39 = vadd.s32 4294967294, %v1055_v41  ;;  %v2791_v27 = vsel %vm2787_vm1, %v2771_v44, %v2774_v46  ;;  %v2797_v34 = vsel %vm2789_vm4, %v2780_v58, %v2796_v23  ;;  %v2800_v35 = vsel %vm2790_vm3, %v2786_v40, 1326507024 }
 0x21a   : > { %v2661_v7 = vadd.s32 1, %v4626_v29  ;;  %v2793_v50 = vsel %vm2789_vm4, %v2777_v62, %v2792_v10  ;;  %v2798_v3 = vsel %vm2788_vm2, %v2795_v38, %v2797_v34  ;;  %v2801_v16 = vsel %vm2789_vm4, %v2783_v5, %v2800_v35 }
 0x21b   : > { %vm4565_vm5 = vcmp.lt.s32.totalorder %v4564_v39, 0  ;;  %v3807_v36 = vpop.trf.xlu1  ;;  %v2802_v30 = vsel %vm2788_vm2, %v2799_v48, %v2801_v16  ;;  %v6510_v1 = vmul.u32.u64.low %v6475_v17, %v2798_v3  ;;  %v6511_v43 = vmul.u32.u64.high %v6475_v17, %v2798_v3, %v6510_v1 }
 0x21c   : > { %v1058_v47 = vsel %vm4565_vm5, 0, %v4564_v39  ;;  %4256 = vst.msk [vmem:[%s6001_s8 + $0x1a0] sm:$0xff] %vm4203_vm7, %v3807_v36  ;;  %v1074_v62 = vsel %vm989_vm0, %v1073_v49, %v6464_v51  ;;  %vm2662_vm6 = vcmp.gt.s32.totalorder %v2661_v7, 0  ;;  %v2794_v20 = vsel %vm2788_vm2, %v2791_v27, %v2793_v50 }
 0x21d   : > { %v1059_v46 = vsub.s32 32, %v1058_v47  ;;  %v1063_v58 = vsub.s32 4294967266, %v1058_v47  ;;  %v6521_v60 = vmul.u32.u64.low %v6475_v17, %v2802_v30  ;;  %v6522_v37 = vmul.u32.u64.high %v6475_v17, %v2802_v30, %v6521_v60 }
 0x21e   : > { %v2663_v5 = vsel %vm2662_vm6, %v2661_v7, 0  ;;  %v1060_v29 = vshll.u32 %v6482_v32, %v1058_v47  ;;  %vm1186_vm8 = vcmp.lt.s32.totalorder %v6466_v11, 2  ;;  %vm6528_vm10 = vcmp.le.f32.partialorder %v987_v22, 0.7853982 }
 0x21f   : > { %v1061_v42 = vshrl.u32 %v1043_v55, %v1059_v46  ;;  %v1064_v44 = vadd.s32 127, %v1063_v58  ;;  %v2665_v40 = vand.u32 31, %v2663_v5  ;;  %v3808_v41 = vpop.trf.xlu1  ;;  %v2813_v56 = vadd.s32 1, %v6511_v43 }
 0x220   : > { %v6535_v49 = vand.u32 8388607, %v2651_v2  ;;  %4257 = vst.msk [vmem:[%s6001_s8 + $0x1a8] sm:$0xff] %vm4203_vm7, %v3808_v41  ;;  %vm1187_vm9 = vcmp.eq.s32.totalorder %v6466_v11, 0  ;;  %v1076_v10 = vsel %vm6528_vm10, 0, %v1074_v62  ;;  %v2810_v23 = vmul.u32 %v6475_v17, %v2794_v20 }
 0x221   : > { %v4895_v32 = vpop.eup %4894  ;;  %v1062_v55 = vor.u32 %v1061_v42, %v1060_v29  ;;  %v1065_v54 = vshll.u32 %v1064_v44, 23  ;;  %v3771_v22 = vpop.trf.xlu0  ;;  %vm2812_vm11 = vc.u32 %v6522_v37, %v6510_v1  ;;  %v2666_v48 = vsub.s32 32, %v2665_v40 }
 0x222   : > { %v4897_v38 = vpop.eup %4896  ;;  %v1191_v39 = vxor.u32 2147483648, %v4895_v32  ;;  %4236 = vst.msk [vmem:[%s6001_s8 + $0x100] sm:$0xff] %vm4203_vm7, %v3771_v22  ;;  %vm1183_vm12 = vweird.f32 %v6155_v19  ;;  %vm1190_vm13 = vcmp.eq.s32.totalorder %v6466_v11, 2  ;;  %v2814_v35 = vsel %vm2812_vm11, %v2813_v56, %v6511_v43 }
 0x223   : > { %v1188_v27 = vxor.u32 2147483648, %v4897_v38  ;;  %v1066_v34 = vor.u32 4788187, %v1065_v54  ;;  %v3809_v7 = vpop.trf.xlu1  ;;  %v6550_v50 = vadd.s32 3, %v1076_v10  ;;  %v2815_v3 = vadd.s32 %v2814_v35, %v2810_v23 }
 0x224   : > { %v2659_v17 = vor.u32 8388608, %v6535_v49  ;;  %4258 = vst.msk [vmem:[%s6001_s8 + $0x1b0] sm:$0xff] %vm4203_vm7, %v3809_v7  ;;  %v296_v16 = vmul.f32 %v6472_v13, %v5182_v12  ;;  %v1192_v47 = vsel %vm1190_vm13, %v1191_v39, %v4897_v38  ;;  %v1069_v46 = vcvt.s32.f32 %v1062_v55 }
 0x225   : > { %v1189_v36 = vsel %vm1187_vm9, %v4895_v32, %v1188_v27  ;;  %v1067_v30 = vand.u32 2147483647, %v1066_v34  ;;  %v3772_v43 = vpop.trf.xlu0  ;;  %v2816_v58 = vadd.s32 536870912, %v2815_v3  ;;  %v6559_v62 = vshrl.u32 %v2663_v5, 5 }
 0x226   : > { %v2669_v20 = vshrl.u32 %v5046_v57, %v2666_v48  ;;  %v2672_v60 = vshrl.u32 %v5047_v59, %v2666_v48  ;;  %4237 = vst.msk [vmem:[%s6001_s8 + $0x108] sm:$0xff] %vm4203_vm7, %v3772_v43  ;;  %v2668_v42 = vshll.u32 %v5045_v53, %v2665_v40  ;;  %v2671_v44 = vshll.u32 %v5046_v57, %v2665_v40 }
 0x227   : > { %v1070_v29 = vmul.f32 %v1069_v46, %v1067_v30  ;;  %v2675_v41 = vshrl.u32 %v5048_v61, %v2666_v48  ;;  %v3810_v56 = vpop.trf.xlu1  ;;  %v1193_v32 = vsel %vm1186_vm8, %v1189_v36, %v1192_v47  ;;  %v2817_v5 = vshrl.u32 %v2816_v58, 30 }
 0x228   : > { %v2674_v55 = vshll.u32 %v5047_v59, %v2665_v40  ;;  %v2678_v54 = vshrl.u32 %v5049_v63, %v2666_v48  ;;  %4259 = vst.msk [vmem:[%s6001_s8 + $0x1b8] sm:$0xff] %vm4203_vm7, %v3810_v56  ;;  %v2677_v22 = vshll.u32 %v5048_v61, %v2665_v40  ;;  %v2680_v38 = vshll.u32 %v5049_v63, %v2665_v40 }
 0x229   : > { %v1071_v10 = vxor.u32 2147483648, %v1070_v29  ;;  %v2681_v39 = vshrl.u32 %v5050_v9, %v2666_v48  ;;  %v3773_v23 = vpop.trf.xlu0  ;;  %v2818_v27 = vshll.u32 %v2817_v5, 30  ;;  %v2670_v34 = vor.u32 %v2669_v20, %v2668_v42 }
 0x22a   : > { %v2673_v11 = vor.u32 %v2672_v60, %v2671_v44  ;;  %4238 = vst.msk [vmem:[%s6001_s8 + $0x110] sm:$0xff] %vm4203_vm7, %v3773_v23  ;;  %v6580_v35 = vadd.f32 %v5186_v15, %v296_v16  ;;  %v2676_v36 = vor.u32 %v2675_v41, %v2674_v55  ;;  %v2679_v47 = vor.u32 %v2678_v54, %v2677_v22 }
 0x22b   : > { %v1072_v7 = vsel %vm989_vm0, %v1071_v10, %v1070_v29  ;;  %v2682_v30 = vor.u32 %v2681_v39, %v2680_v38  ;;  %v3811_v46 = vpop.trf.xlu1  ;;  %v1194_v40 = vsel %vm1183_vm12, nan, %v1193_v32  ;;  %v6589_v58 = vsub.s32 %v2815_v3, %v2818_v27 }
 0x22c   : > { %v1075_v43 = vsel %vm6528_vm10, %v6258_v45, %v1072_v7  ;;  %v2667_v16 = vshrl.u32 %v5045_v53, %v2666_v48  ;;  %4260 = vst.msk [vmem:[%s6001_s8 + $0x1c0] sm:$0xff] %vm4203_vm7, %v3811_v46  ;;  %vm2683_vm14 = vcmp.lt.s32.totalorder %v6559_v62, 1  ;;  %vm2684_vm15 = vcmp.lt.s32.totalorder %v6559_v62, 2 }
 0x22d   : > { %4898 = vcosq.f32 %v1075_v43  ;;  %vm2685_vm0 = vcmp.lt.s32.totalorder %v6559_v62, 3  ;;  %v3774_v19 = vpop.trf.xlu0  ;;  %3915 = vxpose.xlu1.b32.start [1/2] (short) %v1194_v40, 128  ;;  %v2821_v51 = vsub.s32 0, %v6589_v58  ;;  %vm2686_vm1 = vcmp.lt.s32.totalorder %v6559_v62, 4 }
 0x22e   : > { %4900 = vsinq.f32 %v1075_v43  ;;  %v2691_v48 = vsel %vm2683_vm14, %v2670_v34, %v2673_v11  ;;  %4239 = vst.msk [vmem:[%s6001_s8 + $0x118] sm:$0xff] %vm4203_vm7, %v3774_v19  ;;  %v2688_v3 = vsel %vm2686_vm1, %v2676_v36, 2102212464  ;;  %v2692_v20 = vsel %vm2686_vm1, %v2679_v47, 920167782 }
 0x22f   : > { %v2695_v60 = vsel %vm2683_vm14, %v2673_v11, %v2676_v36  ;;  %v2696_v29 = vsel %vm2686_vm1, %v2682_v30, 1326507024  ;;  %v3812_v42 = vpop.trf.xlu1  ;;  %v4631_v44 = vmin.u32 %v2821_v51, %v6589_v58  ;;  %v2841_v41 = vsub.s32 4, %v2817_v5 }
 0x230   : > { %v2693_v56 = vsel %vm2685_vm0, %v2676_v36, %v2692_v20  ;;  %v2697_v32 = vsel %vm2685_vm0, %v2679_v47, %v2696_v29  ;;  %4261 = vst.msk [vmem:[%s6001_s8 + $0x1c8] sm:$0xff] %vm4203_vm7, %v3812_v42  ;;  %v6613_v55 = vand.u32 3, %v6550_v50  ;;  %v2699_v22 = vshll.u32 %v2659_v17, 8 }
 0x231   : > { %v2694_v54 = vsel %vm2684_vm15, %v2691_v48, %v2693_v56  ;;  %v2698_v10 = vsel %vm2684_vm15, %v2695_v60, %v2697_v32  ;;  %v3775_v38 = vpop.trf.xlu0  ;;  %vm2757_vm3 = vcmp.lt.s32.totalorder %v6338_v21, 0  ;;  %v2823_v39 = vclz %v4631_v44 }
 0x232   : > { %v2687_v23 = vsel %vm2683_vm14, %v2667_v16, %v2670_v34  ;;  %v2689_v50 = vsel %vm2685_vm0, %v2673_v11, %v2688_v3  ;;  %4240 = vst.msk [vmem:[%s6001_s8 + $0x120] sm:$0xff] %vm4203_vm7, %v3775_v38  ;;  %v6628_v27 = vmul.u32.u64.low %v2699_v22, %v2698_v10  ;;  %v6629_v7 = vmul.u32.u64.high %v2699_v22, %v2698_v10, %v6628_v27 }
 0x233   : > { %v6631_v36 = vmul.u32.u64.low %v2699_v22, %v2694_v54  ;;  %v6632_v47 = vmul.u32.u64.high %v2699_v22, %v2694_v54, %v6631_v36  ;;  %v3813_v49 = vpop.trf.xlu1  ;;  %v4632_v17 = vadd.s32 4294967294, %v2823_v39  ;;  %v2842_v30 = vsel %vm2757_vm3, %v2841_v41, %v2817_v5 }
 0x234   : > { %4262 = vst.msk [vmem:[%s6001_s8 + $0x1d0] sm:$0xff] %vm4203_vm7, %v3813_v49  ;;  %v1302_v34 = vand.u32 2139095040, %v6580_v35  ;;  %vm1083_vm2 = vcmp.eq.s32.totalorder %v6613_v55, 0  ;;  %vm1086_vm4 = vcmp.eq.s32.totalorder %v6613_v55, 2  ;;  %vm6644_vm5 = vcmp.le.f32.partialorder %v2755_v0, 0.7853982 }
 0x235   : > { %v2690_v46 = vsel %vm2684_vm15, %v2687_v23, %v2689_v50  ;;  %v3776_v40 = vpop.trf.xlu0  ;;  %v2811_v5 = vadd.s32 %v6510_v1, %v6522_v37  ;;  %vm4633_vm6 = vcmp.lt.s32.totalorder %v4632_v17, 0  ;;  %v6657_v16 = vrot.slane %v6457_v14, %v209_v8 }
 0x236   : > { %4241 = vst.msk [vmem:[%s6001_s8 + $0x128] sm:$0xff] %vm4203_vm7, %v3776_v40  ;;  %v1303_v43 = vshrl.u32 %v1302_v34, 23  ;;  %v2826_v19 = vsel %vm4633_vm6, 0, %v4632_v17  ;;  %v2844_v62 = vsel %vm6644_vm5, 0, %v2842_v30  ;;  %vm2708_vm8 = vc.u32 %v6629_v7, %v6631_v36 }
 0x237   : > { %v4899_v0 = vpop.eup %4898  ;;  %v2709_v1 = vadd.s32 1, %v6632_v47  ;;  %v3814_v37 = vpop.trf.xlu1  ;;  %v2827_v3 = vsub.s32 32, %v2826_v19  ;;  %v2831_v20 = vsub.s32 4294967266, %v2826_v19  ;;  %v2706_v60 = vmul.u32 %v2699_v22, %v2690_v46 }
 0x238   : > { %v4901_v51 = vpop.eup %4900  ;;  %v1087_v48 = vxor.u32 2147483648, %v4899_v0  ;;  %4263 = vst.msk [vmem:[%s6001_s8 + $0x1d8] sm:$0xff] %vm4203_vm7, %v3814_v37  ;;  %v1299_v44 = vand.u32 2147483647, %v6580_v35  ;;  %v4574_v41 = vadd.s32 4294967169, %v1303_v43  ;;  %v2828_v56 = vshll.u32 %v6589_v58, %v2826_v19 }
 0x239   : > { %v1084_v8 = vxor.u32 2147483648, %v4901_v51  ;;  %v2710_v29 = vsel %vm2708_vm8, %v2709_v1, %v6632_v47  ;;  %v3777_v42 = vpop.trf.xlu0  ;;  %v2829_v32 = vshrl.u32 %v2811_v5, %v2827_v3  ;;  %v2832_v54 = vadd.s32 127, %v2831_v20 }
 0x23a   : > { %v2711_v10 = vadd.s32 %v2710_v29, %v2706_v60  ;;  %4242 = vst.msk [vmem:[%s6001_s8 + $0x130] sm:$0xff] %vm4203_vm7, %v3777_v42  ;;  %v1088_v22 = vsel %vm1086_vm4, %v1087_v48, %v4901_v51  ;;  %v2848_v38 = vadd.s32 3, %v2844_v62  ;;  %v1309_v23 = vadd.s32 1, %v4574_v41 }
 0x23b   : > { %v3815_v39 = vpop.trf.xlu1  ;;  %v312_v50 = vmul.f32 %v6472_v13, %v5194_v18  ;;  %v1085_v27 = vsel %vm1083_vm2, %v4899_v0, %v1084_v8  ;;  %v2830_v47 = vor.u32 %v2829_v32, %v2828_v56  ;;  %v2833_v58 = vshll.u32 %v2832_v54, 23 }
 0x23c   : > { %v2712_v49 = vadd.s32 536870912, %v2711_v10  ;;  %4264 = vst.msk [vmem:[%s6001_s8 + $0x1e0] sm:$0xff] %vm4203_vm7, %v3815_v39  ;;  %v1306_v30 = vand.u32 8388607, %v1299_v44  ;;  %vm1310_vm10 = vcmp.gt.s32.totalorder %v1309_v23, 0  ;;  %v295_v34 = vmul.f32 %v6657_v16, %v5182_v12 }
 0x23d   : > { %v3778_v17 = vpop.trf.xlu0  ;;  %vm1082_vm9 = vcmp.lt.s32.totalorder %v6613_v55, 2  ;;  %v2834_v13 = vor.u32 4788187, %v2833_v58  ;;  %v1311_v40 = vsel %vm1310_vm10, %v1309_v23, 0  ;;  %vm1079_vm11 = vweird.f32 %v6258_v45 }
 0x23e   : > { %v2713_v46 = vshrl.u32 %v2712_v49, 30  ;;  %4243 = vst.msk [vmem:[%s6001_s8 + $0x138] sm:$0xff] %vm4203_vm7, %v3778_v17  ;;  %v1089_v5 = vsel %vm1082_vm9, %v1085_v27, %v1088_v22  ;;  %v6687_v43 = vand.u32 3, %v2848_v38  ;;  %v1313_v19 = vand.u32 31, %v1311_v40 }
 0x23f   : > { %v3816_v0 = vpop.trf.xlu1  ;;  %v2835_v62 = vand.u32 2147483647, %v2834_v13  ;;  %v2837_v1 = vcvt.s32.f32 %v2830_v47  ;;  %vm2653_vm12 = vcmp.lt.s32.totalorder %v6432_v24, 0  ;;  %v6693_v55 = vadd.f32 %v5203_v26, %v312_v50 }
 0x240   : > { %v2714_v37 = vshll.u32 %v2713_v46, 30  ;;  %4265 = vst.msk [vmem:[%s6001_s8 + $0x1e8] sm:$0xff] %vm4203_vm7, %v3816_v0  ;;  %v6697_v51 = vadd.s32 %v6631_v36, %v6629_v7  ;;  %v1307_v3 = vor.u32 8388608, %v1306_v30  ;;  %v1314_v20 = vsub.s32 32, %v1313_v19 }
 0x241   : > { %v3779_v48 = vpop.trf.xlu0  ;;  %v6700_v60 = vadd.f32 %v5186_v15, %v295_v34  ;;  %v1090_v8 = vsel %vm1079_vm11, nan, %v1089_v5  ;;  %v2838_v29 = vmul.f32 %v2837_v1, %v2835_v62  ;;  %v6708_v41 = vshrl.u32 %v1311_v40, 5 }
 0x242   : > { %v6704_v42 = vsub.s32 %v2711_v10, %v2714_v37  ;;  %4244 = vst.msk [vmem:[%s6001_s8 + $0x140] sm:$0xff] %vm4203_vm7, %v3779_v48  ;;  %v2737_v56 = vsub.s32 4, %v2713_v46  ;;  %v1316_v36 = vshll.u32 %v5045_v53, %v1313_v19  ;;  %v1317_v32 = vshrl.u32 %v5046_v57, %v1314_v20 }
 0x243   : > { %v3817_v7 = vpop.trf.xlu1  ;;  %v1320_v54 = vshrl.u32 %v5047_v59, %v1314_v20  ;;  %v2839_v22 = vxor.u32 2147483648, %v2838_v29  ;;  %v1319_v10 = vshll.u32 %v5046_v57, %v1313_v19  ;;  %v1323_v38 = vshrl.u32 %v5048_v61, %v1314_v20 }
 0x244   : > { %v2717_v45 = vsub.s32 0, %v6704_v42  ;;  %4266 = vst.msk [vmem:[%s6001_s8 + $0x1f0] sm:$0xff] %vm4203_vm7, %v3817_v7  ;;  %v1318_v23 = vor.u32 %v1317_v32, %v1316_v36  ;;  %v1322_v50 = vshll.u32 %v5047_v59, %v1313_v19  ;;  %v1325_v27 = vshll.u32 %v5048_v61, %v1313_v19 }
 0x245   : > { %v3780_v39 = vpop.trf.xlu0  ;;  %v1326_v47 = vshrl.u32 %v5049_v63, %v1314_v20  ;;  %3883 = vxpose.xlu0.b32.start [1/2] (short) %v1090_v8, 128  ;;  %v2840_v58 = vsel %vm2757_vm3, %v2839_v22, %v2838_v29  ;;  %v1321_v17 = vor.u32 %v1320_v54, %v1319_v10  ;;  %v1328_v30 = vshll.u32 %v5049_v63, %v1313_v19 }
 0x246   : > { %v4627_v49 = vmin.u32 %v2717_v45, %v6704_v42  ;;  %4245 = vst.msk [vmem:[%s6001_s8 + $0x148] sm:$0xff] %vm4203_vm7, %v3780_v39  ;;  %v2843_v34 = vsel %vm6644_vm5, %v6338_v21, %v2840_v58  ;;  %v1324_v13 = vor.u32 %v1323_v38, %v1322_v50  ;;  %v1329_v5 = vshrl.u32 %v5050_v9, %v1314_v20 }
 0x247   : > { %v1327_v40 = vor.u32 %v1326_v47, %v1325_v27  ;;  %v3818_v0 = vpop.trf.xlu1  ;;  %4902 = vcosq.f32 %v2843_v34  ;;  %v6731_v1 = vshll.u32 %v1307_v3, 8  ;;  %v1198_v37 = vand.u32 2139095040, %v6700_v60 }
 0x248   : > { %v2719_v62 = vclz %v4627_v49  ;;  %4267 = vst.msk [vmem:[%s6001_s8 + $0x1f8] sm:$0xff] %vm4203_vm7, %v3818_v0  ;;  %4904 = vsinq.f32 %v2843_v34  ;;  %vm6738_vm13 = vcmp.le.f32.partialorder %v2651_v2, 0.7853982  ;;  %v2738_v19 = vsel %vm2653_vm12, %v2737_v56, %v2713_v46 }
 0x249   : > { %v3781_v48 = vpop.trf.xlu0  ;;  %v1315_v8 = vshrl.u32 %v5045_v53, %v1314_v20  ;;  %v1330_v29 = vor.u32 %v1329_v5, %v1328_v30  ;;  %vm1331_vm14 = vcmp.lt.s32.totalorder %v6708_v41, 1  ;;  %vm1333_vm15 = vcmp.lt.s32.totalorder %v6708_v41, 3 }
 0x24a   : > { %v4628_v3 = vadd.s32 4294967294, %v2719_v62  ;;  %4246 = vst.msk [vmem:[%s6001_s8 + $0x150] sm:$0xff] %vm4203_vm7, %v3781_v48  ;;  %vm1334_vm0 = vcmp.lt.s32.totalorder %v6708_v41, 4  ;;  %v1339_v7 = vsel %vm1331_vm14, %v1318_v23, %v1321_v17  ;;  %v1343_v32 = vsel %vm1331_vm14, %v1321_v17, %v1324_v13 }
 0x24b   : > { %v1336_v2 = vsel %vm1334_vm0, %v1324_v13, 2102212464  ;;  %v1340_v36 = vsel %vm1334_vm0, %v1327_v40, 920167782  ;;  %vm1332_vm3 = vcmp.lt.s32.totalorder %v6708_v41, 2  ;;  %v1335_v22 = vsel %vm1331_vm14, %v1315_v8, %v1318_v23 }
 0x24c   : > { %vm4629_vm1 = vcmp.lt.s32.totalorder %v4628_v3, 0  ;;  %v1341_v46 = vsel %vm1333_vm15, %v1324_v13, %v1340_v36  ;;  %v1344_v20 = vsel %vm1334_vm0, %v1330_v29, 1326507024  ;;  %vm2850_vm2 = vcmp.lt.s32.totalorder %v6687_v43, 2 }
 0x24d   : > { %v2722_v56 = vsel %vm4629_vm1, 0, %v4628_v3  ;;  %v3782_v54 = vpop.trf.xlu0  ;;  %v1342_v45 = vsel %vm1332_vm3, %v1339_v7, %v1341_v46  ;;  %v1345_v10 = vsel %vm1333_vm15, %v1327_v40, %v1344_v20  ;;  %v1337_v50 = vsel %vm1333_vm15, %v1321_v17, %v1336_v2 }
 0x24e   : > { %v2723_v38 = vsub.s32 32, %v2722_v56  ;;  %v2727_v39 = vsub.s32 4294967266, %v2722_v56  ;;  %4247 = vst.msk [vmem:[%s6001_s8 + $0x158] sm:$0xff] %vm4203_vm7, %v3782_v54  ;;  %v1346_v27 = vsel %vm1332_vm3, %v1343_v32, %v1345_v10  ;;  %vm2847_vm4 = vweird.f32 %v6338_v21 }
 0x24f   : > { %v6766_v23 = vmul.u32.u64.low %v6731_v1, %v1346_v27  ;;  %v6767_v47 = vmul.u32.u64.high %v6731_v1, %v1346_v27, %v6766_v23  ;;  %v6770_v58 = vmul.u32.u64.low %v6731_v1, %v1342_v45  ;;  %v6771_v49 = vmul.u32.u64.high %v6731_v1, %v1342_v45, %v6770_v58 }
 0x250   : > { %v2724_v30 = vshll.u32 %v6704_v42, %v2722_v56  ;;  %v2725_v34 = vshrl.u32 %v6697_v51, %v2723_v38  ;;  %v2728_v13 = vadd.s32 127, %v2727_v39  ;;  %v1199_v17 = vshrl.u32 %v1198_v37, 23 }
 0x251   : > { %vm2851_vm5 = vcmp.eq.s32.totalorder %v6687_v43, 0  ;;  %vm2854_vm6 = vcmp.eq.s32.totalorder %v6687_v43, 2  ;;  %v3783_v40 = vpop.trf.xlu0  ;;  %v1338_v5 = vsel %vm1332_vm3, %v1335_v22, %v1337_v50  ;;  %v1195_v0 = vand.u32 2147483647, %v6700_v60  ;;  %v4903_v62 = vpop.eup %4902 }
 0x252   : > { %v2726_v48 = vor.u32 %v2725_v34, %v2724_v30  ;;  %v2729_v8 = vshll.u32 %v2728_v13, 23  ;;  %v2740_v42 = vsel %vm6738_vm13, 0, %v2738_v19  ;;  %4248 = vst.msk [vmem:[%s6001_s8 + $0x160] sm:$0xff] %vm4203_vm7, %v3783_v40  ;;  %v4570_v51 = vadd.s32 4294967169, %v1199_v17  ;;  %v4905_v37 = vpop.eup %4904 }
 0x253   : > { %v2855_v29 = vxor.u32 2147483648, %v4903_v62  ;;  %vm1356_vm8 = vc.u32 %v6767_v47, %v6770_v58  ;;  %v1357_v3 = vadd.s32 1, %v6771_v49  ;;  %v2966_v41 = vand.u32 2139095040, %v6693_v55 }
 0x254   : > { %v2852_v2 = vxor.u32 2147483648, %v4905_v37  ;;  %v2730_v7 = vor.u32 4788187, %v2729_v8  ;;  %v1354_v36 = vmul.u32 %v6731_v1, %v1338_v5  ;;  %v1205_v32 = vadd.s32 1, %v4570_v51 }
 0x255   : > { %v2856_v19 = vsel %vm2854_vm6, %v2855_v29, %v4905_v37  ;;  %v2733_v46 = vcvt.s32.f32 %v2726_v48  ;;  %v2744_v20 = vadd.s32 3, %v2740_v42  ;;  %v3784_v56 = vpop.trf.xlu0  ;;  %v1358_v54 = vsel %vm1356_vm8, %v1357_v3, %v6771_v49 }
 0x256   : > { %v2853_v22 = vsel %vm2851_vm5, %v4903_v62, %v2852_v2  ;;  %v2731_v45 = vand.u32 2147483647, %v2730_v7  ;;  %4249 = vst.msk [vmem:[%s6001_s8 + $0x168] sm:$0xff] %vm4203_vm7, %v3784_v56  ;;  %v1359_v10 = vadd.s32 %v1358_v54, %v1354_v36  ;;  %vm1206_vm10 = vcmp.gt.s32.totalorder %v1205_v32, 0 }
 0x257   : > { %v2857_v1 = vsel %vm2850_vm2, %v2853_v22, %v2856_v19  ;;  %v1202_v38 = vand.u32 8388607, %v1195_v0  ;;  %v1207_v39 = vsel %vm1206_vm10, %v1205_v32, 0  ;;  %v2967_v50 = vshrl.u32 %v2966_v41, 23 }
 0x258   : > { %v2858_v27 = vsel %vm2847_vm4, nan, %v2857_v1  ;;  %v2734_v23 = vmul.f32 %v2733_v46, %v2731_v45  ;;  %v1360_v49 = vadd.s32 536870912, %v1359_v10  ;;  %v1209_v34 = vand.u32 31, %v1207_v39 }
 0x259   : > { %3916 = vxpose.xlu1.b32.end [2/2] (short) %v2858_v27, 128  ;;  %v3785_v30 = vpop.trf.xlu0  ;;  %v6803_v13 = vmul.f32 %v6657_v16, %v5194_v18  ;;  %v6805_v17 = vand.u32 3, %v2744_v20  ;;  %vm1301_vm9 = vcmp.lt.s32.totalorder %v6580_v35, 0  ;;  %v2963_v21 = vand.u32 2147483647, %v6693_v55 }
 0x25a   : > { %v2735_v43 = vxor.u32 2147483648, %v2734_v23  ;;  %v1361_v40 = vshrl.u32 %v1360_v49, 30  ;;  %4250 = vst.msk [vmem:[%s6001_s8 + $0x170] sm:$0xff] %vm4203_vm7, %v3785_v30  ;;  %v6812_v5 = vadd.s32 %v6770_v58, %v6767_v47  ;;  %v1203_v62 = vor.u32 8388608, %v1202_v38 }
 0x25b   : > { %v1210_v48 = vsub.s32 32, %v1209_v34  ;;  %v4638_v8 = vadd.s32 4294967169, %v2967_v50  ;;  %v6816_v51 = vshrl.u32 %v1207_v39, 5  ;;  %v1212_v37 = vshll.u32 %v5045_v53, %v1209_v34 }
 0x25c   : > { %v2736_v16 = vsel %vm2653_vm12, %v2735_v43, %v2734_v23  ;;  %v1362_v42 = vshll.u32 %v1361_v40, 30  ;;  %vm6824_vm11 = vcmp.le.f32.partialorder %v1299_v44, 0.7853982  ;;  %v1215_v3 = vshll.u32 %v5046_v57, %v1209_v34 }
 0x25d   : > { %v2739_v29 = vsel %vm6738_vm13, %v6432_v24, %v2736_v16  ;;  %v1213_v58 = vshrl.u32 %v5046_v57, %v1210_v48  ;;  %v1216_v41 = vshrl.u32 %v5047_v59, %v1210_v48  ;;  %v3786_v2 = vpop.trf.xlu0  ;;  %v1218_v36 = vshll.u32 %v5047_v59, %v1209_v34 }
 0x25e   : > { %4906 = vcosq.f32 %v2739_v29  ;;  %v6831_v7 = vsub.s32 %v1359_v10, %v1362_v42  ;;  %v1219_v11 = vshrl.u32 %v5048_v61, %v1210_v48  ;;  %4251 = vst.msk [vmem:[%s6001_s8 + $0x178] sm:$0xff] %vm4203_vm7, %v3786_v2  ;;  %v1385_v44 = vsub.s32 4, %v1361_v40 }
 0x25f   : > { %4908 = vsinq.f32 %v2739_v29  ;;  %v1214_v32 = vor.u32 %v1213_v58, %v1212_v37  ;;  %v1221_v19 = vshll.u32 %v5048_v61, %v1209_v34  ;;  %v1217_v20 = vor.u32 %v1216_v41, %v1215_v3 }
 0x260   : > { %v1365_v46 = vsub.s32 0, %v6831_v7  ;;  %v1220_v56 = vor.u32 %v1219_v11, %v1218_v36  ;;  %v1222_v54 = vshrl.u32 %v5049_v63, %v1210_v48  ;;  %v1224_v22 = vshll.u32 %v5049_v63, %v1209_v34 }
 0x261   : > { %v1225_v45 = vshrl.u32 %v5050_v9, %v1210_v48  ;;  %v6842_v10 = vshll.u32 %v1203_v62, 8  ;;  %v2973_v1 = vadd.s32 1, %v4638_v8  ;;  %vm2750_vm12 = vcmp.eq.s32.totalorder %v6805_v17, 2 }
 0x262   : > { %v4575_v38 = vmin.u32 %v1365_v46, %v6831_v7  ;;  %v1223_v39 = vor.u32 %v1222_v54, %v1221_v19  ;;  %vm1227_vm13 = vcmp.lt.s32.totalorder %v6816_v51, 1  ;;  %vm1228_vm14 = vcmp.lt.s32.totalorder %v6816_v51, 2 }
 0x263   : > { %vm2747_vm15 = vcmp.eq.s32.totalorder %v6805_v17, 0  ;;  %v1386_v50 = vsel %vm1301_vm9, %v1385_v44, %v1361_v40  ;;  %v1211_v27 = vshrl.u32 %v5045_v53, %v1210_v48  ;;  %v1226_v23 = vor.u32 %v1225_v45, %v1224_v22 }
 0x264   : > { %vm1230_vm0 = vcmp.lt.s32.totalorder %v6816_v51, 4  ;;  %vm2746_vm1 = vcmp.lt.s32.totalorder %v6805_v17, 2  ;;  %v1367_v49 = vclz %v4575_v38  ;;  %v1235_v34 = vsel %vm1227_vm13, %v1214_v32, %v1217_v20 }
 0x265   : > { %v1232_v30 = vsel %vm1230_vm0, %v1220_v56, 2102212464  ;;  %v1239_v43 = vsel %vm1227_vm13, %v1217_v20, %v1220_v56  ;;  %vm2743_vm3 = vweird.f32 %v6432_v24  ;;  %vm1229_vm2 = vcmp.lt.s32.totalorder %v6816_v51, 3 }
 0x266   : > { %v1236_v40 = vsel %vm1230_vm0, %v1223_v39, 920167782  ;;  %v1240_v62 = vsel %vm1230_vm0, %v1226_v23, 1326507024  ;;  %vm2974_vm4 = vcmp.gt.s32.totalorder %v2973_v1, 0  ;;  %v4576_v48 = vadd.s32 4294967294, %v1367_v49 }
 0x267   : > { %v1388_v8 = vsel %vm6824_vm11, 0, %v1386_v50  ;;  %v1237_v16 = vsel %vm1229_vm2, %v1220_v56, %v1236_v40  ;;  %v1241_v42 = vsel %vm1229_vm2, %v1223_v39, %v1240_v62  ;;  %v1231_v37 = vsel %vm1227_vm13, %v1211_v27, %v1214_v32 }
 0x268   : > { %v1233_v29 = vsel %vm1229_vm2, %v1217_v20, %v1232_v30  ;;  %v1238_v58 = vsel %vm1228_vm14, %v1235_v34, %v1237_v16  ;;  %v1242_v3 = vsel %vm1228_vm14, %v1239_v43, %v1241_v42  ;;  %v4907_v41 = vpop.eup %4906  ;;  %vm4577_vm5 = vcmp.lt.s32.totalorder %v4576_v48, 0 }
 0x269   : > { %v6869_v2 = vmul.u32.u64.low %v6842_v10, %v1242_v3  ;;  %v6870_v36 = vmul.u32.u64.high %v6842_v10, %v1242_v3, %v6869_v2  ;;  %v2975_v11 = vsel %vm2974_vm4, %v2973_v1, 0  ;;  %v4909_v44 = vpop.eup %4908  ;;  %v2751_v19 = vxor.u32 2147483648, %v4907_v41 }
 0x26a   : > { %v1370_v46 = vsel %vm4577_vm5, 0, %v4576_v48  ;;  %v6873_v56 = vmul.u32.u64.low %v6842_v10, %v1238_v58  ;;  %v6874_v32 = vmul.u32.u64.high %v6842_v10, %v1238_v58, %v6873_v56  ;;  %v2748_v20 = vxor.u32 2147483648, %v4909_v44 }
 0x26b   : > { %v1371_v54 = vsub.s32 32, %v1370_v46  ;;  %v1375_v22 = vsub.s32 4294967266, %v1370_v46  ;;  %v6879_v45 = vand.u32 8388607, %v2963_v21  ;;  %v2752_v38 = vsel %vm2750_vm12, %v2751_v19, %v4909_v44 }
 0x26c   : > { %v1392_v39 = vadd.s32 3, %v1388_v8  ;;  %v1234_v1 = vsel %vm1228_vm14, %v1231_v37, %v1233_v29  ;;  %v2977_v50 = vand.u32 31, %v2975_v11  ;;  %v2749_v27 = vsel %vm2747_vm15, %v4907_v41, %v2748_v20 }
 0x26d   : > { %v1372_v23 = vshll.u32 %v6831_v7, %v1370_v46  ;;  %v1373_v49 = vshrl.u32 %v6812_v5, %v1371_v54  ;;  %v1376_v30 = vadd.s32 127, %v1375_v22  ;;  %v2753_v34 = vsel %vm2746_vm1, %v2749_v27, %v2752_v38 }
 0x26e   : > { %vm1252_vm6 = vc.u32 %v6870_v36, %v6873_v56  ;;  %v1253_v43 = vadd.s32 1, %v6874_v32  ;;  %v2978_v40 = vsub.s32 32, %v2977_v50  ;;  %v2754_v51 = vsel %vm2743_vm3, nan, %v2753_v34 }
 0x26f   : > { %v1374_v62 = vor.u32 %v1373_v49, %v1372_v23  ;;  %v1377_v48 = vshll.u32 %v1376_v30, 23  ;;  %v1250_v8 = vmul.u32 %v6842_v10, %v1234_v1  ;;  %3884 = vxpose.xlu0.b32.end [2/2] (short) %v2754_v51, 128  ;;  %v6898_v7 = vshrl.u32 %v2975_v11, 5 }
 0x270   : > { %v1254_v5 = vsel %vm1252_vm6, %v1253_v43, %v6874_v32  ;;  %v2980_v17 = vshll.u32 %v5045_v53, %v2977_v50  ;;  %v2981_v16 = vshrl.u32 %v5046_v57, %v2978_v40  ;;  %v2983_v29 = vshll.u32 %v5046_v57, %v2977_v50  ;;  %v3867_v2 = vpop.trf.xlu1 }
 0x271   : > { %v1378_v42 = vor.u32 4788187, %v1377_v48  ;;  %v1255_v37 = vadd.s32 %v1254_v5, %v1250_v8  ;;  %v2984_v24 = vshrl.u32 %v5047_v59, %v2978_v40  ;;  %v1381_v58 = vcvt.s32.f32 %v1374_v62  ;;  %4284 = vst.msk [vmem:[%s6001_s8 + $0x280] sm:$0xff] %vm4203_vm7, %v3867_v2 }
 0x272   : > { %v2982_v3 = vor.u32 %v2981_v16, %v2980_v17  ;;  %v2986_v10 = vshll.u32 %v5047_v59, %v2977_v50  ;;  %v2987_v41 = vshrl.u32 %v5048_v61, %v2978_v40  ;;  %v2989_v19 = vshll.u32 %v5048_v61, %v2977_v50 }
 0x273   : > { %v1379_v11 = vand.u32 2147483647, %v1378_v42  ;;  %v1256_v44 = vadd.s32 536870912, %v1255_v37  ;;  %v2990_v46 = vshrl.u32 %v5049_v63, %v2978_v40  ;;  %v2985_v32 = vor.u32 %v2984_v24, %v2983_v29 }
 0x274   : > { %v2988_v20 = vor.u32 %v2987_v41, %v2986_v10  ;;  %v2992_v54 = vshll.u32 %v5049_v63, %v2977_v50  ;;  %v2993_v22 = vshrl.u32 %v5050_v9, %v2978_v40  ;;  %v6915_v23 = vrot.slane %v6457_v14, %v221_v31  ;;  %v3868_v43 = vpop.trf.xlu1 }
 0x275   : > { %v1382_v38 = vmul.f32 %v1381_v58, %v1379_v11  ;;  %v1257_v1 = vshrl.u32 %v1256_v44, 30  ;;  %v2991_v27 = vor.u32 %v2990_v46, %v2989_v19  ;;  %v6917_v49 = vand.u32 3, %v1392_v39  ;;  %4285 = vst.msk [vmem:[%s6001_s8 + $0x288] sm:$0xff] %vm4203_vm7, %v3868_v43 }
 0x276   : > { %v2971_v30 = vor.u32 8388608, %v6879_v45  ;;  %v2994_v34 = vor.u32 %v2993_v22, %v2992_v54  ;;  %vm2995_vm8 = vcmp.lt.s32.totalorder %v6898_v7, 1  ;;  %vm2997_vm10 = vcmp.lt.s32.totalorder %v6898_v7, 3 }
 0x277   : > { %v1383_v51 = vxor.u32 2147483648, %v1382_v38  ;;  %v1258_v50 = vshll.u32 %v1257_v1, 30  ;;  %vm2998_vm12 = vcmp.lt.s32.totalorder %v6898_v7, 4  ;;  %v3003_v31 = vsel %vm2995_vm8, %v2982_v3, %v2985_v32 }
 0x278   : > { %v3004_v14 = vsel %vm2998_vm12, %v2991_v27, 920167782  ;;  %v3007_v45 = vsel %vm2995_vm8, %v2985_v32, %v2988_v20  ;;  %v3008_v39 = vsel %vm2998_vm12, %v2994_v34, 1326507024  ;;  %vm2996_vm13 = vcmp.lt.s32.totalorder %v6898_v7, 2  ;;  %v3869_v29 = vpop.trf.xlu1 }
 0x279   : > { %v1384_v62 = vsel %vm1301_vm9, %v1383_v51, %v1382_v38  ;;  %v6931_v48 = vsub.s32 %v1255_v37, %v1258_v50  ;;  %v3005_v8 = vsel %vm2997_vm10, %v2988_v20, %v3004_v14  ;;  %v2979_v17 = vshrl.u32 %v5045_v53, %v2978_v40  ;;  %4286 = vst.msk [vmem:[%s6001_s8 + $0x290] sm:$0xff] %vm4203_vm7, %v3869_v29 }
 0x27a   : > { %v1387_v5 = vsel %vm6824_vm11, %v6580_v35, %v1384_v62  ;;  %v3000_v16 = vsel %vm2998_vm12, %v2988_v20, 2102212464  ;;  %v3009_v42 = vsel %vm2997_vm10, %v2991_v27, %v3008_v39  ;;  %v3006_v24 = vsel %vm2996_vm13, %v3003_v31, %v3005_v8 }
 0x27b   : > { %4910 = vcosq.f32 %v1387_v5  ;;  %v1261_v37 = vsub.s32 0, %v6931_v48  ;;  %v3010_v58 = vsel %vm2996_vm13, %v3007_v45, %v3009_v42  ;;  %v2999_v47 = vsel %vm2995_vm8, %v2979_v17, %v2982_v3 }
 0x27c   : > { %4912 = vsinq.f32 %v1387_v5  ;;  %v3011_v40 = vshll.u32 %v2971_v30, 8  ;;  %v6953_v10 = vadd.f32 %v5203_v26, %v6803_v13  ;;  %v1281_v2 = vsub.s32 4, %v1257_v1  ;;  %v3870_v3 = vpop.trf.xlu1 }
 0x27d   : > { %v4571_v41 = vmin.u32 %v1261_v37, %v6931_v48  ;;  %v3001_v11 = vsel %vm2997_vm10, %v2985_v32, %v3000_v16  ;;  %v298_v44 = vmul.f32 %v6915_v23, %v5182_v12  ;;  %4287 = vst.msk [vmem:[%s6001_s8 + $0x298] sm:$0xff] %vm4203_vm7, %v3870_v3  ;;  %vm1197_vm9 = vcmp.lt.s32.totalorder %v6700_v60, 0 }
 0x27e   : > { %v6960_v19 = vmul.u32.u64.low %v3011_v40, %v3010_v58  ;;  %v6961_v46 = vmul.u32.u64.high %v3011_v40, %v3010_v58, %v6960_v19  ;;  %v6963_v20 = vmul.u32.u64.low %v3011_v40, %v3006_v24  ;;  %v6964_v54 = vmul.u32.u64.high %v3011_v40, %v3006_v24, %v6963_v20 }
 0x27f   : > { %v1263_v22 = vclz %v4571_v41  ;;  %v3002_v13 = vsel %vm2996_vm13, %v2999_v47, %v3001_v11  ;;  %v2862_v32 = vand.u32 2139095040, %v6953_v10  ;;  %vm1395_vm11 = vcmp.eq.s32.totalorder %v6917_v49, 0 }
 0x280   : > { %vm6976_vm14 = vcmp.le.f32.partialorder %v1195_v0, 0.7853982  ;;  %v6981_v30 = vadd.f32 %v5186_v15, %v298_v44  ;;  %v1282_v34 = vsel %vm1197_vm9, %v1281_v2, %v1257_v1  ;;  %vm3020_vm15 = vc.u32 %v6961_v46, %v6963_v20  ;;  %v3871_v51 = vpop.trf.xlu1 }
 0x281   : > { %v4572_v27 = vadd.s32 4294967294, %v1263_v22  ;;  %v3021_v7 = vadd.s32 1, %v6964_v54  ;;  %v2859_v43 = vand.u32 2147483647, %v6953_v10  ;;  %vm1398_vm0 = vcmp.eq.s32.totalorder %v6917_v49, 2  ;;  %4288 = vst.msk [vmem:[%s6001_s8 + $0x2a0] sm:$0xff] %vm4203_vm7, %v3871_v51 }
 0x282   : > { %v3018_v0 = vmul.u32 %v3011_v40, %v3002_v13  ;;  %v2863_v50 = vshrl.u32 %v2862_v32, 23  ;;  %v1251_v31 = vadd.s32 %v6873_v56, %v6870_v36  ;;  %v1510_v45 = vand.u32 2139095040, %v6981_v30 }
 0x283   : > { %vm4573_vm1 = vcmp.lt.s32.totalorder %v4572_v27, 0  ;;  %v3022_v1 = vsel %vm3020_vm15, %v3021_v7, %v6964_v54  ;;  %v1284_v5 = vsel %vm6976_vm14, 0, %v1282_v34  ;;  %v2866_v36 = vand.u32 8388607, %v2859_v43 }
 0x284   : > { %v1266_v14 = vsel %vm4573_vm1, 0, %v4572_v27  ;;  %v3023_v17 = vadd.s32 %v3022_v1, %v3018_v0  ;;  %v4634_v37 = vadd.s32 4294967169, %v2863_v50  ;;  %v3872_v56 = vpop.trf.xlu1  ;;  %vm1391_vm3 = vweird.f32 %v6580_v35  ;;  %v7011_v27 = vld [vmem:[%s5155_s25 + $0x8] sm:$0xff] }
 0x285   : > { %v4911_v39 = vpop.eup %4910  ;;  %v1267_v62 = vsub.s32 32, %v1266_v14  ;;  %v1271_v8 = vsub.s32 4294967266, %v1266_v14  ;;  %v1268_v29 = vshll.u32 %v6931_v48, %v1266_v14  ;;  %4289 = vst.msk [vmem:[%s6001_s8 + $0x2a8] sm:$0xff] %vm4203_vm7, %v3872_v56  ;;  %v1507_v48 = vand.u32 2147483647, %v6981_v30 }
 0x286   : > { %v4913_v16 = vpop.eup %4912  ;;  %v1399_v42 = vxor.u32 2147483648, %v4911_v39  ;;  %v3024_v40 = vadd.s32 536870912, %v3023_v17  ;;  %v2869_v2 = vadd.s32 1, %v4634_v37  ;;  %v1511_v11 = vshrl.u32 %v1510_v45, 23 }
 0x287   : > { %v1396_v24 = vxor.u32 2147483648, %v4913_v16  ;;  %v1269_v58 = vshrl.u32 %v1251_v31, %v1267_v62  ;;  %v1272_v47 = vadd.s32 127, %v1271_v8  ;;  %vm1394_vm2 = vcmp.lt.s32.totalorder %v6917_v49, 2 }
 0x288   : > { %v1400_v41 = vsel %vm1398_vm0, %v1399_v42, %v4913_v16  ;;  %v3025_v3 = vshrl.u32 %v3024_v40, 30  ;;  %v1288_v22 = vadd.s32 3, %v1284_v5  ;;  %vm2870_vm4 = vcmp.gt.s32.totalorder %v2869_v2, 0  ;;  %v3835_v13 = vpop.trf.xlu0  ;;  %v3873_v32 = vpop.trf.xlu1 }
 0x289   : > { %v1397_v44 = vsel %vm1395_vm11, %v4911_v39, %v1396_v24  ;;  %v1270_v19 = vor.u32 %v1269_v58, %v1268_v29  ;;  %v1273_v54 = vshll.u32 %v1272_v47, 23  ;;  %v7016_v34 = vrot.slane %v7011_v27, %v217_v33  ;;  %4268 = vst.msk [vmem:[%s6001_s8 + $0x200] sm:$0xff] %vm4203_vm7, %v3835_v13  ;;  %4290 = vst.msk [vmem:[%s6001_s8 + $0x2b0] sm:$0xff] %vm4203_vm7, %v3873_v32 }
 0x28a   : > { %v1401_v7 = vsel %vm1394_vm2, %v1397_v44, %v1400_v41  ;;  %v3026_v0 = vshll.u32 %v3025_v3, 30  ;;  %v2867_v50 = vor.u32 8388608, %v2866_v36  ;;  %v2871_v31 = vsel %vm2870_vm4, %v2869_v2, 0 }
 0x28b   : > { %v1274_v51 = vor.u32 4788187, %v1273_v54  ;;  %v1277_v49 = vcvt.s32.f32 %v1270_v19  ;;  %v4582_v14 = vadd.s32 4294967169, %v1511_v11  ;;  %v7024_v1 = vand.u32 8388607, %v1507_v48 }
 0x28c   : > { %v7026_v33 = vsub.s32 %v3023_v17, %v3026_v0  ;;  %v3049_v39 = vsub.s32 4, %v3025_v3  ;;  %v2873_v62 = vand.u32 31, %v2871_v31  ;;  %v7028_v8 = vand.u32 3, %v1288_v22  ;;  %v3836_v16 = vpop.trf.xlu0  ;;  %v3874_v42 = vpop.trf.xlu1 }
 0x28d   : > { %v1275_v45 = vand.u32 2147483647, %v1274_v51  ;;  %vm2965_vm5 = vcmp.lt.s32.totalorder %v6693_v55, 0  ;;  %v7033_v5 = vadd.s32 %v6963_v20, %v6961_v46  ;;  %v7037_v29 = vmul.f32 %v7016_v34, %v5182_v12  ;;  %4269 = vst.msk [vmem:[%s6001_s8 + $0x208] sm:$0xff] %vm4203_vm7, %v3836_v16  ;;  %4291 = vst.msk [vmem:[%s6001_s8 + $0x2b8] sm:$0xff] %vm4203_vm7, %v3874_v42 }
 0x28e   : > { %v3029_v17 = vsub.s32 0, %v7026_v33  ;;  %v2874_v36 = vsub.s32 32, %v2873_v62  ;;  %v7040_v56 = vshll.u32 %v2867_v50, 8  ;;  %v1402_v46 = vsel %vm1391_vm3, nan, %v1401_v7 }
 0x28f   : > { %v1278_v37 = vmul.f32 %v1277_v49, %v1275_v45  ;;  %v7048_v20 = vshrl.u32 %v2871_v31, 5  ;;  %v1515_v24 = vor.u32 8388608, %v7024_v1  ;;  %v7051_v58 = vadd.s32 1, %v4582_v14 }
 0x290   : > { %v4639_v40 = vmin.u32 %v3029_v17, %v7026_v33  ;;  %v7056_v41 = vsel %vm2965_vm5, %v3049_v39, %v3025_v3  ;;  %v2877_v2 = vshrl.u32 %v5046_v57, %v2874_v36  ;;  %v2876_v35 = vshll.u32 %v5045_v53, %v2873_v62  ;;  %v3837_v54 = vpop.trf.xlu0  ;;  %v3875_v22 = vpop.trf.xlu1 }
 0x291   : > { %v1279_v47 = vxor.u32 2147483648, %v1278_v37  ;;  %v2879_v11 = vshll.u32 %v5046_v57, %v2873_v62  ;;  %v2880_v44 = vshrl.u32 %v5047_v59, %v2874_v36  ;;  %v2883_v19 = vshrl.u32 %v5048_v61, %v2874_v36  ;;  %4270 = vst.msk [vmem:[%s6001_s8 + $0x210] sm:$0xff] %vm4203_vm7, %v3837_v54  ;;  %4292 = vst.msk [vmem:[%s6001_s8 + $0x2c0] sm:$0xff] %vm4203_vm7, %v3875_v22 }
 0x292   : > { %3979 = vxpose.xlu1.b32.start [1/2] (short) %v1402_v46, 128  ;;  %vm7067_vm6 = vcmp.le.f32.partialorder %v2963_v21, 0.7853982  ;;  %v3031_v32 = vclz %v4639_v40  ;;  %v2882_v7 = vshll.u32 %v5047_v59, %v2873_v62  ;;  %v2886_v51 = vshrl.u32 %v5049_v63, %v2874_v36 }
 0x293   : > { %v1280_v13 = vsel %vm1197_vm9, %v1279_v47, %v1278_v37  ;;  %v2878_v50 = vor.u32 %v2877_v2, %v2876_v35  ;;  %v2885_v49 = vshll.u32 %v5048_v61, %v2873_v62  ;;  %vm1518_vm8 = vcmp.gt.s32.totalorder %v7051_v58, 0 }
 0x294   : > { %v1283_v0 = vsel %vm6976_vm14, %v6700_v60, %v1280_v13  ;;  %v4640_v21 = vadd.s32 4294967294, %v3031_v32  ;;  %v2881_v31 = vor.u32 %v2880_v44, %v2879_v11  ;;  %v2884_v14 = vor.u32 %v2883_v19, %v2882_v7  ;;  %v3838_v42 = vpop.trf.xlu0  ;;  %v3876_v38 = vpop.trf.xlu1 }
 0x295   : > { %4914 = vcosq.f32 %v1283_v0  ;;  %v2887_v45 = vor.u32 %v2886_v51, %v2885_v49  ;;  %v2888_v39 = vshll.u32 %v5049_v63, %v2873_v62  ;;  %v2889_v16 = vshrl.u32 %v5050_v9, %v2874_v36  ;;  %4271 = vst.msk [vmem:[%s6001_s8 + $0x218] sm:$0xff] %vm4203_vm7, %v3838_v42  ;;  %4293 = vst.msk [vmem:[%s6001_s8 + $0x2c8] sm:$0xff] %vm4203_vm7, %v3876_v38 }
 0x296   : > { %4916 = vsinq.f32 %v1283_v0  ;;  %vm4641_vm10 = vcmp.lt.s32.totalorder %v4640_v21, 0  ;;  %v2875_v37 = vshrl.u32 %v5045_v53, %v2874_v36  ;;  %vm2891_vm12 = vcmp.lt.s32.totalorder %v7048_v20, 1 }
 0x297   : > { %vm2892_vm13 = vcmp.lt.s32.totalorder %v7048_v20, 2  ;;  %v3034_v17 = vsel %vm4641_vm10, 0, %v4640_v21  ;;  %v2890_v46 = vor.u32 %v2889_v16, %v2888_v39  ;;  %vm2893_vm9 = vcmp.lt.s32.totalorder %v7048_v20, 3 }
 0x298   : > { %vm2894_vm11 = vcmp.lt.s32.totalorder %v7048_v20, 4  ;;  %vm1294_vm14 = vcmp.eq.s32.totalorder %v7028_v8, 2  ;;  %v3035_v62 = vsub.s32 32, %v3034_v17  ;;  %v3039_v47 = vsub.s32 4294967266, %v3034_v17  ;;  %v3839_v19 = vpop.trf.xlu0  ;;  %v3877_v54 = vpop.trf.xlu1 }
 0x299   : > { %v2895_v36 = vsel %vm2891_vm12, %v2875_v37, %v2878_v50  ;;  %v2896_v40 = vsel %vm2894_vm11, %v2884_v14, 2102212464  ;;  %vm1291_vm15 = vcmp.eq.s32.totalorder %v7028_v8, 0  ;;  %v3036_v2 = vshll.u32 %v7026_v33, %v3034_v17  ;;  %4272 = vst.msk [vmem:[%s6001_s8 + $0x220] sm:$0xff] %vm4203_vm7, %v3839_v19  ;;  %4294 = vst.msk [vmem:[%s6001_s8 + $0x2d0] sm:$0xff] %vm4203_vm7, %v3877_v54 }
 0x29a   : > { %v2897_v35 = vsel %vm2893_vm9, %v2881_v31, %v2896_v40  ;;  %v2899_v11 = vsel %vm2891_vm12, %v2878_v50, %v2881_v31  ;;  %v2900_v44 = vsel %vm2894_vm11, %v2887_v45, 920167782  ;;  %vm1290_vm0 = vcmp.lt.s32.totalorder %v7028_v8, 2 }
 0x29b   : > { %v3037_v22 = vshrl.u32 %v7033_v5, %v3035_v62  ;;  %v3040_v13 = vadd.s32 127, %v3039_v47  ;;  %v2901_v32 = vsel %vm2893_vm9, %v2884_v14, %v2900_v44  ;;  %v2903_v33 = vsel %vm2891_vm12, %v2881_v31, %v2884_v14 }
 0x29c   : > { %v3052_v7 = vsel %vm7067_vm6, 0, %v7056_v41  ;;  %v2902_v51 = vsel %vm2892_vm13, %v2899_v11, %v2901_v32  ;;  %v2904_v5 = vsel %vm2894_vm11, %v2890_v46, 1326507024  ;;  %v1519_v0 = vsel %vm1518_vm8, %v7051_v58, 0  ;;  %v3840_v16 = vpop.trf.xlu0  ;;  %v3878_v42 = vpop.trf.xlu1 }
 0x29d   : > { %v3038_v50 = vor.u32 %v3037_v22, %v3036_v2  ;;  %v3041_v49 = vshll.u32 %v3040_v13, 23  ;;  %v2898_v21 = vsel %vm2892_vm13, %v2895_v36, %v2897_v35  ;;  %v2905_v41 = vsel %vm2893_vm9, %v2887_v45, %v2904_v5  ;;  %4273 = vst.msk [vmem:[%s6001_s8 + $0x228] sm:$0xff] %vm4203_vm7, %v3840_v16  ;;  %4295 = vst.msk [vmem:[%s6001_s8 + $0x2d8] sm:$0xff] %vm4203_vm7, %v3878_v42 }
 0x29e   : > { %v2906_v31 = vsel %vm2892_vm13, %v2903_v33, %v2905_v41  ;;  %v7133_v14 = vmul.u32.u64.low %v7040_v56, %v2902_v51  ;;  %v7134_v39 = vmul.u32.u64.high %v7040_v56, %v2902_v51, %v7133_v14  ;;  %v1521_v58 = vand.u32 31, %v1519_v0 }
 0x29f   : > { %v4915_v38 = vpop.eup %4914  ;;  %vm1287_vm1 = vweird.f32 %v6700_v60  ;;  %v3042_v37 = vor.u32 4788187, %v3041_v49  ;;  %v3056_v17 = vadd.s32 3, %v3052_v7  ;;  %v2914_v47 = vmul.u32 %v7040_v56, %v2898_v21 }
 0x2a0   : > { %v7139_v46 = vmul.u32.u64.low %v7040_v56, %v2906_v31  ;;  %v7140_v62 = vmul.u32.u64.high %v7040_v56, %v2906_v31, %v7139_v46  ;;  %v4917_v20 = vpop.eup %4916  ;;  %v1295_v45 = vxor.u32 2147483648, %v4915_v38  ;;  %v7147_v36 = vshrl.u32 %v1519_v0, 5  ;;  %v3841_v22 = vpop.trf.xlu0 }
 0x2a1   : > { %v1522_v40 = vsub.s32 32, %v1521_v58  ;;  %v1292_v2 = vxor.u32 2147483648, %v4917_v20  ;;  %v3043_v35 = vand.u32 2147483647, %v3042_v37  ;;  %v3045_v11 = vcvt.s32.f32 %v3038_v50  ;;  %v3879_v13 = vpop.trf.xlu1  ;;  %4274 = vst.msk [vmem:[%s6001_s8 + $0x230] sm:$0xff] %vm4203_vm7, %v3841_v22 }
 0x2a2   : > { %v1524_v44 = vshll.u32 %v5045_v53, %v1521_v58  ;;  %v1296_v19 = vsel %vm1294_vm14, %v1295_v45, %v4917_v20  ;;  %v2917_v54 = vadd.s32 1, %v7134_v39  ;;  %v1527_v56 = vshll.u32 %v5046_v57, %v1521_v58  ;;  %4296 = vst.msk [vmem:[%s6001_s8 + $0x2e0] sm:$0xff] %vm4203_vm7, %v3879_v13 }
 0x2a3   : > { %v1525_v32 = vshrl.u32 %v5046_v57, %v1522_v40  ;;  %v1293_v33 = vsel %vm1291_vm15, %v4915_v38, %v1292_v2  ;;  %v3046_v7 = vmul.f32 %v3045_v11, %v3043_v35  ;;  %vm2916_vm3 = vc.u32 %v7140_v62, %v7133_v14 }
 0x2a4   : > { %v1530_v51 = vshll.u32 %v5047_v59, %v1521_v58  ;;  %v1297_v5 = vsel %vm1290_vm0, %v1293_v33, %v1296_v19  ;;  %v2918_v0 = vsel %vm2916_vm3, %v2917_v54, %v7134_v39  ;;  %v1528_v50 = vshrl.u32 %v5047_v59, %v1522_v40  ;;  %v3842_v42 = vpop.trf.xlu0 }
 0x2a5   : > { %v1533_v49 = vshll.u32 %v5048_v61, %v1521_v58  ;;  %v3047_v21 = vxor.u32 2147483648, %v3046_v7  ;;  %v2919_v41 = vadd.s32 %v2918_v0, %v2914_v47  ;;  %v1526_v31 = vor.u32 %v1525_v32, %v1524_v44  ;;  %v3880_v38 = vpop.trf.xlu1  ;;  %4275 = vst.msk [vmem:[%s6001_s8 + $0x238] sm:$0xff] %vm4203_vm7, %v3842_v42 }
 0x2a6   : > { %v1531_v16 = vshrl.u32 %v5048_v61, %v1522_v40  ;;  %v1529_v37 = vor.u32 %v1528_v50, %v1527_v56  ;;  %v1534_v46 = vshrl.u32 %v5049_v63, %v1522_v40  ;;  %v1536_v8 = vshll.u32 %v5049_v63, %v1521_v58  ;;  %4297 = vst.msk [vmem:[%s6001_s8 + $0x2e8] sm:$0xff] %vm4203_vm7, %v3880_v38 }
 0x2a7   : > { %v1537_v20 = vshrl.u32 %v5050_v9, %v1522_v40  ;;  %v3048_v39 = vsel %vm2965_vm5, %v3047_v21, %v3046_v7  ;;  %v2920_v45 = vadd.s32 536870912, %v2919_v41  ;;  %v7181_v2 = vshll.u32 %v1515_v24, 8 }
 0x2a8   : > { %v1532_v47 = vor.u32 %v1531_v16, %v1530_v51  ;;  %v1298_v35 = vsel %vm1287_vm1, nan, %v1297_v5  ;;  %v3051_v58 = vsel %vm7067_vm6, %v6693_v55, %v3048_v39  ;;  %v1535_v11 = vor.u32 %v1534_v46, %v1533_v49  ;;  %v3843_v1 = vpop.trf.xlu0 }
 0x2a9   : > { %v1538_v44 = vor.u32 %v1537_v20, %v1536_v8  ;;  %3947 = vxpose.xlu0.b32.start [1/2] (short) %v1298_v35, 128  ;;  %4918 = vcosq.f32 %v3051_v58  ;;  %v7188_v19 = vand.u32 3, %v3056_v17  ;;  %v2921_v54 = vshrl.u32 %v2920_v45, 30  ;;  %v3881_v24 = vpop.trf.xlu1  ;;  %4276 = vst.msk [vmem:[%s6001_s8 + $0x240] sm:$0xff] %vm4203_vm7, %v3843_v1 }
 0x2aa   : > { %vm1539_vm2 = vcmp.lt.s32.totalorder %v7147_v36, 1  ;;  %4920 = vsinq.f32 %v3051_v58  ;;  %v1523_v60 = vshrl.u32 %v5045_v53, %v1522_v40  ;;  %vm1542_vm4 = vcmp.lt.s32.totalorder %v7147_v36, 4  ;;  %4298 = vst.msk [vmem:[%s6001_s8 + $0x2f0] sm:$0xff] %vm4203_vm7, %v3881_v24 }
 0x2ab   : > { %v1547_v3 = vsel %vm1539_vm2, %v1526_v31, %v1529_v37  ;;  %v2922_v22 = vshll.u32 %v2921_v54, 30  ;;  %vm1541_vm5 = vcmp.lt.s32.totalorder %v7147_v36, 3  ;;  %v1544_v17 = vsel %vm1542_vm4, %v1532_v47, 2102212464 }
 0x2ac   : > { %v1548_v13 = vsel %vm1542_vm4, %v1535_v11, 920167782  ;;  %vm1540_vm6 = vcmp.lt.s32.totalorder %v7147_v36, 2  ;;  %v1551_v40 = vsel %vm1539_vm2, %v1529_v37, %v1532_v47  ;;  %v1552_v56 = vsel %vm1542_vm4, %v1538_v44, 1326507024  ;;  %v3844_v0 = vpop.trf.xlu0 }
 0x2ad   : > { %v1549_v32 = vsel %vm1541_vm5, %v1532_v47, %v1548_v13  ;;  %v7203_v33 = vsub.s32 %v2919_v41, %v2922_v22  ;;  %v1543_v7 = vsel %vm1539_vm2, %v1523_v60, %v1526_v31  ;;  %v1553_v5 = vsel %vm1541_vm5, %v1535_v11, %v1552_v56  ;;  %v3882_v42 = vpop.trf.xlu1  ;;  %4277 = vst.msk [vmem:[%s6001_s8 + $0x248] sm:$0xff] %vm4203_vm7, %v3844_v0 }
 0x2ae   : > { %v1550_v51 = vsel %vm1540_vm6, %v1547_v3, %v1549_v32  ;;  %v1545_v50 = vsel %vm1541_vm5, %v1529_v37, %v1544_v17  ;;  %v1554_v49 = vsel %vm1540_vm6, %v1551_v40, %v1553_v5  ;;  %v2945_v38 = vsub.s32 4, %v2921_v54  ;;  %4299 = vst.msk [vmem:[%s6001_s8 + $0x2f8] sm:$0xff] %vm4203_vm7, %v3882_v42 }
 0x2af   : > { %v7212_v21 = vmul.u32.u64.low %v7181_v2, %v1550_v51  ;;  %v7213_v16 = vmul.u32.u64.high %v7181_v2, %v1550_v51, %v7212_v21  ;;  %v2925_v41 = vsub.s32 0, %v7203_v33  ;;  %v7227_v37 = vadd.f32 %v5186_v15, %v7037_v29 }
 0x2b0   : > { %v7220_v31 = vmul.u32.u64.low %v7181_v2, %v1554_v49  ;;  %v7221_v46 = vmul.u32.u64.high %v7181_v2, %v1554_v49, %v7220_v31  ;;  %vm3055_vm8 = vweird.f32 %v6693_v55  ;;  %v1546_v20 = vsel %vm1540_vm6, %v1543_v7, %v1545_v50  ;;  %v3845_v29 = vpop.trf.xlu0 }
 0x2b1   : > { %v4635_v8 = vmin.u32 %v2925_v41, %v7203_v33  ;;  %v314_v39 = vmul.f32 %v6915_v23, %v5194_v18  ;;  %vm7237_vm10 = vcmp.le.f32.partialorder %v2859_v43, 0.7853982  ;;  %vm2861_vm12 = vcmp.lt.s32.totalorder %v6953_v10, 0  ;;  %4278 = vst.msk [vmem:[%s6001_s8 + $0x250] sm:$0xff] %vm4203_vm7, %v3845_v29 }
 0x2b2   : > { %v1565_v47 = vadd.s32 1, %v7213_v16  ;;  %v1406_v35 = vand.u32 2139095040, %v7227_v37  ;;  %vm3058_vm13 = vcmp.lt.s32.totalorder %v7188_v19, 2  ;;  %vm3062_vm9 = vcmp.eq.s32.totalorder %v7188_v19, 2 }
 0x2b3   : > { %v4919_v58 = vpop.eup %4918  ;;  %v2927_v36 = vclz %v4635_v8  ;;  %v2946_v23 = vsel %vm2861_vm12, %v2945_v38, %v2921_v54  ;;  %v1562_v44 = vmul.u32 %v7181_v2, %v1546_v20  ;;  %vm1564_vm11 = vc.u32 %v7221_v46, %v7212_v21 }
 0x2b4   : > { %v4921_v43 = vpop.eup %4920  ;;  %v3063_v11 = vxor.u32 2147483648, %v4919_v58  ;;  %v1403_v1 = vand.u32 2147483647, %v7227_v37  ;;  %v1566_v3 = vsel %vm1564_vm11, %v1565_v47, %v7213_v16  ;;  %v1407_v22 = vshrl.u32 %v1406_v35, 23  ;;  %v3846_v13 = vpop.trf.xlu0 }
 0x2b5   : > { %v3060_v24 = vxor.u32 2147483648, %v4921_v43  ;;  %v4636_v60 = vadd.s32 4294967294, %v2927_v36  ;;  %vm3059_vm14 = vcmp.eq.s32.totalorder %v7188_v19, 0  ;;  %v2915_v17 = vadd.s32 %v7133_v14, %v7140_v62  ;;  %4279 = vst.msk [vmem:[%s6001_s8 + $0x258] sm:$0xff] %vm4203_vm7, %v3846_v13 }
 0x2b6   : > { %v3064_v54 = vsel %vm3062_vm9, %v3063_v11, %v4921_v43  ;;  %v1567_v32 = vadd.s32 %v1566_v3, %v1562_v44  ;;  %v2948_v2 = vsel %vm7237_vm10, 0, %v2946_v23  ;;  %v4578_v56 = vadd.s32 4294967169, %v1407_v22 }
 0x2b7   : > { %v3061_v40 = vsel %vm3059_vm14, %v4919_v58, %v3060_v24  ;;  %vm4637_vm15 = vcmp.lt.s32.totalorder %v4636_v60, 0  ;;  %v7265_v0 = vadd.f32 %v5203_v26, %v314_v39  ;;  %v1410_v49 = vand.u32 8388607, %v1403_v1 }
 0x2b8   : > { %v3065_v7 = vsel %vm3058_vm13, %v3061_v40, %v3064_v54  ;;  %v2930_v51 = vsel %vm4637_vm15, 0, %v4636_v60  ;;  %v1568_v5 = vadd.s32 536870912, %v1567_v32  ;;  %v3847_v16 = vpop.trf.xlu0  ;;  %v1413_v41 = vadd.s32 1, %v4578_v56 }
 0x2b9   : > { %v3066_v14 = vsel %vm3055_vm8, nan, %v3065_v7  ;;  %v2931_v62 = vsub.s32 32, %v2930_v51  ;;  %v2935_v50 = vsub.s32 4294967266, %v2930_v51  ;;  %v2932_v19 = vshll.u32 %v7203_v33, %v2930_v51  ;;  %4280 = vst.msk [vmem:[%s6001_s8 + $0x260] sm:$0xff] %vm4203_vm7, %v3847_v16 }
 0x2ba   : > { %3980 = vxpose.xlu1.b32.end [2/2] (short) %v3066_v14, 128  ;;  %v1569_v42 = vshrl.u32 %v1568_v5, 30  ;;  %v2952_v8 = vadd.s32 3, %v2948_v2  ;;  %vm1414_vm0 = vcmp.gt.s32.totalorder %v1413_v41, 0  ;;  %v3174_v55 = vand.u32 2139095040, %v7265_v0 }
 0x2bb   : > { %v2933_v38 = vshrl.u32 %v2915_v17, %v2931_v62  ;;  %v2936_v31 = vadd.s32 127, %v2935_v50  ;;  %v1411_v47 = vor.u32 8388608, %v1410_v49  ;;  %v1415_v35 = vsel %vm1414_vm0, %v1413_v41, 0 }
 0x2bc   : > { %v1570_v20 = vshll.u32 %v1569_v42, 30  ;;  %v3848_v58 = vpop.trf.xlu0  ;;  %v1593_v23 = vsub.s32 4, %v1569_v42  ;;  %v1417_v43 = vand.u32 31, %v1415_v35  ;;  %vm1509_vm1 = vcmp.lt.s32.totalorder %v6981_v30, 0 }
 0x2bd   : > { %v2934_v39 = vor.u32 %v2933_v38, %v2932_v19  ;;  %v2937_v29 = vshll.u32 %v2936_v31, 23  ;;  %4281 = vst.msk [vmem:[%s6001_s8 + $0x268] sm:$0xff] %vm4203_vm7, %v3848_v58  ;;  %v7280_v11 = vand.u32 3, %v2952_v8  ;;  %v3175_v60 = vshrl.u32 %v3174_v55, 23 }
 0x2be   : > { %v7275_v36 = vsub.s32 %v1567_v32, %v1570_v20  ;;  %v1418_v24 = vsub.s32 32, %v1417_v43  ;;  %v1563_v54 = vadd.s32 %v7212_v21, %v7221_v46  ;;  %v7285_v17 = vshll.u32 %v1411_v47, 8 }
 0x2bf   : > { %v2938_v33 = vor.u32 4788187, %v2937_v29  ;;  %v2941_v22 = vcvt.s32.f32 %v2934_v39  ;;  %v7290_v32 = vsel %vm1509_vm1, %v1593_v23, %v1569_v42  ;;  %v7292_v2 = vshrl.u32 %v1415_v35, 5 }
 0x2c0   : > { %v1573_v44 = vsub.s32 0, %v7275_v36  ;;  %v3849_v40 = vpop.trf.xlu0  ;;  %v1421_v56 = vshrl.u32 %v5046_v57, %v1418_v24  ;;  %v1424_v51 = vshrl.u32 %v5047_v59, %v1418_v24  ;;  %v1427_v21 = vshrl.u32 %v5048_v61, %v1418_v24 }
 0x2c1   : > { %v2939_v3 = vand.u32 2147483647, %v2938_v33  ;;  %4282 = vst.msk [vmem:[%s6001_s8 + $0x270] sm:$0xff] %vm4203_vm7, %v3849_v40  ;;  %v1430_v46 = vshrl.u32 %v5049_v63, %v1418_v24  ;;  %v1420_v14 = vshll.u32 %v5045_v53, %v1417_v43  ;;  %v1426_v62 = vshll.u32 %v5047_v59, %v1417_v43 }
 0x2c2   : > { %v4583_v13 = vmin.u32 %v1573_v44, %v7275_v36  ;;  %v4646_v50 = vadd.s32 4294967169, %v3175_v60  ;;  %v1419_v16 = vshrl.u32 %v5045_v53, %v1418_v24  ;;  %v1423_v42 = vshll.u32 %v5046_v57, %v1417_v43 }
 0x2c3   : > { %v2942_v7 = vmul.f32 %v2941_v22, %v2939_v3  ;;  %v1429_v41 = vshll.u32 %v5048_v61, %v1417_v43  ;;  %v1422_v38 = vor.u32 %v1421_v56, %v1420_v14  ;;  %v1428_v31 = vor.u32 %v1427_v21, %v1426_v62 }
 0x2c4   : > { %v1575_v5 = vclz %v4583_v13  ;;  %v1433_v8 = vshrl.u32 %v5050_v9, %v1418_v24  ;;  %v3850_v20 = vpop.trf.xlu0  ;;  %vm7310_vm3 = vcmp.le.f32.partialorder %v1507_v48, 0.7853982  ;;  %v1425_v29 = vor.u32 %v1424_v51, %v1423_v42 }
 0x2c5   : > { %v2943_v49 = vxor.u32 2147483648, %v2942_v7  ;;  %v1431_v47 = vor.u32 %v1430_v46, %v1429_v41  ;;  %v1432_v35 = vshll.u32 %v5049_v63, %v1417_v43  ;;  %4283 = vst.msk [vmem:[%s6001_s8 + $0x278] sm:$0xff] %vm4203_vm7, %v3850_v20  ;;  %vm1435_vm4 = vcmp.lt.s32.totalorder %v7292_v2, 1 }
 0x2c6   : > { %v4584_v19 = vadd.s32 4294967294, %v1575_v5  ;;  %vm1436_vm5 = vcmp.lt.s32.totalorder %v7292_v2, 2  ;;  %vm1438_vm6 = vcmp.lt.s32.totalorder %v7292_v2, 4  ;;  %vm1437_vm8 = vcmp.lt.s32.totalorder %v7292_v2, 3 }
 0x2c7   : > { %v2944_v55 = vsel %vm2861_vm12, %v2943_v49, %v2942_v7  ;;  %v1434_v23 = vor.u32 %v1433_v8, %v1432_v35  ;;  %v1440_v43 = vsel %vm1438_vm6, %v1428_v31, 2102212464  ;;  %v1443_v45 = vsel %vm1435_vm4, %v1422_v38, %v1425_v29 }
 0x2c8   : > { %v2947_v58 = vsel %vm7237_vm10, %v6953_v10, %v2944_v55  ;;  %vm4585_vm2 = vcmp.lt.s32.totalorder %v4584_v19, 0  ;;  %v1444_v60 = vsel %vm1438_vm6, %v1431_v47, 920167782  ;;  %v1447_v40 = vsel %vm1435_vm4, %v1425_v29, %v1428_v31 }
 0x2c9   : > { %4922 = vcosq.f32 %v2947_v58  ;;  %v1578_v48 = vsel %vm4585_vm2, 0, %v4584_v19  ;;  %v1445_v13 = vsel %vm1437_vm8, %v1428_v31, %v1444_v60  ;;  %v1439_v56 = vsel %vm1435_vm4, %v1419_v16, %v1422_v38 }
 0x2ca   : > { %4924 = vsinq.f32 %v2947_v58  ;;  %v1579_v33 = vsub.s32 32, %v1578_v48  ;;  %v1583_v44 = vsub.s32 4294967266, %v1578_v48  ;;  %v1580_v24 = vshll.u32 %v7275_v36, %v1578_v48 }
 0x2cb   : > { %v1441_v7 = vsel %vm1437_vm8, %v1425_v29, %v1440_v43  ;;  %v1446_v36 = vsel %vm1436_vm5, %v1443_v45, %v1445_v13  ;;  %v1448_v51 = vsel %vm1438_vm6, %v1434_v23, 1326507024  ;;  %v3181_v14 = vadd.s32 1, %v4646_v50 }
 0x2cc   : > { %v1581_v3 = vshrl.u32 %v1563_v54, %v1579_v33  ;;  %v1584_v22 = vadd.s32 127, %v1583_v44  ;;  %v1449_v5 = vsel %vm1437_vm8, %v1431_v47, %v1448_v51  ;;  %v3171_v16 = vand.u32 2147483647, %v7265_v0 }
 0x2cd   : > { %v1450_v54 = vsel %vm1436_vm5, %v1447_v40, %v1449_v5  ;;  %v7342_v62 = vmul.u32.u64.low %v7285_v17, %v1446_v36  ;;  %v7343_v49 = vmul.u32.u64.high %v7285_v17, %v1446_v36, %v7342_v62  ;;  %vm2951_vm10 = vweird.f32 %v6953_v10 }
 0x2ce   : > { %v1582_v21 = vor.u32 %v1581_v3, %v1580_v24  ;;  %v1585_v46 = vshll.u32 %v1584_v22, 23  ;;  %v1596_v41 = vsel %vm7310_vm3, 0, %v7290_v32  ;;  %vm2954_vm12 = vcmp.lt.s32.totalorder %v7280_v11, 2 }
 0x2cf   : > { %v7352_v19 = vmul.u32.u64.low %v7285_v17, %v1450_v54  ;;  %v7353_v50 = vmul.u32.u64.high %v7285_v17, %v1450_v54, %v7352_v19  ;;  %vm2955_vm13 = vcmp.eq.s32.totalorder %v7280_v11, 0  ;;  %v1442_v38 = vsel %vm1436_vm5, %v1439_v56, %v1441_v7 }
 0x2d0   : > { %v1586_v42 = vor.u32 4788187, %v1585_v46  ;;  %vm3182_vm9 = vcmp.gt.s32.totalorder %v3181_v14, 0  ;;  %vm2958_vm11 = vcmp.eq.s32.totalorder %v7280_v11, 2  ;;  %v1589_v8 = vcvt.s32.f32 %v1582_v21 }
 0x2d1   : > { %v3183_v20 = vsel %vm3182_vm9, %v3181_v14, 0  ;;  %v1600_v29 = vadd.s32 3, %v1596_v41  ;;  %v1461_v32 = vadd.s32 1, %v7343_v49  ;;  %v3178_v47 = vand.u32 8388607, %v3171_v16 }
 0x2d2   : > { %v1587_v31 = vand.u32 2147483647, %v1586_v42  ;;  %v3185_v35 = vand.u32 31, %v3183_v20  ;;  %v1458_v2 = vmul.u32 %v7285_v17, %v1442_v38  ;;  %vm1460_vm14 = vc.u32 %v7353_v50, %v7342_v62 }
 0x2d3   : > { %v4923_v55 = vpop.eup %4922  ;;  %v1462_v44 = vsel %vm1460_vm14, %v1461_v32, %v7343_v49  ;;  %v7367_v43 = vshrl.u32 %v3183_v20, 5  ;;  %vm1405_vm2 = vcmp.lt.s32.totalorder %v7227_v37, 0  ;;  %vm1599_vm9 = vweird.f32 %v6981_v30 }
 0x2d4   : > { %v4925_v58 = vpop.eup %4924  ;;  %v2959_v48 = vxor.u32 2147483648, %v4923_v55  ;;  %v1590_v23 = vmul.f32 %v1589_v8, %v1587_v31  ;;  %v3186_v24 = vsub.s32 32, %v3185_v35  ;;  %v1463_v3 = vadd.s32 %v1462_v44, %v1458_v2 }
 0x2d5   : > { %v2956_v33 = vxor.u32 2147483648, %v4925_v58  ;;  %v3188_v22 = vshll.u32 %v5045_v53, %v3185_v35  ;;  %v3931_v13 = vpop.trf.xlu1  ;;  %v3191_v56 = vshll.u32 %v5046_v57, %v3185_v35  ;;  %v3194_v46 = vshll.u32 %v5047_v59, %v3185_v35 }
 0x2d6   : > { %v2960_v45 = vsel %vm2958_vm11, %v2959_v48, %v4925_v58  ;;  %v1591_v60 = vxor.u32 2147483648, %v1590_v23  ;;  %v3189_v40 = vshrl.u32 %v5046_v57, %v3186_v24  ;;  %v3192_v7 = vshrl.u32 %v5047_v59, %v3186_v24  ;;  %4316 = vst.msk [vmem:[%s6001_s8 + $0x380] sm:$0xff] %vm4203_vm7, %v3931_v13 }
 0x2d7   : > { %v2957_v17 = vsel %vm2955_vm13, %v4923_v55, %v2956_v33  ;;  %v1464_v21 = vadd.s32 536870912, %v1463_v3  ;;  %v3195_v42 = vshrl.u32 %v5048_v61, %v3186_v24  ;;  %v3197_v41 = vshll.u32 %v5048_v61, %v3185_v35 }
 0x2d8   : > { %v2961_v36 = vsel %vm2954_vm12, %v2957_v17, %v2960_v45  ;;  %v1592_v51 = vsel %vm1509_vm1, %v1591_v60, %v1590_v23  ;;  %v3190_v54 = vor.u32 %v3189_v40, %v3188_v22  ;;  %v3193_v49 = vor.u32 %v3192_v7, %v3191_v56 }
 0x2d9   : > { %v2962_v5 = vsel %vm2951_vm10, nan, %v2961_v36  ;;  %v1595_v14 = vsel %vm7310_vm3, %v6981_v30, %v1592_v51  ;;  %v7389_v11 = vshrl.u32 %v1464_v21, 30  ;;  %v3932_v19 = vpop.trf.xlu1  ;;  %v3198_v38 = vshrl.u32 %v5049_v63, %v3186_v24 }
 0x2da   : > { %3948 = vxpose.xlu0.b32.end [2/2] (short) %v2962_v5, 128  ;;  %4926 = vcosq.f32 %v1595_v14  ;;  %v3200_v10 = vshll.u32 %v5049_v63, %v3185_v35  ;;  %v3201_v31 = vshrl.u32 %v5050_v9, %v3186_v24  ;;  %4317 = vst.msk [vmem:[%s6001_s8 + $0x388] sm:$0xff] %vm4203_vm7, %v3932_v19  ;;  %v3179_v8 = vor.u32 8388608, %v3178_v47 }
 0x2db   : > { %4928 = vsinq.f32 %v1595_v14  ;;  %v1466_v39 = vshll.u32 %v7389_v11, 30  ;;  %v3196_v20 = vor.u32 %v3195_v42, %v3194_v46  ;;  %v3199_v55 = vor.u32 %v3198_v38, %v3197_v41 }
 0x2dc   : > { %v3202_v32 = vor.u32 %v3201_v31, %v3200_v10  ;;  %v313_v58 = vmul.f32 %v7016_v34, %v5194_v18  ;;  %vm3203_vm15 = vcmp.lt.s32.totalorder %v7367_v43, 1  ;;  %vm3206_vm0 = vcmp.lt.s32.totalorder %v7367_v43, 4 }
 0x2dd   : > { %v7401_v48 = vsub.s32 %v1463_v3, %v1466_v39  ;;  %v3933_v35 = vpop.trf.xlu1  ;;  %v7408_v23 = vrot.slane %v7011_v27, %v229_v52  ;;  %v7410_v2 = vand.u32 3, %v1600_v29  ;;  %vm3205_vm1 = vcmp.lt.s32.totalorder %v7367_v43, 3 }
 0x2de   : > { %v3211_v47 = vsel %vm3203_vm15, %v3190_v54, %v3193_v49  ;;  %v3212_v34 = vsel %vm3206_vm0, %v3199_v55, 920167782  ;;  %4318 = vst.msk [vmem:[%s6001_s8 + $0x390] sm:$0xff] %vm4203_vm7, %v3933_v35  ;;  %vm3204_vm3 = vcmp.lt.s32.totalorder %v7367_v43, 2  ;;  %v3219_v52 = vshll.u32 %v3179_v8, 8 }
 0x2df   : > { %v1469_v33 = vsub.s32 0, %v7401_v48  ;;  %v3213_v44 = vsel %vm3205_vm1, %v3196_v20, %v3212_v34  ;;  %v3208_v45 = vsel %vm3206_vm0, %v3196_v20, 2102212464  ;;  %v3215_v60 = vsel %vm3203_vm15, %v3193_v49, %v3196_v20 }
 0x2e0   : > { %v3214_v29 = vsel %vm3204_vm3, %v3211_v47, %v3213_v44  ;;  %v3216_v3 = vsel %vm3206_vm0, %v3202_v32, 1326507024  ;;  %v3187_v13 = vshrl.u32 %v5045_v53, %v3186_v24  ;;  %v7430_v40 = vadd.f32 %v5203_v26, %v313_v58 }
 0x2e1   : > { %v4579_v22 = vmin.u32 %v1469_v33, %v7401_v48  ;;  %v3217_v17 = vsel %vm3205_vm1, %v3199_v55, %v3216_v3  ;;  %v3934_v56 = vpop.trf.xlu1  ;;  %v7434_v36 = vmul.u32.u64.low %v3219_v52, %v3214_v29  ;;  %v7435_v51 = vmul.u32.u64.high %v3219_v52, %v3214_v29, %v7434_v36 }
 0x2e2   : > { %v3218_v7 = vsel %vm3204_vm3, %v3215_v60, %v3217_v17  ;;  %4319 = vst.msk [vmem:[%s6001_s8 + $0x398] sm:$0xff] %vm4203_vm7, %v3934_v56  ;;  %v3207_v46 = vsel %vm3203_vm15, %v3187_v13, %v3190_v54  ;;  %v3209_v5 = vsel %vm3205_vm1, %v3193_v49, %v3208_v45  ;;  %v1489_v42 = vsub.s32 4, %v7389_v11 }
 0x2e3   : > { %v1471_v24 = vclz %v4579_v22  ;;  %v7446_v41 = vmul.u32.u64.low %v3219_v52, %v3218_v7  ;;  %v7447_v19 = vmul.u32.u64.high %v3219_v52, %v3218_v7, %v7446_v41  ;;  %v300_v38 = vmul.f32 %v7408_v23, %v5182_v12 }
 0x2e4   : > { %v4927_v21 = vpop.eup %4926  ;;  %vm1603_vm4 = vcmp.eq.s32.totalorder %v7410_v2, 0  ;;  %v3067_v31 = vand.u32 2147483647, %v7430_v40  ;;  %v3070_v39 = vand.u32 2139095040, %v7430_v40  ;;  %v3210_v49 = vsel %vm3204_vm3, %v3207_v46, %v3209_v5 }
 0x2e5   : > { %v4929_v14 = vpop.eup %4928  ;;  %v4580_v10 = vadd.s32 4294967294, %v1471_v24  ;;  %v3935_v54 = vpop.trf.xlu1  ;;  %v1607_v20 = vxor.u32 2147483648, %v4927_v21  ;;  %v3229_v55 = vadd.s32 1, %v7435_v51  ;;  %vm1606_vm5 = vcmp.eq.s32.totalorder %v7410_v2, 2 }
 0x2e6   : > { %v1604_v8 = vxor.u32 2147483648, %v4929_v14  ;;  %4320 = vst.msk [vmem:[%s6001_s8 + $0x3a0] sm:$0xff] %vm4203_vm7, %v3935_v54  ;;  %v1459_v32 = vadd.s32 %v7342_v62, %v7353_v50  ;;  %v3071_v58 = vshrl.u32 %v3070_v39, 23  ;;  %v1490_v47 = vsel %vm1405_vm2, %v1489_v42, %v7389_v11 }
 0x2e7   : > { %vm4581_vm6 = vcmp.lt.s32.totalorder %v4580_v10, 0  ;;  %vm3228_vm8 = vc.u32 %v7447_v19, %v7434_v36  ;;  %v7468_v43 = vadd.f32 %v5186_v15, %v300_v38  ;;  %v3226_v44 = vmul.u32 %v3219_v52, %v3210_v49 }
 0x2e8   : > { %v1474_v35 = vsel %vm4581_vm6, 0, %v4580_v10  ;;  %v3074_v62 = vand.u32 8388607, %v3067_v31  ;;  %v1605_v45 = vsel %vm1603_vm4, %v4927_v21, %v1604_v8  ;;  %v1608_v29 = vsel %vm1606_vm5, %v1607_v20, %v4929_v14 }
 0x2e9   : > { %v1475_v34 = vsub.s32 32, %v1474_v35  ;;  %v1479_v33 = vsub.s32 4294967266, %v1474_v35  ;;  %v3936_v50 = vpop.trf.xlu1  ;;  %v3230_v11 = vsel %vm3228_vm8, %v3229_v55, %v7435_v51  ;;  %v4642_v60 = vadd.s32 4294967169, %v3071_v58 }
 0x2ea   : > { %4321 = vst.msk [vmem:[%s6001_s8 + $0x3a8] sm:$0xff] %vm4203_vm7, %v3936_v50  ;;  %v1476_v3 = vshll.u32 %v7401_v48, %v1474_v35  ;;  %v3231_v17 = vadd.s32 %v3230_v11, %v3226_v44  ;;  %vm7480_vm10 = vcmp.le.f32.partialorder %v1403_v1, 0.7853982  ;;  %v1718_v51 = vand.u32 2139095040, %v7468_v43 }
 0x2eb   : > { %v1477_v22 = vshrl.u32 %v1459_v32, %v1475_v34  ;;  %v1480_v13 = vadd.s32 127, %v1479_v33  ;;  %v3899_v52 = vpop.trf.xlu0  ;;  %v3077_v7 = vadd.s32 1, %v4642_v60  ;;  %v7490_v48 = vrot.slane %v7011_v27, %v225_v25 }
 0x2ec   : > { %4300 = vst.msk [vmem:[%s6001_s8 + $0x300] sm:$0xff] %vm4203_vm7, %v3899_v52  ;;  %vm1602_vm12 = vcmp.lt.s32.totalorder %v7410_v2, 2  ;;  %v3232_v46 = vadd.s32 536870912, %v3231_v17  ;;  %v1492_v14 = vsel %vm7480_vm10, 0, %v1490_v47  ;;  %v3075_v42 = vor.u32 8388608, %v3074_v62 }
 0x2ed   : > { %v1478_v21 = vor.u32 %v1477_v22, %v1476_v3  ;;  %v1481_v24 = vshll.u32 %v1480_v13, 23  ;;  %v3937_v1 = vpop.trf.xlu1  ;;  %v1609_v5 = vsel %vm1602_vm12, %v1605_v45, %v1608_v29  ;;  %vm3078_vm13 = vcmp.gt.s32.totalorder %v3077_v7, 0 }
 0x2ee   : > { %4322 = vst.msk [vmem:[%s6001_s8 + $0x3b0] sm:$0xff] %vm4203_vm7, %v3937_v1  ;;  %v7497_v38 = vshrl.u32 %v3232_v46, 30  ;;  %v3079_v25 = vsel %vm3078_vm13, %v3077_v7, 0  ;;  %v1715_v2 = vand.u32 2147483647, %v7468_v43  ;;  %v1719_v39 = vshrl.u32 %v1718_v51, 23 }
 0x2ef   : > { %v1482_v41 = vor.u32 4788187, %v1481_v24  ;;  %v3900_v27 = vpop.trf.xlu0  ;;  %v3081_v10 = vand.u32 31, %v3079_v25  ;;  %v7505_v54 = vmul.f32 %v7490_v48, %v5182_v12  ;;  %v1610_v8 = vsel %vm1599_vm9, nan, %v1609_v5 }
 0x2f0   : > { %4301 = vst.msk [vmem:[%s6001_s8 + $0x308] sm:$0xff] %vm4203_vm7, %v3900_v27  ;;  %v1485_v49 = vcvt.s32.f32 %v1478_v21  ;;  %v3234_v55 = vshll.u32 %v7497_v38, 30  ;;  %v7508_v58 = vadd.s32 3, %v1492_v14  ;;  %v7512_v30 = vadd.s32 %v7434_v36, %v7447_v19 }
 0x2f1   : > { %v1483_v20 = vand.u32 2147483647, %v1482_v41  ;;  %v3938_v32 = vpop.trf.xlu1  ;;  %v3082_v35 = vsub.s32 32, %v3081_v10  ;;  %v7514_v47 = vshll.u32 %v3075_v42, 8  ;;  %v7520_v44 = vshrl.u32 %v3079_v25, 5 }
 0x2f2   : > { %4323 = vst.msk [vmem:[%s6001_s8 + $0x3b8] sm:$0xff] %vm4203_vm7, %v3938_v32  ;;  %v7518_v33 = vsub.s32 %v3231_v17, %v3234_v55  ;;  %v7524_v50 = vand.u32 8388607, %v1715_v2  ;;  %v3084_v45 = vshll.u32 %v5045_v53, %v3081_v10  ;;  %v7531_v29 = vadd.s32 4294967169, %v1719_v39 }
 0x2f3   : > { %4043 = vxpose.xlu1.b32.start [1/2] (short) %v1610_v8, 128  ;;  %v1486_v34 = vmul.f32 %v1485_v49, %v1483_v20  ;;  %v3901_v62 = vpop.trf.xlu0  ;;  %v3085_v36 = vshrl.u32 %v5046_v57, %v3082_v35  ;;  %v3088_v19 = vshrl.u32 %v5047_v59, %v3082_v35  ;;  %vm3173_vm11 = vcmp.lt.s32.totalorder %v7265_v0, 0 }
 0x2f4   : > { %4302 = vst.msk [vmem:[%s6001_s8 + $0x310] sm:$0xff] %vm4203_vm7, %v3901_v62  ;;  %v3237_v60 = vsub.s32 0, %v7518_v33  ;;  %v3087_v3 = vshll.u32 %v5046_v57, %v3081_v10  ;;  %v3091_v22 = vshrl.u32 %v5048_v61, %v3082_v35  ;;  %v3090_v52 = vshll.u32 %v5047_v59, %v3081_v10 }
 0x2f5   : > { %v1487_v11 = vxor.u32 2147483648, %v1486_v34  ;;  %v3939_v13 = vpop.trf.xlu1  ;;  %v3086_v17 = vor.u32 %v3085_v36, %v3084_v45  ;;  %v3093_v7 = vshll.u32 %v5048_v61, %v3081_v10  ;;  %v3094_v51 = vshrl.u32 %v5049_v63, %v3082_v35 }
 0x2f6   : > { %4324 = vst.msk [vmem:[%s6001_s8 + $0x3c0] sm:$0xff] %vm4203_vm7, %v3939_v13  ;;  %v4647_v24 = vmin.u32 %v3237_v60, %v7518_v33  ;;  %v3089_v46 = vor.u32 %v3088_v19, %v3087_v3  ;;  %v3096_v1 = vshll.u32 %v5049_v63, %v3081_v10  ;;  %v3092_v42 = vor.u32 %v3091_v22, %v3090_v52 }
 0x2f7   : > { %v1488_v21 = vsel %vm1405_vm2, %v1487_v11, %v1486_v34  ;;  %v3902_v5 = vpop.trf.xlu0  ;;  %v3095_v41 = vor.u32 %v3094_v51, %v3093_v7  ;;  %v3097_v25 = vshrl.u32 %v5050_v9, %v3082_v35  ;;  %v3257_v39 = vsub.s32 4, %v7497_v38 }
 0x2f8   : > { %v1491_v14 = vsel %vm7480_vm10, %v7227_v37, %v1488_v21  ;;  %4303 = vst.msk [vmem:[%s6001_s8 + $0x318] sm:$0xff] %vm4203_vm7, %v3902_v5  ;;  %v3239_v27 = vclz %v4647_v24  ;;  %v3083_v8 = vshrl.u32 %v5045_v53, %v3082_v35  ;;  %vm3099_vm14 = vcmp.lt.s32.totalorder %v7520_v44, 1 }
 0x2f9   : > { %4930 = vcosq.f32 %v1491_v14  ;;  %v3940_v10 = vpop.trf.xlu1  ;;  %v3098_v20 = vor.u32 %v3097_v25, %v3096_v1  ;;  %vm3100_vm15 = vcmp.lt.s32.totalorder %v7520_v44, 2  ;;  %vm3101_vm0 = vcmp.lt.s32.totalorder %v7520_v44, 3 }
 0x2fa   : > { %4932 = vsinq.f32 %v1491_v14  ;;  %4325 = vst.msk [vmem:[%s6001_s8 + $0x3c8] sm:$0xff] %vm4203_vm7, %v3940_v10  ;;  %v4648_v56 = vadd.s32 4294967294, %v3239_v27  ;;  %vm3102_vm1 = vcmp.lt.s32.totalorder %v7520_v44, 4  ;;  %v3103_v49 = vsel %vm3099_vm14, %v3083_v8, %v3086_v17 }
 0x2fb   : > { %v3903_v55 = vpop.trf.xlu0  ;;  %v3104_v32 = vsel %vm3102_vm1, %v3092_v42, 2102212464  ;;  %v3107_v35 = vsel %vm3099_vm14, %v3086_v17, %v3089_v46  ;;  %v3108_v34 = vsel %vm3102_vm1, %v3095_v41, 920167782  ;;  %v3111_v62 = vsel %vm3099_vm14, %v3089_v46, %v3092_v42 }
 0x2fc   : > { %4304 = vst.msk [vmem:[%s6001_s8 + $0x320] sm:$0xff] %vm4203_vm7, %v3903_v55  ;;  %vm4649_vm3 = vcmp.lt.s32.totalorder %v4648_v56, 0  ;;  %v3105_v45 = vsel %vm3101_vm0, %v3089_v46, %v3104_v32  ;;  %v3109_v36 = vsel %vm3101_vm0, %v3092_v42, %v3108_v34  ;;  %v3112_v19 = vsel %vm3102_vm1, %v3098_v20, 1326507024 }
 0x2fd   : > { %v3941_v11 = vpop.trf.xlu1  ;;  %v3242_v60 = vsel %vm4649_vm3, 0, %v4648_v56  ;;  %v3258_v3 = vsel %vm3173_vm11, %v3257_v39, %v7497_v38  ;;  %v3110_v22 = vsel %vm3100_vm15, %v3107_v35, %v3109_v36  ;;  %v3113_v13 = vsel %vm3101_vm0, %v3095_v41, %v3112_v19 }
 0x2fe   : > { %4326 = vst.msk [vmem:[%s6001_s8 + $0x3d0] sm:$0xff] %vm4203_vm7, %v3941_v11  ;;  %v3243_v17 = vsub.s32 32, %v3242_v60  ;;  %v3247_v52 = vsub.s32 4294967266, %v3242_v60  ;;  %v3106_v7 = vsel %vm3100_vm15, %v3103_v49, %v3105_v45  ;;  %v3114_v51 = vsel %vm3100_vm15, %v3111_v62, %v3113_v13 }
 0x2ff   : > { %v3904_v21 = vpop.trf.xlu0  ;;  %v7580_v38 = vmul.u32.u64.low %v7514_v47, %v3114_v51  ;;  %v7581_v24 = vmul.u32.u64.high %v7514_v47, %v3114_v51, %v7580_v38  ;;  %v7584_v46 = vmul.u32.u64.low %v7514_v47, %v3110_v22  ;;  %v7585_v1 = vmul.u32.u64.high %v7514_v47, %v3110_v22, %v7584_v46 }
 0x300   : > { %4305 = vst.msk [vmem:[%s6001_s8 + $0x328] sm:$0xff] %vm4203_vm7, %v3904_v21  ;;  %v3244_v5 = vshll.u32 %v7518_v33, %v3242_v60  ;;  %v3245_v14 = vshrl.u32 %v7512_v30, %v3243_v17  ;;  %v3248_v42 = vadd.s32 127, %v3247_v52  ;;  %v1725_v44 = vadd.s32 1, %v7531_v29 }
 0x301   : > { %v3942_v41 = vpop.trf.xlu1  ;;  %v1497_v25 = vand.u32 3, %v7508_v58  ;;  %vm7596_vm2 = vcmp.le.f32.partialorder %v3171_v16, 0.7853982  ;;  %v1723_v39 = vor.u32 8388608, %v7524_v50  ;;  %v7605_v29 = vadd.f32 %v5186_v15, %v7505_v54 }
 0x302   : > { %4327 = vst.msk [vmem:[%s6001_s8 + $0x3d8] sm:$0xff] %vm4203_vm7, %v3942_v41  ;;  %v3246_v8 = vor.u32 %v3245_v14, %v3244_v5  ;;  %v3249_v30 = vshll.u32 %v3248_v42, 23  ;;  %vm1726_vm4 = vcmp.gt.s32.totalorder %v1725_v44, 0  ;;  %v3260_v16 = vsel %vm7596_vm2, 0, %v3258_v3 }
 0x303   : > { %v4931_v33 = vpop.eup %4930  ;;  %v3905_v10 = vpop.trf.xlu0  ;;  %v3122_v20 = vmul.u32 %v7514_v47, %v3106_v7  ;;  %vm3124_vm5 = vc.u32 %v7581_v24, %v7584_v46  ;;  %v3125_v50 = vadd.s32 1, %v7585_v1  ;;  %v1727_v54 = vsel %vm1726_vm4, %v1725_v44, 0 }
 0x304   : > { %v4933_v58 = vpop.eup %4932  ;;  %4306 = vst.msk [vmem:[%s6001_s8 + $0x330] sm:$0xff] %vm4203_vm7, %v3905_v10  ;;  %v1503_v49 = vxor.u32 2147483648, %v4931_v33  ;;  %v3250_v55 = vor.u32 4788187, %v3249_v30  ;;  %vm1498_vm6 = vcmp.lt.s32.totalorder %v1497_v25, 2  ;;  %vm1499_vm8 = vcmp.eq.s32.totalorder %v1497_v25, 0 }
 0x305   : > { %v1500_v56 = vxor.u32 2147483648, %v4933_v58  ;;  %v3943_v32 = vpop.trf.xlu1  ;;  %v3126_v35 = vsel %vm3124_vm5, %v3125_v50, %v7585_v1  ;;  %v1729_v47 = vand.u32 31, %v1727_v54  ;;  %vm1502_vm10 = vcmp.eq.s32.totalorder %v1497_v25, 2 }
 0x306   : > { %4328 = vst.msk [vmem:[%s6001_s8 + $0x3e0] sm:$0xff] %vm4203_vm7, %v3943_v32  ;;  %v3251_v34 = vand.u32 2147483647, %v3250_v55  ;;  %v3253_v62 = vcvt.s32.f32 %v3246_v8  ;;  %v3127_v45 = vadd.s32 %v3126_v35, %v3122_v20  ;;  %vm1495_vm12 = vweird.f32 %v7227_v37 }
 0x307   : > { %v3906_v36 = vpop.trf.xlu0  ;;  %v3264_v19 = vadd.s32 3, %v3260_v16  ;;  %v1730_v11 = vsub.s32 32, %v1729_v47  ;;  %v7621_v60 = vshll.u32 %v1723_v39, 8  ;;  %v1614_v3 = vand.u32 2139095040, %v7605_v29 }
 0x308   : > { %4307 = vst.msk [vmem:[%s6001_s8 + $0x338] sm:$0xff] %vm4203_vm7, %v3906_v36  ;;  %v1501_v22 = vsel %vm1499_vm8, %v4931_v33, %v1500_v56  ;;  %v1504_v13 = vsel %vm1502_vm10, %v1503_v49, %v4933_v58  ;;  %v3254_v17 = vmul.f32 %v3253_v62, %v3251_v34  ;;  %v3128_v52 = vadd.s32 536870912, %v3127_v45 }
 0x309   : > { %v3944_v7 = vpop.trf.xlu1  ;;  %v1732_v51 = vshll.u32 %v5045_v53, %v1729_v47  ;;  %v1733_v21 = vshrl.u32 %v5046_v57, %v1730_v11  ;;  %v1735_v38 = vshll.u32 %v5046_v57, %v1729_v47  ;;  %v1736_v1 = vshrl.u32 %v5047_v59, %v1730_v11 }
 0x30a   : > { %4329 = vst.msk [vmem:[%s6001_s8 + $0x3e8] sm:$0xff] %vm4203_vm7, %v3944_v7  ;;  %v3255_v5 = vxor.u32 2147483648, %v3254_v17  ;;  %v7630_v14 = vshrl.u32 %v3128_v52, 30  ;;  %v1739_v41 = vshrl.u32 %v5048_v61, %v1730_v11  ;;  %v1742_v44 = vshrl.u32 %v5049_v63, %v1730_v11 }
 0x30b   : > { %v3907_v42 = vpop.trf.xlu0  ;;  %v1505_v39 = vsel %vm1498_vm6, %v1501_v22, %v1504_v13  ;;  %v7637_v33 = vshrl.u32 %v1727_v54, 5  ;;  %v1738_v8 = vshll.u32 %v5047_v59, %v1729_v47  ;;  %v1741_v30 = vshll.u32 %v5048_v61, %v1729_v47 }
 0x30c   : > { %4308 = vst.msk [vmem:[%s6001_s8 + $0x340] sm:$0xff] %vm4203_vm7, %v3907_v42  ;;  %v3256_v10 = vsel %vm3173_vm11, %v3255_v5, %v3254_v17  ;;  %v3130_v58 = vshll.u32 %v7630_v14, 30  ;;  %v1734_v20 = vor.u32 %v1733_v21, %v1732_v51  ;;  %v1737_v50 = vor.u32 %v1736_v1, %v1735_v38 }
 0x30d   : > { %v3945_v16 = vpop.trf.xlu1  ;;  %v3259_v25 = vsel %vm7596_vm2, %v7265_v0, %v3256_v10  ;;  %v1743_v56 = vor.u32 %v1742_v44, %v1741_v30  ;;  %v1744_v49 = vshll.u32 %v5049_v63, %v1729_v47  ;;  %v1745_v55 = vshrl.u32 %v5050_v9, %v1730_v11 }
 0x30e   : > { %4330 = vst.msk [vmem:[%s6001_s8 + $0x3f0] sm:$0xff] %vm4203_vm7, %v3945_v16  ;;  %4934 = vcosq.f32 %v3259_v25  ;;  %v7651_v32 = vsub.s32 %v3127_v45, %v3130_v58  ;;  %v1740_v35 = vor.u32 %v1739_v41, %v1738_v8  ;;  %v1611_v34 = vand.u32 2147483647, %v7605_v29 }
 0x30f   : > { %v3908_v54 = vpop.trf.xlu0  ;;  %4936 = vsinq.f32 %v3259_v25  ;;  %v7654_v62 = vand.u32 3, %v3264_v19  ;;  %v1746_v27 = vor.u32 %v1745_v55, %v1744_v49  ;;  %v1615_v36 = vshrl.u32 %v1614_v3, 23 }
 0x310   : > { %4309 = vst.msk [vmem:[%s6001_s8 + $0x348] sm:$0xff] %vm4203_vm7, %v3908_v54  ;;  %v1506_v47 = vsel %vm1495_vm12, nan, %v1505_v39  ;;  %vm3069_vm13 = vcmp.lt.s32.totalorder %v7430_v40, 0  ;;  %v3133_v45 = vsub.s32 0, %v7651_v32  ;;  %vm1747_vm9 = vcmp.lt.s32.totalorder %v7637_v33, 1 }
 0x311   : > { %vm1750_vm11 = vcmp.lt.s32.totalorder %v7637_v33, 4  ;;  %v3946_v22 = vpop.trf.xlu1  ;;  %v1731_v19 = vshrl.u32 %v5045_v53, %v1730_v11  ;;  %vm1749_vm14 = vcmp.lt.s32.totalorder %v7637_v33, 3  ;;  %v1755_v3 = vsel %vm1747_vm9, %v1734_v20, %v1737_v50 }
 0x312   : > { %v1756_v37 = vsel %vm1750_vm11, %v1743_v56, 920167782  ;;  %4331 = vst.msk [vmem:[%s6001_s8 + $0x3f8] sm:$0xff] %vm4203_vm7, %v3946_v22  ;;  %v4643_v13 = vmin.u32 %v3133_v45, %v7651_v32  ;;  %vm1748_vm15 = vcmp.lt.s32.totalorder %v7637_v33, 2  ;;  %v1752_v52 = vsel %vm1750_vm11, %v1740_v35, 2102212464 }
 0x313   : > { %4011 = vxpose.xlu0.b32.start [1/2] (short) %v1506_v47, 128  ;;  %v3909_v17 = vpop.trf.xlu0  ;;  %v1757_v11 = vsel %vm1749_vm14, %v1740_v35, %v1756_v37  ;;  %v1759_v51 = vsel %vm1747_vm9, %v1737_v50, %v1740_v35  ;;  %v1760_v21 = vsel %vm1750_vm11, %v1746_v27, 1326507024  ;;  %v4586_v38 = vadd.s32 4294967169, %v1615_v36 }
 0x314   : > { %4310 = vst.msk [vmem:[%s6001_s8 + $0x350] sm:$0xff] %vm4203_vm7, %v3909_v17  ;;  %v1758_v7 = vsel %vm1748_vm15, %v1755_v3, %v1757_v11  ;;  %vm3266_vm0 = vcmp.lt.s32.totalorder %v7654_v62, 2  ;;  %vm7689_vm1 = vcmp.le.f32.partialorder %v3067_v31, 0.7853982  ;;  %v3135_v5 = vclz %v4643_v13 }
 0x315   : > { %v3153_v42 = vsub.s32 4, %v7630_v14  ;;  %v1751_v41 = vsel %vm1747_vm9, %v1731_v19, %v1734_v20  ;;  %vm3263_vm3 = vweird.f32 %v7265_v0  ;;  %v1753_v44 = vsel %vm1749_vm14, %v1737_v50, %v1752_v52 }
 0x316   : > { %v1761_v39 = vsel %vm1749_vm14, %v1743_v56, %v1760_v21  ;;  %v7702_v8 = vmul.u32.u64.low %v7621_v60, %v1758_v7  ;;  %v7703_v31 = vmul.u32.u64.high %v7621_v60, %v1758_v7, %v7702_v8  ;;  %vm3267_vm2 = vcmp.eq.s32.totalorder %v7654_v62, 0 }
 0x317   : > { %v4644_v30 = vadd.s32 4294967294, %v3135_v5  ;;  %v3910_v10 = vpop.trf.xlu0  ;;  %v1762_v58 = vsel %vm1748_vm15, %v1759_v51, %v1761_v39  ;;  %v1621_v16 = vadd.s32 1, %v4586_v38  ;;  %vm3270_vm4 = vcmp.eq.s32.totalorder %v7654_v62, 2 }
 0x318   : > { %4311 = vst.msk [vmem:[%s6001_s8 + $0x358] sm:$0xff] %vm4203_vm7, %v3910_v10  ;;  %v7713_v20 = vmul.u32.u64.low %v7621_v60, %v1762_v58  ;;  %v7714_v50 = vmul.u32.u64.high %v7621_v60, %v1762_v58, %v7713_v20  ;;  %v7718_v25 = vand.u32 8388607, %v1611_v34  ;;  %v4935_v56 = vpop.eup %4934  ;;  %v3123_v49 = vadd.s32 %v7584_v46, %v7581_v24 }
 0x319   : > { %vm4645_vm5 = vcmp.lt.s32.totalorder %v4644_v30, 0  ;;  %v1754_v55 = vsel %vm1748_vm15, %v1751_v41, %v1753_v44  ;;  %vm1622_vm6 = vcmp.gt.s32.totalorder %v1621_v16, 0  ;;  %v4937_v54 = vpop.eup %4936  ;;  %v3271_v35 = vxor.u32 2147483648, %v4935_v56 }
 0x31a   : > { %v3138_v27 = vsel %vm4645_vm5, 0, %v4644_v30  ;;  %v3154_v36 = vsel %vm3069_vm13, %v3153_v42, %v7630_v14  ;;  %v1773_v47 = vadd.s32 1, %v7703_v31  ;;  %v3268_v45 = vxor.u32 2147483648, %v4937_v54 }
 0x31b   : > { %v3139_v22 = vsub.s32 32, %v3138_v27  ;;  %v3143_v19 = vsub.s32 4294967266, %v3138_v27  ;;  %v3911_v3 = vpop.trf.xlu0  ;;  %v1623_v24 = vsel %vm1622_vm6, %v1621_v16, 0  ;;  %v3272_v46 = vsel %vm3270_vm4, %v3271_v35, %v4937_v54 }
 0x31c   : > { %v3140_v33 = vshll.u32 %v7651_v32, %v3138_v27  ;;  %4312 = vst.msk [vmem:[%s6001_s8 + $0x360] sm:$0xff] %vm4203_vm7, %v3911_v3  ;;  %v1770_v37 = vmul.u32 %v7621_v60, %v1754_v55  ;;  %vm1772_vm8 = vc.u32 %v7714_v50, %v7702_v8  ;;  %v3269_v14 = vsel %vm3267_vm2, %v4935_v56, %v3268_v45 }
 0x31d   : > { %v3141_v13 = vshrl.u32 %v3123_v49, %v3139_v22  ;;  %v3144_v17 = vadd.s32 127, %v3143_v19  ;;  %v1774_v52 = vsel %vm1772_vm8, %v1773_v47, %v7703_v31  ;;  %v3273_v11 = vsel %vm3266_vm0, %v3269_v14, %v3272_v46 }
 0x31e   : > { %v3156_v32 = vsel %vm7689_vm1, 0, %v3154_v36  ;;  %v1775_v7 = vadd.s32 %v1774_v52, %v1770_v37  ;;  %v1625_v51 = vand.u32 31, %v1623_v24  ;;  %v3274_v60 = vsel %vm3263_vm3, nan, %v3273_v11 }
 0x31f   : > { %v3142_v21 = vor.u32 %v3141_v13, %v3140_v33  ;;  %v3145_v38 = vshll.u32 %v3144_v17, 23  ;;  %v3912_v5 = vpop.trf.xlu0  ;;  %4044 = vxpose.xlu1.b32.end [2/2] (short) %v3274_v60, 128  ;;  %v316_v62 = vmul.f32 %v7408_v23, %v5194_v18  ;;  %v3160_v39 = vadd.s32 3, %v3156_v32 }
 0x320   : > { %4313 = vst.msk [vmem:[%s6001_s8 + $0x368] sm:$0xff] %vm4203_vm7, %v3912_v5  ;;  %v1776_v42 = vadd.s32 536870912, %v1775_v7  ;;  %v1626_v41 = vsub.s32 32, %v1625_v51  ;;  %v1619_v31 = vor.u32 8388608, %v7718_v25  ;;  %v7750_v30 = vshrl.u32 %v1623_v24, 5 }
 0x321   : > { %v3146_v44 = vor.u32 4788187, %v3145_v38  ;;  %v3149_v0 = vcvt.s32.f32 %v3142_v21  ;;  %v1637_v55 = vshll.u32 %v5048_v61, %v1625_v51  ;;  %v1628_v25 = vshll.u32 %v5045_v53, %v1625_v51 }
 0x322   : > { %v7752_v10 = vshrl.u32 %v1776_v42, 30  ;;  %v1629_v58 = vshrl.u32 %v5046_v57, %v1626_v41  ;;  %v1632_v16 = vshrl.u32 %v5047_v59, %v1626_v41  ;;  %v1635_v49 = vshrl.u32 %v5048_v61, %v1626_v41 }
 0x323   : > { %v3147_v20 = vand.u32 2147483647, %v3146_v44  ;;  %v3913_v56 = vpop.trf.xlu0  ;;  %v1638_v23 = vshrl.u32 %v5049_v63, %v1626_v41  ;;  %v1631_v35 = vshll.u32 %v5046_v57, %v1625_v51  ;;  %v1634_v27 = vshll.u32 %v5047_v59, %v1625_v51 }
 0x324   : > { %v1778_v54 = vshll.u32 %v7752_v10, 30  ;;  %4314 = vst.msk [vmem:[%s6001_s8 + $0x370] sm:$0xff] %vm4203_vm7, %v3913_v56  ;;  %v1640_v45 = vshll.u32 %v5049_v63, %v1625_v51  ;;  %v1641_v22 = vshrl.u32 %v5050_v9, %v1626_v41  ;;  %v1630_v3 = vor.u32 %v1629_v58, %v1628_v25 }
 0x325   : > { %v3150_v36 = vmul.f32 %v3149_v0, %v3147_v20  ;;  %v1639_v47 = vor.u32 %v1638_v23, %v1637_v55  ;;  %v1633_v24 = vor.u32 %v1632_v16, %v1631_v35  ;;  %v1636_v46 = vor.u32 %v1635_v49, %v1634_v27 }
 0x326   : > { %v7767_v19 = vsub.s32 %v1775_v7, %v1778_v54  ;;  %v7769_v37 = vand.u32 3, %v3160_v39  ;;  %v1642_v14 = vor.u32 %v1641_v22, %v1640_v45  ;;  %v7772_v13 = vadd.f32 %v5203_v26, %v316_v62 }
 0x327   : > { %v3151_v33 = vxor.u32 2147483648, %v3150_v36  ;;  %v3914_v17 = vpop.trf.xlu0  ;;  %vm1643_vm10 = vcmp.lt.s32.totalorder %v7750_v30, 1  ;;  %vm1646_vm12 = vcmp.lt.s32.totalorder %v7750_v30, 4  ;;  %v1659_v11 = vshll.u32 %v1619_v31, 8 }
 0x328   : > { %v1781_v52 = vsub.s32 0, %v7767_v19  ;;  %4315 = vst.msk [vmem:[%s6001_s8 + $0x378] sm:$0xff] %vm4203_vm7, %v3914_v17  ;;  %v1627_v7 = vshrl.u32 %v5045_v53, %v1626_v41  ;;  %vm1645_vm9 = vcmp.lt.s32.totalorder %v7750_v30, 3  ;;  %v1652_v51 = vsel %vm1646_vm12, %v1639_v47, 920167782 }
 0x329   : > { %v3152_v32 = vsel %vm3069_vm13, %v3151_v33, %v3150_v36  ;;  %v1648_v38 = vsel %vm1646_vm12, %v1636_v46, 2102212464  ;;  %v1651_v5 = vsel %vm1643_vm10, %v1630_v3, %v1633_v24  ;;  %v1653_v42 = vsel %vm1645_vm9, %v1636_v46, %v1652_v51 }
 0x32a   : > { %v3155_v60 = vsel %vm7689_vm1, %v7430_v40, %v3152_v32  ;;  %v4591_v21 = vmin.u32 %v1781_v52, %v7767_v19  ;;  %v1655_v41 = vsel %vm1643_vm10, %v1633_v24, %v1636_v46  ;;  %v1656_v62 = vsel %vm1646_vm12, %v1642_v14, 1326507024 }
 0x32b   : > { %4938 = vcosq.f32 %v3155_v60  ;;  %v1801_v39 = vsub.s32 4, %v7752_v10  ;;  %vm1644_vm13 = vcmp.lt.s32.totalorder %v7750_v30, 2  ;;  %v1647_v1 = vsel %vm1643_vm10, %v1627_v7, %v1630_v3 }
 0x32c   : > { %4940 = vsinq.f32 %v3155_v60  ;;  %v1783_v44 = vclz %v4591_v21  ;;  %v1649_v31 = vsel %vm1645_vm9, %v1633_v24, %v1648_v38  ;;  %v1654_v0 = vsel %vm1644_vm13, %v1651_v5, %v1653_v42 }
 0x32d   : > { %v1657_v58 = vsel %vm1645_vm9, %v1639_v47, %v1656_v62  ;;  %v7801_v56 = vmul.u32.u64.low %v1659_v11, %v1654_v0  ;;  %v7802_v49 = vmul.u32.u64.high %v1659_v11, %v1654_v0, %v7801_v56  ;;  %v3382_v54 = vand.u32 2139095040, %v7772_v13 }
 0x32e   : > { %v4592_v16 = vadd.s32 4294967294, %v1783_v44  ;;  %v1658_v20 = vsel %vm1644_vm13, %v1655_v41, %v1657_v58  ;;  %vm7811_vm11 = vcmp.le.f32.partialorder %v1715_v2, 0.7853982  ;;  %vm1717_vm14 = vcmp.lt.s32.totalorder %v7468_v43, 0 }
 0x32f   : > { %v7805_v55 = vmul.u32.u64.low %v1659_v11, %v1658_v20  ;;  %v7806_v23 = vmul.u32.u64.high %v1659_v11, %v1658_v20, %v7805_v55  ;;  %v1650_v30 = vsel %vm1644_vm13, %v1647_v1, %v1649_v31  ;;  %vm3162_vm0 = vcmp.lt.s32.totalorder %v7769_v37, 2 }
 0x330   : > { %vm4593_vm15 = vcmp.lt.s32.totalorder %v4592_v16, 0  ;;  %v1771_v35 = vadd.s32 %v7702_v8, %v7714_v50  ;;  %v3383_v36 = vshrl.u32 %v3382_v54, 23  ;;  %v315_v47 = vmul.f32 %v7490_v48, %v5194_v18 }
 0x331   : > { %v1786_v27 = vsel %vm4593_vm15, 0, %v4592_v16  ;;  %v1802_v2 = vsel %vm1717_vm14, %v1801_v39, %v7752_v10  ;;  %v1669_v3 = vadd.s32 1, %v7802_v49  ;;  %vm3163_vm1 = vcmp.eq.s32.totalorder %v7769_v37, 0 }
 0x332   : > { %v1787_v45 = vsub.s32 32, %v1786_v27  ;;  %v1791_v22 = vsub.s32 4294967266, %v1786_v27  ;;  %v1666_v24 = vmul.u32 %v1659_v11, %v1650_v30  ;;  %vm1668_vm3 = vc.u32 %v7806_v23, %v7801_v56 }
 0x333   : > { %v4654_v8 = vadd.s32 4294967169, %v3383_v36  ;;  %v1788_v50 = vshll.u32 %v7767_v19, %v1786_v27  ;;  %v1670_v33 = vsel %vm1668_vm3, %v1669_v3, %v7802_v49  ;;  %v1804_v10 = vsel %vm7811_vm11, 0, %v1802_v2 }
 0x334   : > { %v1789_v46 = vshrl.u32 %v1771_v35, %v1787_v45  ;;  %v1792_v48 = vadd.s32 127, %v1791_v22  ;;  %v1671_v17 = vadd.s32 %v1670_v33, %v1666_v24  ;;  %v7833_v32 = vadd.f32 %v5203_v26, %v315_v47 }
 0x335   : > { %v4939_v14 = vpop.eup %4938  ;;  %v3389_v52 = vadd.s32 1, %v4654_v8  ;;  %vm3166_vm2 = vcmp.eq.s32.totalorder %v7769_v37, 2  ;;  %v3379_v5 = vand.u32 2147483647, %v7772_v13  ;;  %v1808_v62 = vadd.s32 3, %v1804_v10 }
 0x336   : > { %v3995_v11 = vpop.trf.xlu1  ;;  %v4941_v7 = vpop.eup %4940  ;;  %v3167_v51 = vxor.u32 2147483648, %v4939_v14  ;;  %v1790_v60 = vor.u32 %v1789_v46, %v1788_v50  ;;  %v1793_v19 = vshll.u32 %v1792_v48, 23  ;;  %v1672_v38 = vadd.s32 536870912, %v1671_v17 }
 0x337   : > { %4348 = vst.msk [vmem:[%s6001_s8 + $0x480] sm:$0xff] %vm4203_vm7, %v3995_v11  ;;  %v3164_v21 = vxor.u32 2147483648, %v4941_v7  ;;  %vm3390_vm4 = vcmp.gt.s32.totalorder %v3389_v52, 0  ;;  %v3278_v0 = vand.u32 2139095040, %v7833_v32  ;;  %vm3159_vm5 = vweird.f32 %v7430_v40 }
 0x338   : > { %v3168_v42 = vsel %vm3166_vm2, %v3167_v51, %v4941_v7  ;;  %v1794_v41 = vor.u32 4788187, %v1793_v19  ;;  %v3391_v44 = vsel %vm3390_vm4, %v3389_v52, 0  ;;  %v7841_v1 = vshrl.u32 %v1672_v38, 30 }
 0x339   : > { %v3165_v39 = vsel %vm3163_vm1, %v4939_v14, %v3164_v21  ;;  %v3393_v31 = vand.u32 31, %v3391_v44  ;;  %v1797_v49 = vcvt.s32.f32 %v1790_v60  ;;  %v7850_v27 = vand.u32 3, %v1808_v62 }
 0x33a   : > { %v3996_v58 = vpop.trf.xlu1  ;;  %v3169_v16 = vsel %vm3162_vm0, %v3165_v39, %v3168_v42  ;;  %v1795_v20 = vand.u32 2147483647, %v1794_v41  ;;  %v1674_v54 = vshll.u32 %v7841_v1, 30  ;;  %v3386_v40 = vand.u32 8388607, %v3379_v5 }
 0x33b   : > { %4349 = vst.msk [vmem:[%s6001_s8 + $0x488] sm:$0xff] %vm4203_vm7, %v3996_v58  ;;  %v3170_v55 = vsel %vm3159_vm5, nan, %v3169_v16  ;;  %v3394_v30 = vsub.s32 32, %v3393_v31  ;;  %v3279_v47 = vshrl.u32 %v3278_v0, 23  ;;  %v3396_v2 = vshll.u32 %v5045_v53, %v3393_v31 }
 0x33c   : > { %4012 = vxpose.xlu0.b32.end [2/2] (short) %v3170_v55, 128  ;;  %v1798_v35 = vmul.f32 %v1797_v49, %v1795_v20  ;;  %v7852_v36 = vsub.s32 %v1671_v17, %v1674_v54  ;;  %v3392_v50 = vshrl.u32 %v3391_v44, 5  ;;  %v3399_v46 = vshll.u32 %v5046_v57, %v3393_v31 }
 0x33d   : > { %v3397_v37 = vshrl.u32 %v5046_v57, %v3394_v30  ;;  %v3400_v3 = vshrl.u32 %v5047_v59, %v3394_v30  ;;  %v3403_v24 = vshrl.u32 %v5048_v61, %v3394_v30  ;;  %v3402_v48 = vshll.u32 %v5047_v59, %v3393_v31 }
 0x33e   : > { %v3997_v45 = vpop.trf.xlu1  ;;  %v1799_v22 = vxor.u32 2147483648, %v1798_v35  ;;  %v1677_v8 = vsub.s32 0, %v7852_v36  ;;  %v3405_v10 = vshll.u32 %v5048_v61, %v3393_v31  ;;  %v3406_v17 = vshrl.u32 %v5049_v63, %v3394_v30 }
 0x33f   : > { %4350 = vst.msk [vmem:[%s6001_s8 + $0x490] sm:$0xff] %vm4203_vm7, %v3997_v45  ;;  %v3398_v14 = vor.u32 %v3397_v37, %v3396_v2  ;;  %v3401_v7 = vor.u32 %v3400_v3, %v3399_v46  ;;  %v3404_v51 = vor.u32 %v3403_v24, %v3402_v48  ;;  %v3408_v21 = vshll.u32 %v5049_v63, %v3393_v31 }
 0x340   : > { %v1800_v33 = vsel %vm1717_vm14, %v1799_v22, %v1798_v35  ;;  %v4587_v11 = vmin.u32 %v1677_v8, %v7852_v36  ;;  %v3407_v19 = vor.u32 %v3406_v17, %v3405_v10  ;;  %v3409_v38 = vshrl.u32 %v5050_v9, %v3394_v30 }
 0x341   : > { %v1803_v52 = vsel %vm7811_vm11, %v7468_v43, %v1800_v33  ;;  %v1667_v42 = vadd.s32 %v7801_v56, %v7806_v23  ;;  %v3387_v41 = vor.u32 8388608, %v3386_v40  ;;  %v3395_v62 = vshrl.u32 %v5045_v53, %v3394_v30 }
 0x342   : > { %v3998_v60 = vpop.trf.xlu1  ;;  %4942 = vcosq.f32 %v1803_v52  ;;  %v1679_v25 = vclz %v4587_v11  ;;  %v3410_v44 = vor.u32 %v3409_v38, %v3408_v21  ;;  %vm3411_vm6 = vcmp.lt.s32.totalorder %v3392_v50, 1 }
 0x343   : > { %4351 = vst.msk [vmem:[%s6001_s8 + $0x498] sm:$0xff] %vm4203_vm7, %v3998_v60  ;;  %4944 = vsinq.f32 %v1803_v52  ;;  %v4650_v39 = vadd.s32 4294967169, %v3279_v47  ;;  %vm3413_vm8 = vcmp.lt.s32.totalorder %v3392_v50, 3  ;;  %vm3414_vm10 = vcmp.lt.s32.totalorder %v3392_v50, 4 }
 0x344   : > { %v4588_v0 = vadd.s32 4294967294, %v1679_v25  ;;  %v3419_v31 = vsel %vm3411_vm6, %v3398_v14, %v3401_v7  ;;  %v3416_v16 = vsel %vm3414_vm10, %v3404_v51, 2102212464  ;;  %v3420_v20 = vsel %vm3414_vm10, %v3407_v19, 920167782 }
 0x345   : > { %v3423_v49 = vsel %vm3411_vm6, %v3401_v7, %v3404_v51  ;;  %v3424_v55 = vsel %vm3414_vm10, %v3410_v44, 1326507024  ;;  %vm3412_vm9 = vcmp.lt.s32.totalorder %v3392_v50, 2  ;;  %v3421_v56 = vsel %vm3413_vm8, %v3404_v51, %v3420_v20 }
 0x346   : > { %v3999_v58 = vpop.trf.xlu1  ;;  %vm4589_vm12 = vcmp.lt.s32.totalorder %v4588_v0, 0  ;;  %v3425_v23 = vsel %vm3413_vm8, %v3407_v19, %v3424_v55  ;;  %v3422_v30 = vsel %vm3412_vm9, %v3419_v31, %v3421_v56  ;;  %v3427_v40 = vshll.u32 %v3387_v41, 8 }
 0x347   : > { %4352 = vst.msk [vmem:[%s6001_s8 + $0x4a0] sm:$0xff] %vm4203_vm7, %v3999_v58  ;;  %v1682_v54 = vsel %vm4589_vm12, 0, %v4588_v0  ;;  %v3426_v35 = vsel %vm3412_vm9, %v3423_v49, %v3425_v23  ;;  %vm1613_vm13 = vcmp.lt.s32.totalorder %v7605_v29, 0  ;;  %v3415_v45 = vsel %vm3411_vm6, %v3395_v62, %v3398_v14 }
 0x348   : > { %v1683_v37 = vsub.s32 32, %v1682_v54  ;;  %v1687_v47 = vsub.s32 4294967266, %v1682_v54  ;;  %v3417_v22 = vsel %vm3413_vm8, %v3401_v7, %v3416_v16  ;;  %vm1807_vm11 = vweird.f32 %v7468_v43 }
 0x349   : > { %v7892_v3 = vmul.u32.u64.low %v3427_v40, %v3426_v35  ;;  %v7893_v24 = vmul.u32.u64.high %v3427_v40, %v3426_v35, %v7892_v3  ;;  %v7895_v8 = vmul.u32.u64.low %v3427_v40, %v3422_v30  ;;  %v7896_v46 = vmul.u32.u64.high %v3427_v40, %v3422_v30, %v7895_v8 }
 0x34a   : > { %v4000_v2 = vpop.trf.xlu1  ;;  %v1684_v48 = vshll.u32 %v7852_v36, %v1682_v54  ;;  %v1685_v33 = vshrl.u32 %v1667_v42, %v1683_v37  ;;  %v1688_v10 = vadd.s32 127, %v1687_v47  ;;  %v3285_v17 = vadd.s32 1, %v4650_v39 }
 0x34b   : > { %4353 = vst.msk [vmem:[%s6001_s8 + $0x4a8] sm:$0xff] %vm4203_vm7, %v4000_v2  ;;  %vm1811_vm14 = vcmp.eq.s32.totalorder %v7850_v27, 0  ;;  %vm1814_vm15 = vcmp.eq.s32.totalorder %v7850_v27, 2  ;;  %v3418_v52 = vsel %vm3412_vm9, %v3415_v45, %v3417_v22  ;;  %v3275_v11 = vand.u32 2147483647, %v7833_v32 }
 0x34c   : > { %v4943_v14 = vpop.eup %4942  ;;  %v1686_v60 = vor.u32 %v1685_v33, %v1684_v48  ;;  %v1689_v19 = vshll.u32 %v1688_v10, 23  ;;  %vm3286_vm0 = vcmp.gt.s32.totalorder %v3285_v17, 0  ;;  %v1697_v38 = vsub.s32 4, %v7841_v1 }
 0x34d   : > { %v4945_v7 = vpop.eup %4944  ;;  %v1815_v51 = vxor.u32 2147483648, %v4943_v14  ;;  %vm3436_vm1 = vc.u32 %v7893_v24, %v7895_v8  ;;  %v3437_v42 = vadd.s32 1, %v7896_v46  ;;  %vm7916_vm3 = vcmp.le.f32.partialorder %v1611_v34, 0.7853982 }
 0x34e   : > { %v4001_v21 = vpop.trf.xlu1  ;;  %v1812_v36 = vxor.u32 2147483648, %v4945_v7  ;;  %v1690_v41 = vor.u32 4788187, %v1689_v19  ;;  %v3434_v62 = vmul.u32 %v3427_v40, %v3418_v52  ;;  %v3287_v44 = vsel %vm3286_vm0, %v3285_v17, 0 }
 0x34f   : > { %4354 = vst.msk [vmem:[%s6001_s8 + $0x4b0] sm:$0xff] %vm4203_vm7, %v4001_v21  ;;  %v1816_v50 = vsel %vm1814_vm15, %v1815_v51, %v4945_v7  ;;  %vm1810_vm2 = vcmp.lt.s32.totalorder %v7850_v27, 2  ;;  %v3438_v0 = vsel %vm3436_vm1, %v3437_v42, %v7896_v46  ;;  %v3289_v31 = vand.u32 31, %v3287_v44  ;;  %v7936_v27 = vld [vmem:[%s5155_s25 + $0x8] sm:$0xff] }
 0x350   : > { %v1813_v39 = vsel %vm1811_vm14, %v4943_v14, %v1812_v36  ;;  %v1691_v16 = vand.u32 2147483647, %v1690_v41  ;;  %v1693_v20 = vcvt.s32.f32 %v1686_v60  ;;  %v3439_v34 = vadd.s32 %v3438_v0, %v3434_v62 }
 0x351   : > { %v1817_v58 = vsel %vm1810_vm2, %v1813_v39, %v1816_v50  ;;  %v7927_v55 = vsel %vm1613_vm13, %v1697_v38, %v7841_v1  ;;  %v7931_v56 = vand.u32 8388607, %v3275_v11  ;;  %v3290_v23 = vsub.s32 32, %v3289_v31 }
 0x352   : > { %v4002_v49 = vpop.trf.xlu1  ;;  %v7941_v54 = vrot.slane %v7936_v27, %v237_v28  ;;  %v1818_v30 = vsel %vm1807_vm11, nan, %v1817_v58  ;;  %v1694_v35 = vmul.f32 %v1693_v20, %v1691_v16  ;;  %v3440_v1 = vadd.s32 536870912, %v3439_v34 }
 0x353   : > { %4355 = vst.msk [vmem:[%s6001_s8 + $0x4b8] sm:$0xff] %vm4203_vm7, %v4002_v49  ;;  %v7945_v40 = vshrl.u32 %v3287_v44, 5  ;;  %v3292_v37 = vshll.u32 %v5045_v53, %v3289_v31  ;;  %v3293_v47 = vshrl.u32 %v5046_v57, %v3290_v23  ;;  %v3296_v45 = vshrl.u32 %v5047_v59, %v3290_v23 }
 0x354   : > { %v3299_v22 = vshrl.u32 %v5048_v61, %v3290_v23  ;;  %v1695_v2 = vxor.u32 2147483648, %v1694_v35  ;;  %v3441_v28 = vshrl.u32 %v3440_v1, 30  ;;  %v3295_v3 = vshll.u32 %v5046_v57, %v3289_v31 }
 0x355   : > { %v3302_v43 = vshrl.u32 %v5049_v63, %v3290_v23  ;;  %v3298_v33 = vshll.u32 %v5047_v59, %v3289_v31  ;;  %v3301_v10 = vshll.u32 %v5048_v61, %v3289_v31  ;;  %v3304_v17 = vshll.u32 %v5049_v63, %v3289_v31 }
 0x356   : > { %v3963_v46 = vpop.trf.xlu0  ;;  %v4003_v48 = vpop.trf.xlu1  ;;  %v3305_v14 = vshrl.u32 %v5050_v9, %v3290_v23  ;;  %v1696_v52 = vsel %vm1613_vm13, %v1695_v2, %v1694_v35  ;;  %v3442_v7 = vshll.u32 %v3441_v28, 30  ;;  %v3294_v51 = vor.u32 %v3293_v47, %v3292_v37 }
 0x357   : > { %4332 = vst.msk [vmem:[%s6001_s8 + $0x400] sm:$0xff] %vm4203_vm7, %v3963_v46  ;;  %4356 = vst.msk [vmem:[%s6001_s8 + $0x4c0] sm:$0xff] %vm4203_vm7, %v4003_v48  ;;  %v3297_v60 = vor.u32 %v3296_v45, %v3295_v3  ;;  %v1699_v19 = vsel %vm7916_vm3, %v7605_v29, %v1696_v52  ;;  %v3300_v21 = vor.u32 %v3299_v22, %v3298_v33  ;;  %v1700_v42 = vsel %vm7916_vm3, 0, %v7927_v55 }
 0x358   : > { %v3303_v36 = vor.u32 %v3302_v43, %v3301_v10  ;;  %v3306_v38 = vor.u32 %v3305_v14, %v3304_v17  ;;  %4107 = vxpose.xlu1.b32.start [1/2] (short) %v1818_v30, 128  ;;  %4946 = vcosq.f32 %v1699_v19  ;;  %v7969_v50 = vsub.s32 %v3439_v34, %v3442_v7 }
 0x359   : > { %v3283_v41 = vor.u32 8388608, %v7931_v56  ;;  %4948 = vsinq.f32 %v1699_v19  ;;  %v3465_v39 = vsub.s32 4, %v3441_v28  ;;  %vm3307_vm4 = vcmp.lt.s32.totalorder %v7945_v40, 1 }
 0x35a   : > { %v3964_v62 = vpop.trf.xlu0  ;;  %v4004_v44 = vpop.trf.xlu1  ;;  %v302_v0 = vmul.f32 %v7941_v54, %v5182_v12  ;;  %v3445_v25 = vsub.s32 0, %v7969_v50  ;;  %vm3309_vm5 = vcmp.lt.s32.totalorder %v7945_v40, 3  ;;  %vm3310_vm6 = vcmp.lt.s32.totalorder %v7945_v40, 4 }
 0x35b   : > { %4333 = vst.msk [vmem:[%s6001_s8 + $0x408] sm:$0xff] %vm4203_vm7, %v3964_v62  ;;  %4357 = vst.msk [vmem:[%s6001_s8 + $0x4c8] sm:$0xff] %vm4203_vm7, %v4004_v44  ;;  %v3315_v31 = vsel %vm3307_vm4, %v3294_v51, %v3297_v60  ;;  %v3291_v58 = vshrl.u32 %v5045_v53, %v3290_v23  ;;  %v3312_v16 = vsel %vm3310_vm6, %v3300_v21, 2102212464  ;;  %v3316_v20 = vsel %vm3310_vm6, %v3303_v36, 920167782 }
 0x35c   : > { %v3320_v34 = vsel %vm3310_vm6, %v3306_v38, 1326507024  ;;  %v4655_v49 = vmin.u32 %v3445_v25, %v7969_v50  ;;  %vm3308_vm8 = vcmp.lt.s32.totalorder %v7945_v40, 2  ;;  %v3317_v55 = vsel %vm3309_vm5, %v3300_v21, %v3316_v20 }
 0x35d   : > { %v3319_v56 = vsel %vm3307_vm4, %v3297_v60, %v3300_v21  ;;  %v3318_v1 = vsel %vm3308_vm8, %v3315_v31, %v3317_v55  ;;  %v3321_v23 = vsel %vm3309_vm5, %v3303_v36, %v3320_v34  ;;  %v3323_v37 = vshll.u32 %v3283_v41, 8 }
 0x35e   : > { %v3965_v30 = vpop.trf.xlu0  ;;  %v4005_v35 = vpop.trf.xlu1  ;;  %v8000_v47 = vadd.f32 %v5186_v15, %v302_v0  ;;  %v1704_v45 = vadd.s32 3, %v1700_v42  ;;  %v3447_v22 = vclz %v4655_v49  ;;  %v3311_v2 = vsel %vm3307_vm4, %v3291_v58, %v3294_v51 }
 0x35f   : > { %4334 = vst.msk [vmem:[%s6001_s8 + $0x410] sm:$0xff] %vm4203_vm7, %v3965_v30  ;;  %4358 = vst.msk [vmem:[%s6001_s8 + $0x4d0] sm:$0xff] %vm4203_vm7, %v4005_v35  ;;  %v3313_v3 = vsel %vm3309_vm5, %v3297_v60, %v3312_v16  ;;  %vm3381_vm10 = vcmp.lt.s32.totalorder %v7772_v13, 0  ;;  %v3322_v43 = vsel %vm3308_vm8, %v3319_v56, %v3321_v23  ;;  %vm8020_vm12 = vcmp.le.f32.partialorder %v3379_v5, 0.7853982 }
 0x360   : > { %v8009_v46 = vmul.u32.u64.low %v3323_v37, %v3318_v1  ;;  %v8010_v48 = vmul.u32.u64.high %v3323_v37, %v3318_v1, %v8009_v46  ;;  %v4656_v33 = vadd.s32 4294967294, %v3447_v22  ;;  %v3466_v10 = vsel %vm3381_vm10, %v3465_v39, %v3441_v28 }
 0x361   : > { %v8015_v17 = vmul.u32.u64.low %v3323_v37, %v3322_v43  ;;  %v8016_v14 = vmul.u32.u64.high %v3323_v37, %v3322_v43, %v8015_v17  ;;  %v3314_v60 = vsel %vm3308_vm8, %v3311_v2, %v3313_v3  ;;  %v1926_v28 = vand.u32 2139095040, %v8000_v47 }
 0x362   : > { %v3966_v52 = vpop.trf.xlu0  ;;  %v4006_v7 = vpop.trf.xlu1  ;;  %v1705_v21 = vand.u32 3, %v1704_v45  ;;  %v3435_v36 = vadd.s32 %v7895_v8, %v7893_v24  ;;  %vm4657_vm9 = vcmp.lt.s32.totalorder %v4656_v33, 0  ;;  %v8036_v5 = vrot.slane %v7936_v27, %v233_v4 }
 0x363   : > { %4335 = vst.msk [vmem:[%s6001_s8 + $0x418] sm:$0xff] %vm4203_vm7, %v3966_v52  ;;  %4359 = vst.msk [vmem:[%s6001_s8 + $0x4d8] sm:$0xff] %vm4203_vm7, %v4006_v7  ;;  %v4947_v19 = vpop.eup %4946  ;;  %v3450_v38 = vsel %vm4657_vm9, 0, %v4656_v33  ;;  %v3468_v42 = vsel %vm8020_vm12, 0, %v3466_v10  ;;  %v3333_v41 = vadd.s32 1, %v8010_v48  ;;  %v1927_v62 = vshrl.u32 %v1926_v28, 23 }
 0x364   : > { %v4949_v40 = vpop.eup %4948  ;;  %v3451_v44 = vsub.s32 32, %v3450_v38  ;;  %v3455_v39 = vsub.s32 4294967266, %v3450_v38  ;;  %v3330_v0 = vmul.u32 %v3323_v37, %v3314_v60  ;;  %v1923_v6 = vand.u32 2147483647, %v8000_v47 }
 0x365   : > { %v1708_v25 = vxor.u32 2147483648, %v4949_v40  ;;  %v1711_v31 = vxor.u32 2147483648, %v4947_v19  ;;  %vm3332_vm13 = vc.u32 %v8016_v14, %v8009_v46  ;;  %v4598_v4 = vadd.s32 4294967169, %v1927_v62 }
 0x366   : > { %v3967_v24 = vpop.trf.xlu0  ;;  %v4007_v8 = vpop.trf.xlu1  ;;  %v3452_v27 = vshll.u32 %v7969_v50, %v3450_v38  ;;  %v3453_v58 = vshrl.u32 %v3435_v36, %v3451_v44  ;;  %v3456_v16 = vadd.s32 127, %v3455_v39  ;;  %v3334_v20 = vsel %vm3332_vm13, %v3333_v41, %v8010_v48 }
 0x367   : > { %4336 = vst.msk [vmem:[%s6001_s8 + $0x420] sm:$0xff] %vm4203_vm7, %v3967_v24  ;;  %4360 = vst.msk [vmem:[%s6001_s8 + $0x4e0] sm:$0xff] %vm4203_vm7, %v4007_v8  ;;  %vm1707_vm11 = vcmp.eq.s32.totalorder %v1705_v21, 0  ;;  %v3335_v34 = vadd.s32 %v3334_v20, %v3330_v0  ;;  %v1933_v49 = vadd.s32 1, %v4598_v4  ;;  %vm1710_vm14 = vcmp.eq.s32.totalorder %v1705_v21, 2 }
 0x368   : > { %v3454_v55 = vor.u32 %v3453_v58, %v3452_v27  ;;  %v3457_v56 = vshll.u32 %v3456_v16, 23  ;;  %v3472_v30 = vadd.s32 3, %v3468_v42  ;;  %v1709_v23 = vsel %vm1707_vm11, %v4947_v19, %v1708_v25 }
 0x369   : > { %v1712_v37 = vsel %vm1710_vm14, %v1711_v31, %v4949_v40  ;;  %v3336_v45 = vadd.s32 536870912, %v3335_v34  ;;  %vm1934_vm15 = vcmp.gt.s32.totalorder %v1933_v49, 0  ;;  %v1930_v22 = vand.u32 8388607, %v1923_v6 }
 0x36a   : > { %v3968_v35 = vpop.trf.xlu0  ;;  %v4008_v1 = vpop.trf.xlu1  ;;  %v3458_v50 = vor.u32 4788187, %v3457_v56  ;;  %v1935_v2 = vsel %vm1934_vm15, %v1933_v49, 0  ;;  %v301_v3 = vmul.f32 %v8036_v5, %v5182_v12  ;;  %vm1706_vm0 = vcmp.lt.s32.totalorder %v1705_v21, 2 }
 0x36b   : > { %4337 = vst.msk [vmem:[%s6001_s8 + $0x428] sm:$0xff] %vm4203_vm7, %v3968_v35  ;;  %4361 = vst.msk [vmem:[%s6001_s8 + $0x4e8] sm:$0xff] %vm4203_vm7, %v4008_v1  ;;  %v3337_v43 = vshrl.u32 %v3336_v45, 30  ;;  %v1937_v48 = vand.u32 31, %v1935_v2  ;;  %vm1703_vm1 = vweird.f32 %v7605_v29  ;;  %v1713_v33 = vsel %vm1706_vm0, %v1709_v23, %v1712_v37 }
 0x36c   : > { %v3459_v10 = vand.u32 2147483647, %v3458_v50  ;;  %v3461_v17 = vcvt.s32.f32 %v3454_v55  ;;  %v8059_v60 = vand.u32 3, %v3472_v30  ;;  %vm3277_vm3 = vcmp.lt.s32.totalorder %v7833_v32, 0 }
 0x36d   : > { %v3338_v28 = vshll.u32 %v3337_v43, 30  ;;  %v1938_v12 = vsub.s32 32, %v1937_v48  ;;  %v8068_v19 = vmul.f32 %v7941_v54, %v5194_v18  ;;  %v8072_v36 = vadd.s32 %v8009_v46, %v8016_v14 }
 0x36e   : > { %v3969_v52 = vpop.trf.xlu0  ;;  %v4009_v7 = vpop.trf.xlu1  ;;  %v3462_v21 = vmul.f32 %v3461_v17, %v3459_v10  ;;  %v1931_v40 = vor.u32 8388608, %v1930_v22  ;;  %v8075_v38 = vadd.f32 %v5186_v15, %v301_v3  ;;  %v1714_v42 = vsel %vm1703_vm1, nan, %v1713_v33 }
 0x36f   : > { %4338 = vst.msk [vmem:[%s6001_s8 + $0x430] sm:$0xff] %vm4203_vm7, %v3969_v52  ;;  %4362 = vst.msk [vmem:[%s6001_s8 + $0x4f0] sm:$0xff] %vm4203_vm7, %v4009_v7  ;;  %v8079_v41 = vsub.s32 %v3335_v34, %v3338_v28  ;;  %v8081_v62 = vshrl.u32 %v1935_v2, 5  ;;  %v1941_v54 = vshrl.u32 %v5046_v57, %v1938_v12  ;;  %v1940_v0 = vshll.u32 %v5045_v53, %v1937_v48 }
 0x370   : > { %v3463_v44 = vxor.u32 2147483648, %v3462_v21  ;;  %v1944_v46 = vshrl.u32 %v5047_v59, %v1938_v12  ;;  %v1947_v14 = vshrl.u32 %v5048_v61, %v1938_v12  ;;  %v1943_v29 = vshll.u32 %v5046_v57, %v1937_v48 }
 0x371   : > { %v3341_v24 = vsub.s32 0, %v8079_v41  ;;  %v1946_v8 = vshll.u32 %v5047_v59, %v1937_v48  ;;  %v1950_v25 = vshrl.u32 %v5049_v63, %v1938_v12  ;;  %v3361_v4 = vsub.s32 4, %v3337_v43 }
 0x372   : > { %v3970_v39 = vpop.trf.xlu0  ;;  %v4010_v15 = vpop.trf.xlu1  ;;  %v3464_v31 = vsel %vm3381_vm10, %v3463_v44, %v3462_v21  ;;  %v1942_v27 = vor.u32 %v1941_v54, %v1940_v0  ;;  %v1949_v58 = vshll.u32 %v5048_v61, %v1937_v48  ;;  %v1945_v34 = vor.u32 %v1944_v46, %v1943_v29 }
 0x373   : > { %4339 = vst.msk [vmem:[%s6001_s8 + $0x438] sm:$0xff] %vm4203_vm7, %v3970_v39  ;;  %4363 = vst.msk [vmem:[%s6001_s8 + $0x4f8] sm:$0xff] %vm4203_vm7, %v4010_v15  ;;  %v3467_v16 = vsel %vm8020_vm12, %v7772_v13, %v3464_v31  ;;  %v4651_v20 = vmin.u32 %v3341_v24, %v8079_v41  ;;  %v1948_v49 = vor.u32 %v1947_v14, %v1946_v8  ;;  %vm8106_vm2 = vcmp.le.f32.partialorder %v3275_v11, 0.7853982 }
 0x374   : > { %4950 = vcosq.f32 %v3467_v16  ;;  %v1951_v56 = vor.u32 %v1950_v25, %v1949_v58  ;;  %v1952_v30 = vshll.u32 %v5049_v63, %v1937_v48  ;;  %v1953_v35 = vshrl.u32 %v5050_v9, %v1938_v12 }
 0x375   : > { %4075 = vxpose.xlu0.b32.start [1/2] (short) %v1714_v42, 128  ;;  %4952 = vsinq.f32 %v3467_v16  ;;  %v3343_v51 = vclz %v4651_v20  ;;  %v8112_v23 = vshll.u32 %v1931_v40, 8  ;;  %v1822_v37 = vand.u32 2139095040, %v8075_v38 }
 0x376   : > { %v3971_v55 = vpop.trf.xlu0  ;;  %v3362_v45 = vsel %vm3277_vm3, %v3361_v4, %v3337_v43  ;;  %v1939_v50 = vshrl.u32 %v5045_v53, %v1938_v12  ;;  %v1954_v22 = vor.u32 %v1953_v35, %v1952_v30  ;;  %vm1955_vm4 = vcmp.lt.s32.totalorder %v8081_v62, 1 }
 0x377   : > { %4340 = vst.msk [vmem:[%s6001_s8 + $0x440] sm:$0xff] %vm4203_vm7, %v3971_v55  ;;  %v4652_v11 = vadd.s32 4294967294, %v3343_v51  ;;  %vm1957_vm5 = vcmp.lt.s32.totalorder %v8081_v62, 3  ;;  %vm1958_vm6 = vcmp.lt.s32.totalorder %v8081_v62, 4  ;;  %v1963_v2 = vsel %vm1955_vm4, %v1942_v27, %v1945_v34 }
 0x378   : > { %v1960_v48 = vsel %vm1958_vm6, %v1948_v49, 2102212464  ;;  %v1964_v33 = vsel %vm1958_vm6, %v1951_v56, 920167782  ;;  %v1967_v10 = vsel %vm1955_vm4, %v1945_v34, %v1948_v49  ;;  %v1968_v43 = vsel %vm1958_vm6, %v1954_v22, 1326507024 }
 0x379   : > { %vm3475_vm8 = vcmp.eq.s32.totalorder %v8059_v60, 0  ;;  %vm4653_vm10 = vcmp.lt.s32.totalorder %v4652_v11, 0  ;;  %vm1956_vm12 = vcmp.lt.s32.totalorder %v8081_v62, 2  ;;  %v1965_v17 = vsel %vm1957_vm5, %v1948_v49, %v1964_v33 }
 0x37a   : > { %v3972_v3 = vpop.trf.xlu0  ;;  %v1969_v52 = vsel %vm1957_vm5, %v1951_v56, %v1968_v43  ;;  %vm3474_vm9 = vcmp.lt.s32.totalorder %v8059_v60, 2  ;;  %v3346_v7 = vsel %vm4653_vm10, 0, %v4652_v11  ;;  %v1959_v28 = vsel %vm1955_vm4, %v1939_v50, %v1942_v27 }
 0x37b   : > { %4341 = vst.msk [vmem:[%s6001_s8 + $0x448] sm:$0xff] %vm4203_vm7, %v3972_v3  ;;  %v1966_v12 = vsel %vm1956_vm12, %v1963_v2, %v1965_v17  ;;  %v1970_v21 = vsel %vm1956_vm12, %v1967_v10, %v1969_v52  ;;  %vm3471_vm13 = vweird.f32 %v7772_v13  ;;  %v3347_v40 = vsub.s32 32, %v3346_v7 }
 0x37c   : > { %v3351_v42 = vsub.s32 4294967266, %v3346_v7  ;;  %v1961_v54 = vsel %vm1957_vm5, %v1945_v34, %v1960_v48  ;;  %v1823_v44 = vshrl.u32 %v1822_v37, 23  ;;  %v3348_v24 = vshll.u32 %v8079_v41, %v3346_v7 }
 0x37d   : > { %v8144_v0 = vmul.u32.u64.low %v8112_v23, %v1970_v21  ;;  %v8145_v46 = vmul.u32.u64.high %v8112_v23, %v1970_v21, %v8144_v0  ;;  %v8148_v14 = vmul.u32.u64.low %v8112_v23, %v1966_v12  ;;  %v8149_v15 = vmul.u32.u64.high %v8112_v23, %v1966_v12, %v8148_v14 }
 0x37e   : > { %v3973_v39 = vpop.trf.xlu0  ;;  %v3349_v29 = vshrl.u32 %v8072_v36, %v3347_v40  ;;  %v3352_v8 = vadd.s32 127, %v3351_v42  ;;  %v4594_v25 = vadd.s32 4294967169, %v1823_v44  ;;  %v4951_v31 = vpop.eup %4950  ;;  %vm3478_vm11 = vcmp.eq.s32.totalorder %v8059_v60, 2 }
 0x37f   : > { %4342 = vst.msk [vmem:[%s6001_s8 + $0x450] sm:$0xff] %vm4203_vm7, %v3973_v39  ;;  %v3364_v4 = vsel %vm8106_vm2, 0, %v3362_v45  ;;  %v1962_v27 = vsel %vm1956_vm12, %v1959_v28, %v1961_v54  ;;  %v8163_v58 = vadd.f32 %v5203_v26, %v8068_v19  ;;  %v4953_v41 = vpop.eup %4952  ;;  %v3479_v36 = vxor.u32 2147483648, %v4951_v31 }
 0x380   : > { %v3350_v16 = vor.u32 %v3349_v29, %v3348_v24  ;;  %v3353_v20 = vshll.u32 %v3352_v8, 23  ;;  %v1829_v34 = vadd.s32 1, %v4594_v25  ;;  %v3476_v49 = vxor.u32 2147483648, %v4953_v41 }
 0x381   : > { %vm1980_vm14 = vc.u32 %v8145_v46, %v8148_v14  ;;  %v1981_v56 = vadd.s32 1, %v8149_v15  ;;  %v1819_v30 = vand.u32 2147483647, %v8075_v38  ;;  %v3480_v62 = vsel %vm3478_vm11, %v3479_v36, %v4953_v41 }
 0x382   : > { %v3974_v55 = vpop.trf.xlu0  ;;  %v3354_v35 = vor.u32 4788187, %v3353_v20  ;;  %v1978_v19 = vmul.u32 %v8112_v23, %v1962_v27  ;;  %vm1830_vm15 = vcmp.gt.s32.totalorder %v1829_v34, 0  ;;  %v3477_v51 = vsel %vm3475_vm8, %v4951_v31, %v3476_v49 }
 0x383   : > { %4343 = vst.msk [vmem:[%s6001_s8 + $0x458] sm:$0xff] %vm4203_vm7, %v3974_v55  ;;  %v3368_v37 = vadd.s32 3, %v3364_v4  ;;  %v1982_v45 = vsel %vm1980_vm14, %v1981_v56, %v8149_v15  ;;  %v1831_v50 = vsel %vm1830_vm15, %v1829_v34, 0  ;;  %v3481_v22 = vsel %vm3474_vm9, %v3477_v51, %v3480_v62 }
 0x384   : > { %v3355_v11 = vand.u32 2147483647, %v3354_v35  ;;  %v3357_v2 = vcvt.s32.f32 %v3350_v16  ;;  %v1983_v3 = vadd.s32 %v1982_v45, %v1978_v19  ;;  %v3482_v48 = vsel %vm3471_vm13, nan, %v3481_v22 }
 0x385   : > { %v1833_v10 = vand.u32 31, %v1831_v50  ;;  %4108 = vxpose.xlu1.b32.end [2/2] (short) %v3482_v48, 128  ;;  %v1826_v17 = vand.u32 8388607, %v1819_v30  ;;  %v8185_v52 = vand.u32 3, %v3368_v37  ;;  %v8187_v60 = vshrl.u32 %v1831_v50, 5 }
 0x386   : > { %v3975_v33 = vpop.trf.xlu0  ;;  %v3358_v23 = vmul.f32 %v3357_v2, %v3355_v11  ;;  %v1984_v43 = vadd.s32 536870912, %v1983_v3  ;;  %v3590_v28 = vand.u32 2139095040, %v8163_v58  ;;  %vm3367_vm4 = vweird.f32 %v7833_v32 }
 0x387   : > { %4344 = vst.msk [vmem:[%s6001_s8 + $0x460] sm:$0xff] %vm4203_vm7, %v3975_v33  ;;  %v1834_v7 = vsub.s32 32, %v1833_v10  ;;  %v1836_v21 = vshll.u32 %v5045_v53, %v1833_v10  ;;  %v1839_v40 = vshll.u32 %v5046_v57, %v1833_v10  ;;  %v1842_v39 = vshll.u32 %v5047_v59, %v1833_v10 }
 0x388   : > { %v3359_v13 = vxor.u32 2147483648, %v3358_v23  ;;  %v8190_v12 = vshrl.u32 %v1984_v43, 30  ;;  %v1845_v29 = vshll.u32 %v5048_v61, %v1833_v10  ;;  %v1827_v36 = vor.u32 8388608, %v1826_v17 }
 0x389   : > { %v1837_v54 = vshrl.u32 %v5046_v57, %v1834_v7  ;;  %v1840_v44 = vshrl.u32 %v5047_v59, %v1834_v7  ;;  %v1843_v0 = vshrl.u32 %v5048_v61, %v1834_v7  ;;  %v1846_v8 = vshrl.u32 %v5049_v63, %v1834_v7 }
 0x38a   : > { %v3976_v42 = vpop.trf.xlu0  ;;  %v3360_v15 = vsel %vm3277_vm3, %v3359_v13, %v3358_v23  ;;  %v1986_v24 = vshll.u32 %v8190_v12, 30  ;;  %v1848_v34 = vshll.u32 %v5049_v63, %v1833_v10  ;;  %v1849_v49 = vshrl.u32 %v5050_v9, %v1834_v7 }
 0x38b   : > { %4345 = vst.msk [vmem:[%s6001_s8 + $0x468] sm:$0xff] %vm4203_vm7, %v3976_v42  ;;  %v3363_v25 = vsel %vm8106_vm2, %v7833_v32, %v3360_v15  ;;  %v1838_v31 = vor.u32 %v1837_v54, %v1836_v21  ;;  %v1841_v4 = vor.u32 %v1840_v44, %v1839_v40  ;;  %v1844_v27 = vor.u32 %v1843_v0, %v1842_v39 }
 0x38c   : > { %4954 = vcosq.f32 %v3363_v25  ;;  %v8208_v41 = vsub.s32 %v1983_v3, %v1986_v24  ;;  %v1847_v16 = vor.u32 %v1846_v8, %v1845_v29  ;;  %v3591_v55 = vshrl.u32 %v3590_v28, 23 }
 0x38d   : > { %4956 = vsinq.f32 %v3363_v25  ;;  %vm1851_vm0 = vcmp.lt.s32.totalorder %v8187_v60, 1  ;;  %vm1853_vm1 = vcmp.lt.s32.totalorder %v8187_v60, 3  ;;  %vm1854_vm3 = vcmp.lt.s32.totalorder %v8187_v60, 4 }
 0x38e   : > { %v3977_v20 = vpop.trf.xlu0  ;;  %v1989_v56 = vsub.s32 0, %v8208_v41  ;;  %v1850_v1 = vor.u32 %v1849_v49, %v1848_v34  ;;  %v1856_v62 = vsel %vm1854_vm3, %v1844_v27, 2102212464  ;;  %v1859_v35 = vsel %vm1851_vm0, %v1838_v31, %v1841_v4 }
 0x38f   : > { %4346 = vst.msk [vmem:[%s6001_s8 + $0x470] sm:$0xff] %vm4203_vm7, %v3977_v20  ;;  %v1860_v19 = vsel %vm1854_vm3, %v1847_v16, 920167782  ;;  %v1835_v37 = vshrl.u32 %v5045_v53, %v1834_v7  ;;  %vm1852_vm2 = vcmp.lt.s32.totalorder %v8187_v60, 2  ;;  %v1863_v22 = vsel %vm1851_vm0, %v1841_v4, %v1844_v27 }
 0x390   : > { %v4599_v51 = vmin.u32 %v1989_v56, %v8208_v41  ;;  %v1861_v45 = vsel %vm1853_vm1, %v1844_v27, %v1860_v19  ;;  %v1864_v11 = vsel %vm1854_vm3, %v1850_v1, 1326507024  ;;  %v1867_v2 = vshll.u32 %v1827_v36, 8 }
 0x391   : > { %v1862_v50 = vsel %vm1852_vm2, %v1859_v35, %v1861_v45  ;;  %v1855_v33 = vsel %vm1851_vm0, %v1835_v37, %v1838_v31  ;;  %v1857_v10 = vsel %vm1853_vm1, %v1841_v4, %v1856_v62  ;;  %vm1925_vm5 = vcmp.lt.s32.totalorder %v8000_v47, 0 }
 0x392   : > { %v3978_v3 = vpop.trf.xlu0  ;;  %v1991_v48 = vclz %v4599_v51  ;;  %v1865_v23 = vsel %vm1853_vm1, %v1847_v16, %v1864_v11  ;;  %v8239_v43 = vmul.u32.u64.low %v1867_v2, %v1862_v50  ;;  %v8240_v17 = vmul.u32.u64.high %v1867_v2, %v1862_v50, %v8239_v43 }
 0x393   : > { %4347 = vst.msk [vmem:[%s6001_s8 + $0x478] sm:$0xff] %vm4203_vm7, %v3978_v3  ;;  %v3587_v7 = vand.u32 2147483647, %v8163_v58  ;;  %vm3370_vm6 = vcmp.lt.s32.totalorder %v8185_v52, 2  ;;  %v1866_v13 = vsel %vm1852_vm2, %v1863_v22, %v1865_v23  ;;  %v4662_v21 = vadd.s32 4294967169, %v3591_v55 }
 0x394   : > { %v4600_v28 = vadd.s32 4294967294, %v1991_v48  ;;  %vm3371_vm8 = vcmp.eq.s32.totalorder %v8185_v52, 0  ;;  %v1858_v40 = vsel %vm1852_vm2, %v1855_v33, %v1857_v10  ;;  %vm3374_vm10 = vcmp.eq.s32.totalorder %v8185_v52, 2 }
 0x395   : > { %v8250_v42 = vmul.u32.u64.low %v1867_v2, %v1866_v13  ;;  %v8251_v54 = vmul.u32.u64.high %v1867_v2, %v1866_v13, %v8250_v42  ;;  %v1979_v39 = vadd.s32 %v8148_v14, %v8145_v46  ;;  %v3597_v0 = vadd.s32 1, %v4662_v21 }
 0x396   : > { %v4955_v44 = vpop.eup %4954  ;;  %vm4601_vm12 = vcmp.lt.s32.totalorder %v4600_v28, 0  ;;  %v2009_v8 = vsub.s32 4, %v8190_v12  ;;  %v1877_v25 = vadd.s32 1, %v8240_v17  ;;  %v1874_v27 = vmul.u32 %v1867_v2, %v1858_v40 }
 0x397   : > { %v4957_v15 = vpop.eup %4956  ;;  %v3375_v24 = vxor.u32 2147483648, %v4955_v44  ;;  %v1994_v29 = vsel %vm4601_vm12, 0, %v4600_v28  ;;  %vm1876_vm9 = vc.u32 %v8251_v54, %v8239_v43  ;;  %vm3598_vm13 = vcmp.gt.s32.totalorder %v3597_v0, 0 }
 0x398   : > { %v3372_v60 = vxor.u32 2147483648, %v4957_v15  ;;  %v1995_v31 = vsub.s32 32, %v1994_v29  ;;  %v1999_v4 = vsub.s32 4294967266, %v1994_v29  ;;  %v1996_v16 = vshll.u32 %v8208_v41, %v1994_v29 }
 0x399   : > { %v3376_v36 = vsel %vm3374_vm10, %v3375_v24, %v4957_v15  ;;  %v1878_v34 = vsel %vm1876_vm9, %v1877_v25, %v8240_v17  ;;  %v3599_v56 = vsel %vm3598_vm13, %v3597_v0, 0  ;;  %v317_v41 = vmul.f32 %v8036_v5, %v5194_v18 }
 0x39a   : > { %v3373_v46 = vsel %vm3371_vm8, %v4955_v44, %v3372_v60  ;;  %v1997_v14 = vshrl.u32 %v1979_v39, %v1995_v31  ;;  %v2000_v20 = vadd.s32 127, %v1999_v4  ;;  %v1879_v55 = vadd.s32 %v1878_v34, %v1874_v27 }
 0x39b   : > { %v3377_v49 = vsel %vm3370_vm6, %v3373_v46, %v3376_v36  ;;  %v2010_v19 = vsel %vm1925_vm5, %v2009_v8, %v8190_v12  ;;  %v4059_v51 = vpop.trf.xlu1  ;;  %v3601_v45 = vand.u32 31, %v3599_v56  ;;  %vm8277_vm11 = vcmp.le.f32.partialorder %v1923_v6, 0.7853982 }
 0x39c   : > { %v3378_v1 = vsel %vm3367_vm4, nan, %v3377_v49  ;;  %v1998_v62 = vor.u32 %v1997_v14, %v1996_v16  ;;  %v2001_v35 = vshll.u32 %v2000_v20, 23  ;;  %v1880_v37 = vadd.s32 536870912, %v1879_v55  ;;  %4380 = vst.msk [vmem:[%s6001_s8 + $0x580] sm:$0xff] %vm4203_vm7, %v4059_v51 }
 0x39d   : > { %4076 = vxpose.xlu0.b32.end [2/2] (short) %v3378_v1, 128  ;;  %v3594_v32 = vand.u32 8388607, %v3587_v7  ;;  %v2012_v5 = vsel %vm8277_vm11, 0, %v2010_v19  ;;  %v3602_v50 = vsub.s32 32, %v3601_v45  ;;  %v8288_v22 = vadd.f32 %v5203_v26, %v317_v41 }
 0x39e   : > { %v2002_v18 = vor.u32 4788187, %v2001_v35  ;;  %v8285_v12 = vshrl.u32 %v1880_v37, 30  ;;  %v2005_v2 = vcvt.s32.f32 %v1998_v62  ;;  %v8290_v6 = vshrl.u32 %v3599_v56, 5 }
 0x39f   : > { %v3604_v3 = vshll.u32 %v5045_v53, %v3601_v45  ;;  %v4060_v48 = vpop.trf.xlu1  ;;  %v3605_v10 = vshrl.u32 %v5046_v57, %v3602_v50  ;;  %v3607_v23 = vshll.u32 %v5046_v57, %v3601_v45  ;;  %v3610_v17 = vshll.u32 %v5047_v59, %v3601_v45 }
 0x3a0   : > { %v2003_v11 = vand.u32 2147483647, %v2002_v18  ;;  %v1882_v33 = vshll.u32 %v8285_v12, 30  ;;  %4381 = vst.msk [vmem:[%s6001_s8 + $0x588] sm:$0xff] %vm4203_vm7, %v4060_v48  ;;  %v3608_v26 = vshrl.u32 %v5047_v59, %v3602_v50  ;;  %v3611_v13 = vshrl.u32 %v5048_v61, %v3602_v50 }
 0x3a1   : > { %v3614_v21 = vshrl.u32 %v5049_v63, %v3602_v50  ;;  %v3595_v42 = vor.u32 8388608, %v3594_v32  ;;  %v3613_v44 = vshll.u32 %v5048_v61, %v3601_v45  ;;  %v3617_v39 = vshrl.u32 %v5050_v9, %v3602_v50 }
 0x3a2   : > { %v2006_v28 = vmul.f32 %v2005_v2, %v2003_v11  ;;  %v8302_v40 = vsub.s32 %v1879_v55, %v1882_v33  ;;  %v3606_v15 = vor.u32 %v3605_v10, %v3604_v3  ;;  %v3609_v24 = vor.u32 %v3608_v26, %v3607_v23 }
 0x3a3   : > { %v3612_v29 = vor.u32 %v3611_v13, %v3610_v17  ;;  %v4061_v8 = vpop.trf.xlu1  ;;  %v2016_v25 = vadd.s32 3, %v2012_v5  ;;  %v3615_v31 = vor.u32 %v3614_v21, %v3613_v44  ;;  %v3616_v4 = vshll.u32 %v5049_v63, %v3601_v45 }
 0x3a4   : > { %v2007_v0 = vxor.u32 2147483648, %v2006_v28  ;;  %v1885_v60 = vsub.s32 0, %v8302_v40  ;;  %4382 = vst.msk [vmem:[%s6001_s8 + $0x590] sm:$0xff] %vm4203_vm7, %v4061_v8  ;;  %v3603_v36 = vshrl.u32 %v5045_v53, %v3602_v50  ;;  %vm3619_vm14 = vcmp.lt.s32.totalorder %v8290_v6, 1 }
 0x3a5   : > { %v3486_v16 = vand.u32 2139095040, %v8288_v22  ;;  %v3618_v20 = vor.u32 %v3617_v39, %v3616_v4  ;;  %vm3622_vm15 = vcmp.lt.s32.totalorder %v8290_v6, 4  ;;  %v3627_v49 = vsel %vm3619_vm14, %v3606_v15, %v3609_v24 }
 0x3a6   : > { %v2008_v27 = vsel %vm1925_vm5, %v2007_v0, %v2006_v28  ;;  %v4595_v14 = vmin.u32 %v1885_v60, %v8302_v40  ;;  %v3624_v34 = vsel %vm3622_vm15, %v3612_v29, 2102212464  ;;  %v3628_v55 = vsel %vm3622_vm15, %v3615_v31, 920167782 }
 0x3a7   : > { %v2011_v46 = vsel %vm8277_vm11, %v8000_v47, %v2008_v27  ;;  %v4062_v56 = vpop.trf.xlu1  ;;  %vm3621_vm0 = vcmp.lt.s32.totalorder %v8290_v6, 3  ;;  %v3635_v1 = vshll.u32 %v3595_v42, 8  ;;  %vm3620_vm1 = vcmp.lt.s32.totalorder %v8290_v6, 2 }
 0x3a8   : > { %4958 = vcosq.f32 %v2011_v46  ;;  %v1887_v41 = vclz %v4595_v14  ;;  %4383 = vst.msk [vmem:[%s6001_s8 + $0x598] sm:$0xff] %vm4203_vm7, %v4062_v56  ;;  %v3623_v62 = vsel %vm3619_vm14, %v3603_v36, %v3606_v15  ;;  %v3629_v35 = vsel %vm3621_vm0, %v3612_v29, %v3628_v55 }
 0x3a9   : > { %4960 = vsinq.f32 %v2011_v46  ;;  %v3631_v19 = vsel %vm3619_vm14, %v3609_v24, %v3612_v29  ;;  %v3625_v37 = vsel %vm3621_vm0, %v3609_v24, %v3624_v34  ;;  %v3630_v45 = vsel %vm3620_vm1, %v3627_v49, %v3629_v35 }
 0x3aa   : > { %v4596_v51 = vadd.s32 4294967294, %v1887_v41  ;;  %v3632_v52 = vsel %vm3622_vm15, %v3618_v20, 1326507024  ;;  %v8338_v32 = vmul.u32.u64.low %v3635_v1, %v3630_v45  ;;  %v8339_v5 = vmul.u32.u64.high %v3635_v1, %v3630_v45, %v8338_v32 }
 0x3ab   : > { %v3633_v18 = vsel %vm3621_vm0, %v3615_v31, %v3632_v52  ;;  %v3487_v50 = vshrl.u32 %v3486_v16, 23  ;;  %v4063_v11 = vpop.trf.xlu1  ;;  %v1875_v23 = vadd.s32 %v8239_v43, %v8251_v54  ;;  %v3626_v26 = vsel %vm3620_vm1, %v3623_v62, %v3625_v37 }
 0x3ac   : > { %vm4597_vm3 = vcmp.lt.s32.totalorder %v4596_v51, 0  ;;  %v3634_v2 = vsel %vm3620_vm1, %v3631_v19, %v3633_v18  ;;  %4384 = vst.msk [vmem:[%s6001_s8 + $0x5a0] sm:$0xff] %vm4203_vm7, %v4063_v11  ;;  %v2017_v13 = vand.u32 3, %v2016_v25  ;;  %v3645_v21 = vadd.s32 1, %v8339_v5 }
 0x3ad   : > { %v1890_v3 = vsel %vm4597_vm3, 0, %v4596_v51  ;;  %v8346_v48 = vmul.u32.u64.low %v3635_v1, %v3634_v2  ;;  %v8347_v33 = vmul.u32.u64.high %v3635_v1, %v3634_v2, %v8346_v48  ;;  %v4658_v10 = vadd.s32 4294967169, %v3487_v50 }
 0x3ae   : > { %v1891_v17 = vsub.s32 32, %v1890_v3  ;;  %v1895_v28 = vsub.s32 4294967266, %v1890_v3  ;;  %v1892_v39 = vshll.u32 %v8302_v40, %v1890_v3  ;;  %v3483_v24 = vand.u32 2147483647, %v8288_v22 }
 0x3af   : > { %v3493_v42 = vadd.s32 1, %v4658_v10  ;;  %v4064_v44 = vpop.trf.xlu1  ;;  %v3642_v43 = vmul.u32 %v3635_v1, %v3626_v26  ;;  %vm3644_vm2 = vc.u32 %v8347_v33, %v8338_v32  ;;  %vm2019_vm5 = vcmp.eq.s32.totalorder %v2017_v13, 0 }
 0x3b0   : > { %v1893_v0 = vshrl.u32 %v1875_v23, %v1891_v17  ;;  %v1896_v15 = vadd.s32 127, %v1895_v28  ;;  %4385 = vst.msk [vmem:[%s6001_s8 + $0x5a8] sm:$0xff] %vm4203_vm7, %v4064_v44  ;;  %v3646_v60 = vsel %vm3644_vm2, %v3645_v21, %v8339_v5  ;;  %vm2022_vm6 = vcmp.eq.s32.totalorder %v2017_v13, 2 }
 0x3b1   : > { %vm3494_vm4 = vcmp.gt.s32.totalorder %v3493_v42, 0  ;;  %v3647_v31 = vadd.s32 %v3646_v60, %v3642_v43  ;;  %v1905_v16 = vsub.s32 4, %v8285_v12  ;;  %v3490_v46 = vand.u32 8388607, %v3483_v24 }
 0x3b2   : > { %v4959_v29 = vpop.eup %4958  ;;  %v1894_v8 = vor.u32 %v1893_v0, %v1892_v39  ;;  %v1897_v25 = vshll.u32 %v1896_v15, 23  ;;  %v3495_v4 = vsel %vm3494_vm4, %v3493_v42, 0  ;;  %vm2015_vm8 = vweird.f32 %v8000_v47 }
 0x3b3   : > { %v4961_v54 = vpop.eup %4960  ;;  %v2023_v6 = vxor.u32 2147483648, %v4959_v29  ;;  %v4065_v27 = vpop.trf.xlu1  ;;  %v3648_v34 = vadd.s32 536870912, %v3647_v31  ;;  %v3497_v49 = vand.u32 31, %v3495_v4  ;;  %vm1821_vm10 = vcmp.lt.s32.totalorder %v8075_v38, 0 }
 0x3b4   : > { %v2020_v40 = vxor.u32 2147483648, %v4961_v54  ;;  %v1898_v36 = vor.u32 4788187, %v1897_v25  ;;  %4386 = vst.msk [vmem:[%s6001_s8 + $0x5b0] sm:$0xff] %vm4203_vm7, %v4065_v27  ;;  %v1901_v56 = vcvt.s32.f32 %v1894_v8  ;;  %vm2018_vm12 = vcmp.lt.s32.totalorder %v2017_v13, 2 }
 0x3b5   : > { %v2024_v20 = vsel %vm2022_vm6, %v2023_v6, %v4961_v54  ;;  %vm8370_vm9 = vcmp.le.f32.partialorder %v1819_v30, 0.7853982  ;;  %v8374_v1 = vshrl.u32 %v3648_v34, 30  ;;  %v3498_v62 = vsub.s32 32, %v3497_v49 }
 0x3b6   : > { %v2021_v14 = vsel %vm2019_vm5, %v4959_v29, %v2020_v40  ;;  %v1899_v55 = vand.u32 2147483647, %v1898_v36  ;;  %v8379_v45 = vsel %vm1821_vm10, %v1905_v16, %v8285_v12  ;;  %v3491_v52 = vor.u32 8388608, %v3490_v46 }
 0x3b7   : > { %v4066_v19 = vpop.trf.xlu1  ;;  %v2025_v51 = vsel %vm2018_vm12, %v2021_v14, %v2024_v20  ;;  %v3650_v30 = vshll.u32 %v8374_v1, 30  ;;  %v3500_v18 = vshll.u32 %v5045_v53, %v3497_v49  ;;  %v3501_v5 = vshrl.u32 %v5046_v57, %v3498_v62 }
 0x3b8   : > { %v4027_v35 = vpop.trf.xlu0  ;;  %v1902_v37 = vmul.f32 %v1901_v56, %v1899_v55  ;;  %4387 = vst.msk [vmem:[%s6001_s8 + $0x5b8] sm:$0xff] %vm4203_vm7, %v4066_v19  ;;  %v3503_v50 = vshll.u32 %v5046_v57, %v3497_v49  ;;  %v3504_v2 = vshrl.u32 %v5047_v59, %v3498_v62  ;;  %v3507_v12 = vshrl.u32 %v5048_v61, %v3498_v62 }
 0x3b9   : > { %4364 = vst.msk [vmem:[%s6001_s8 + $0x500] sm:$0xff] %vm4203_vm7, %v4027_v35  ;;  %v3510_v3 = vshrl.u32 %v5049_v63, %v3498_v62  ;;  %v8392_v48 = vsub.s32 %v3647_v31, %v3650_v30  ;;  %v3496_v10 = vshrl.u32 %v3495_v4, 5  ;;  %v3506_v23 = vshll.u32 %v5047_v59, %v3497_v49 }
 0x3ba   : > { %v1903_v11 = vxor.u32 2147483648, %v1902_v37  ;;  %v3509_v17 = vshll.u32 %v5048_v61, %v3497_v49  ;;  %v2026_v57 = vsel %vm2015_vm8, nan, %v2025_v51  ;;  %v3502_v21 = vor.u32 %v3501_v5, %v3500_v18 }
 0x3bb   : > { %v4067_v26 = vpop.trf.xlu1  ;;  %v3505_v42 = vor.u32 %v3504_v2, %v3503_v50  ;;  %v3653_v61 = vsub.s32 0, %v8392_v48  ;;  %v3508_v44 = vor.u32 %v3507_v12, %v3506_v23  ;;  %v1908_v47 = vsel %vm8370_vm9, 0, %v8379_v45 }
 0x3bc   : > { %v4028_v28 = vpop.trf.xlu0  ;;  %v1904_v13 = vsel %vm1821_vm10, %v1903_v11, %v1902_v37  ;;  %4388 = vst.msk [vmem:[%s6001_s8 + $0x5c0] sm:$0xff] %vm4203_vm7, %v4067_v26  ;;  %v3511_v39 = vor.u32 %v3510_v3, %v3509_v17  ;;  %v3512_v0 = vshll.u32 %v5049_v63, %v3497_v49  ;;  %v3513_v15 = vshrl.u32 %v5050_v9, %v3498_v62 }
 0x3bd   : > { %4365 = vst.msk [vmem:[%s6001_s8 + $0x508] sm:$0xff] %vm4203_vm7, %v4028_v28  ;;  %v1907_v59 = vsel %vm8370_vm9, %v8075_v38, %v1904_v13  ;;  %v4663_v29 = vmin.u32 %v3653_v61, %v8392_v48  ;;  %vm3515_vm13 = vcmp.lt.s32.totalorder %v3496_v10, 1  ;;  %vm3518_vm11 = vcmp.lt.s32.totalorder %v3496_v10, 4 }
 0x3be   : > { %4171 = vxpose.xlu1.b32.start [1/2] (short) %v2026_v57, 128  ;;  %4962 = vcosq.f32 %v1907_v59  ;;  %v3514_v6 = vor.u32 %v3513_v15, %v3512_v0  ;;  %v3523_v8 = vsel %vm3515_vm13, %v3502_v21, %v3505_v42  ;;  %v3524_v25 = vsel %vm3518_vm11, %v3511_v39, 920167782 }
 0x3bf   : > { %4964 = vsinq.f32 %v1907_v59  ;;  %v4068_v54 = vpop.trf.xlu1  ;;  %v3531_v60 = vshll.u32 %v3491_v52, 8  ;;  %v3655_v63 = vclz %v4663_v29  ;;  %v3499_v9 = vshrl.u32 %v5045_v53, %v3498_v62 }
 0x3c0   : > { %v4029_v43 = vpop.trf.xlu0  ;;  %4389 = vst.msk [vmem:[%s6001_s8 + $0x5c8] sm:$0xff] %vm4203_vm7, %v4068_v54  ;;  %vm3517_vm14 = vcmp.lt.s32.totalorder %v3496_v10, 3  ;;  %v3520_v40 = vsel %vm3518_vm11, %v3508_v44, 2102212464  ;;  %vm3516_vm15 = vcmp.lt.s32.totalorder %v3496_v10, 2  ;;  %v3527_v4 = vsel %vm3515_vm13, %v3505_v42, %v3508_v44 }
 0x3c1   : > { %4366 = vst.msk [vmem:[%s6001_s8 + $0x510] sm:$0xff] %vm4203_vm7, %v4029_v43  ;;  %v3525_v31 = vsel %vm3517_vm14, %v3508_v44, %v3524_v25  ;;  %v3528_v27 = vsel %vm3518_vm11, %v3514_v6, 1326507024  ;;  %v4664_v36 = vadd.s32 4294967294, %v3655_v63  ;;  %v3519_v16 = vsel %vm3515_vm13, %v3499_v9, %v3502_v21 }
 0x3c2   : > { %v3526_v46 = vsel %vm3516_vm15, %v3523_v8, %v3525_v31  ;;  %v3529_v14 = vsel %vm3517_vm14, %v3511_v39, %v3528_v27  ;;  %v3521_v53 = vsel %vm3517_vm14, %v3505_v42, %v3520_v40  ;;  %v1912_v41 = vadd.s32 3, %v1908_v47 }
 0x3c3   : > { %v4069_v34 = vpop.trf.xlu1  ;;  %v3530_v49 = vsel %vm3516_vm15, %v3527_v4, %v3529_v14  ;;  %v8427_v55 = vmul.u32.u64.low %v3531_v60, %v3526_v46  ;;  %v8428_v56 = vmul.u32.u64.high %v3531_v60, %v3526_v46, %v8427_v55  ;;  %vm4665_vm0 = vcmp.lt.s32.totalorder %v4664_v36, 0 }
 0x3c4   : > { %v4030_v20 = vpop.trf.xlu0  ;;  %4390 = vst.msk [vmem:[%s6001_s8 + $0x5d0] sm:$0xff] %vm4203_vm7, %v4069_v34  ;;  %v8435_v62 = vmul.u32.u64.low %v3531_v60, %v3530_v49  ;;  %v8436_v35 = vmul.u32.u64.high %v3531_v60, %v3530_v49, %v8435_v62  ;;  %v3658_v19 = vsel %vm4665_vm0, 0, %v4664_v36  ;;  %v3643_v51 = vadd.s32 %v8338_v32, %v8347_v33 }
 0x3c5   : > { %4367 = vst.msk [vmem:[%s6001_s8 + $0x518] sm:$0xff] %vm4203_vm7, %v4030_v20  ;;  %v3659_v37 = vsub.s32 32, %v3658_v19  ;;  %v3663_v45 = vsub.s32 4294967266, %v3658_v19  ;;  %v3522_v52 = vsel %vm3516_vm15, %v3519_v16, %v3521_v53  ;;  %v3541_v50 = vadd.s32 1, %v8428_v56 }
 0x3c6   : > { %v1913_v2 = vand.u32 3, %v1912_v41  ;;  %v3660_v12 = vshll.u32 %v8392_v48, %v3658_v19  ;;  %v3538_v23 = vmul.u32 %v3531_v60, %v3522_v52  ;;  %vm3540_vm1 = vc.u32 %v8436_v35, %v8427_v55 }
 0x3c7   : > { %v4070_v18 = vpop.trf.xlu1  ;;  %v3661_v32 = vshrl.u32 %v3643_v51, %v3659_v37  ;;  %v3664_v33 = vadd.s32 127, %v3663_v45  ;;  %v3542_v26 = vsel %vm3540_vm1, %v3541_v50, %v8428_v56  ;;  %v3673_v54 = vsub.s32 4, %v8374_v1 }
 0x3c8   : > { %v4031_v30 = vpop.trf.xlu0  ;;  %v4963_v5 = vpop.eup %4962  ;;  %4391 = vst.msk [vmem:[%s6001_s8 + $0x5d8] sm:$0xff] %vm4203_vm7, %v4070_v18  ;;  %v3543_v21 = vadd.s32 %v3542_v26, %v3538_v23  ;;  %vm1915_vm3 = vcmp.eq.s32.totalorder %v1913_v2, 0  ;;  %vm1918_vm2 = vcmp.eq.s32.totalorder %v1913_v2, 2  ;;  %vm1914_vm4 = vcmp.lt.s32.totalorder %v1913_v2, 2 }
 0x3c9   : > { %4368 = vst.msk [vmem:[%s6001_s8 + $0x520] sm:$0xff] %vm4203_vm7, %v4031_v30  ;;  %v4965_v11 = vpop.eup %4964  ;;  %v1919_v10 = vxor.u32 2147483648, %v4963_v5  ;;  %v3662_v17 = vor.u32 %v3661_v32, %v3660_v12  ;;  %v3665_v28 = vshll.u32 %v3664_v33, 23  ;;  %vm1911_vm5 = vweird.f32 %v8075_v38 }
 0x3ca   : > { %v1916_v3 = vxor.u32 2147483648, %v4965_v11  ;;  %v3544_v61 = vadd.s32 536870912, %v3543_v21  ;;  %vm3589_vm6 = vcmp.lt.s32.totalorder %v8163_v58, 0  ;;  %vm3588_vm8 = vcmp.le.f32.partialorder %v3587_v7, 0.7853982 }
 0x3cb   : > { %v4071_v13 = vpop.trf.xlu1  ;;  %v3666_v48 = vor.u32 4788187, %v3665_v28  ;;  %v1920_v59 = vsel %vm1918_vm2, %v1919_v10, %v4965_v11  ;;  %v3669_v39 = vcvt.s32.f32 %v3662_v17  ;;  %v3674_v38 = vsel %vm3589_vm6, %v3673_v54, %v8374_v1 }
 0x3cc   : > { %v4032_v57 = vpop.trf.xlu0  ;;  %4392 = vst.msk [vmem:[%s6001_s8 + $0x5e0] sm:$0xff] %vm4203_vm7, %v4071_v13  ;;  %v1917_v42 = vsel %vm1915_vm3, %v4963_v5, %v1916_v3  ;;  %v8454_v15 = vshrl.u32 %v3544_v61, 30  ;;  %v3676_v16 = vsel %vm3588_vm8, 0, %v3674_v38  ;;  %v3539_v56 = vadd.s32 %v8427_v55, %v8436_v35 }
 0x3cd   : > { %4369 = vst.msk [vmem:[%s6001_s8 + $0x528] sm:$0xff] %vm4203_vm7, %v4032_v57  ;;  %v3667_v44 = vand.u32 2147483647, %v3666_v48  ;;  %v1921_v29 = vsel %vm1914_vm4, %v1917_v42, %v1920_v59  ;;  %v3680_v7 = vadd.s32 3, %v3676_v16  ;;  %vm3679_vm11 = vweird.f32 %v8163_v58 }
 0x3ce   : > { %v3546_v6 = vshll.u32 %v8454_v15, 30  ;;  %v1922_v63 = vsel %vm1911_vm5, nan, %v1921_v29  ;;  %v3569_v17 = vsub.s32 4, %v8454_v15  ;;  %vm3485_vm14 = vcmp.lt.s32.totalorder %v8288_v22, 0 }
 0x3cf   : > { %v4072_v0 = vpop.trf.xlu1  ;;  %v3670_v43 = vmul.f32 %v3669_v39, %v3667_v44  ;;  %v3681_v1 = vand.u32 3, %v3680_v7  ;;  %vm3484_vm15 = vcmp.le.f32.partialorder %v3483_v24, 0.7853982  ;;  %vm3575_vm2 = vweird.f32 %v8288_v22 }
 0x3d0   : > { %v4033_v47 = vpop.trf.xlu0  ;;  %4393 = vst.msk [vmem:[%s6001_s8 + $0x5e8] sm:$0xff] %vm4203_vm7, %v4072_v0  ;;  %v3547_v9 = vsub.s32 %v3543_v21, %v3546_v6  ;;  %v3570_v57 = vsel %vm3485_vm14, %v3569_v17, %v8454_v15 }
 0x3d1   : > { %4370 = vst.msk [vmem:[%s6001_s8 + $0x530] sm:$0xff] %vm4203_vm7, %v4033_v47  ;;  %v3671_v8 = vxor.u32 2147483648, %v3670_v43  ;;  %vm3686_vm12 = vcmp.eq.s32.totalorder %v3681_v1, 2  ;;  %vm3683_vm9 = vcmp.eq.s32.totalorder %v3681_v1, 0  ;;  %vm3682_vm13 = vcmp.lt.s32.totalorder %v3681_v1, 2 }
 0x3d2   : > { %v3549_v4 = vsub.s32 0, %v3547_v9  ;;  %v3572_v48 = vsel %vm3484_vm15, 0, %v3570_v57 }
 0x3d3   : > { %v4073_v60 = vpop.trf.xlu1  ;;  %v3672_v40 = vsel %vm3589_vm6, %v3671_v8, %v3670_v43  ;;  %v3576_v59 = vadd.s32 3, %v3572_v48 }
 0x3d4   : > { %v4034_v25 = vpop.trf.xlu0  ;;  %4394 = vst.msk [vmem:[%s6001_s8 + $0x5f0] sm:$0xff] %vm4203_vm7, %v4073_v60  ;;  %v3675_v31 = vsel %vm3588_vm8, %v8163_v58, %v3672_v40  ;;  %v4659_v46 = vmin.u32 %v3549_v4, %v3547_v9 }
 0x3d5   : > { %4371 = vst.msk [vmem:[%s6001_s8 + $0x538] sm:$0xff] %vm4203_vm7, %v4034_v25  ;;  %4966 = vcosq.f32 %v3675_v31  ;;  %v3577_v61 = vand.u32 3, %v3576_v59 }
 0x3d6   : > { %4139 = vxpose.xlu0.b32.start [1/2] (short) %v1922_v63, 128  ;;  %4968 = vsinq.f32 %v3675_v31  ;;  %v3551_v14 = vclz %v4659_v46 }
 0x3d7   : > { %v4074_v36 = vpop.trf.xlu1  ;;  %vm3582_vm0 = vcmp.eq.s32.totalorder %v3577_v61, 2  ;;  %vm3579_vm1 = vcmp.eq.s32.totalorder %v3577_v61, 0  ;;  %vm3578_vm3 = vcmp.lt.s32.totalorder %v3577_v61, 2 }
 0x3d8   : > { %v4035_v27 = vpop.trf.xlu0  ;;  %4395 = vst.msk [vmem:[%s6001_s8 + $0x5f8] sm:$0xff] %vm4203_vm7, %v4074_v36  ;;  %v4660_v34 = vadd.s32 4294967294, %v3551_v14 }
 0x3d9   : > { %4372 = vst.msk [vmem:[%s6001_s8 + $0x540] sm:$0xff] %vm4203_vm7, %v4035_v27 }
 0x3da   : > { %vm4661_vm10 = vcmp.lt.s32.totalorder %v4660_v34, 0 }
 0x3db   : > { %v3554_v53 = vsel %vm4661_vm10, 0, %v4660_v34 }
 0x3dc   : > { %v4036_v20 = vpop.trf.xlu0  ;;  %v3555_v41 = vsub.s32 32, %v3554_v53  ;;  %v3559_v62 = vsub.s32 4294967266, %v3554_v53  ;;  %v3556_v45 = vshll.u32 %v3547_v9, %v3554_v53 }
 0x3dd   : > { %4373 = vst.msk [vmem:[%s6001_s8 + $0x548] sm:$0xff] %vm4203_vm7, %v4036_v20 }
 0x3de   : > { %v3557_v52 = vshrl.u32 %v3539_v56, %v3555_v41  ;;  %v3560_v30 = vadd.s32 127, %v3559_v62 }
 0x3df   : > { %v4967_v19 = vpop.eup %4966 }
 0x3e0   : > { %v4037_v49 = vpop.trf.xlu0  ;;  %v4969_v51 = vpop.eup %4968  ;;  %v3687_v37 = vxor.u32 2147483648, %v4967_v19  ;;  %v3558_v11 = vor.u32 %v3557_v52, %v3556_v45  ;;  %v3561_v2 = vshll.u32 %v3560_v30, 23 }
 0x3e1   : > { %4374 = vst.msk [vmem:[%s6001_s8 + $0x550] sm:$0xff] %vm4203_vm7, %v4037_v49  ;;  %v3684_v18 = vxor.u32 2147483648, %v4969_v51 }
 0x3e2   : > { %v3688_v50 = vsel %vm3686_vm12, %v3687_v37, %v4969_v51  ;;  %v3562_v12 = vor.u32 4788187, %v3561_v2  ;;  %v3565_v10 = vcvt.s32.f32 %v3558_v11 }
 0x3e3   : > { %v3685_v55 = vsel %vm3683_vm9, %v4967_v19, %v3684_v18 }
 0x3e4   : > { %v4038_v5 = vpop.trf.xlu0  ;;  %v3689_v35 = vsel %vm3682_vm13, %v3685_v55, %v3688_v50  ;;  %v3563_v3 = vand.u32 2147483647, %v3562_v12 }
 0x3e5   : > { %4375 = vst.msk [vmem:[%s6001_s8 + $0x558] sm:$0xff] %vm4203_vm7, %v4038_v5  ;;  %v3690_v32 = vsel %vm3679_vm11, nan, %v3689_v35 }
 0x3e6   : > { %4172 = vxpose.xlu1.b32.end [2/2] (short) %v3690_v32, 128  ;;  %v3566_v23 = vmul.f32 %v3565_v10, %v3563_v3 }
 0x3e8   : > { %v4039_v33 = vpop.trf.xlu0  ;;  %v3567_v26 = vxor.u32 2147483648, %v3566_v23 }
 0x3e9   : > { %4376 = vst.msk [vmem:[%s6001_s8 + $0x560] sm:$0xff] %vm4203_vm7, %v4039_v33 }
 0x3ea   : > { %v3568_v58 = vsel %vm3485_vm14, %v3567_v26, %v3566_v23 }
 0x3eb   : > { %v3571_v13 = vsel %vm3484_vm15, %v8288_v22, %v3568_v58 }
 0x3ec   : > { %v4040_v28 = vpop.trf.xlu0  ;;  %4970 = vcosq.f32 %v3571_v13 }
 0x3ed   : > { %4377 = vst.msk [vmem:[%s6001_s8 + $0x568] sm:$0xff] %vm4203_vm7, %v4040_v28  ;;  %4972 = vsinq.f32 %v3571_v13 }
 0x3f0   : > { %v4041_v21 = vpop.trf.xlu0 }
 0x3f1   : > { %4378 = vst.msk [vmem:[%s6001_s8 + $0x570] sm:$0xff] %vm4203_vm7, %v4041_v21 }
 0x3f4   : > { %v4042_v42 = vpop.trf.xlu0 }
 0x3f5   : > { %4379 = vst.msk [vmem:[%s6001_s8 + $0x578] sm:$0xff] %vm4203_vm7, %v4042_v42 }
 0x3f6   : > { %v4971_v44 = vpop.eup %4970 }
 0x3f7   : > { %v4973_v24 = vpop.eup %4972  ;;  %v3583_v39 = vxor.u32 2147483648, %v4971_v44 }
 0x3f8   : > { %v3580_v47 = vxor.u32 2147483648, %v4973_v24 }
 0x3f9   : > { %v3584_v0 = vsel %vm3582_vm0, %v3583_v39, %v4973_v24 }
 0x3fa   : > { %v3581_v15 = vsel %vm3579_vm1, %v4971_v44, %v3580_v47 }
 0x3fb   : > { %v3585_v29 = vsel %vm3578_vm3, %v3581_v15, %v3584_v0 }
 0x3fc   : > { %v3586_v43 = vsel %vm3575_vm2, nan, %v3585_v29 }
 0x3fd   : > { %4140 = vxpose.xlu0.b32.end [2/2] (short) %v3586_v43, 128 }
 0x401   : > { %v4123_v54 = vpop.trf.xlu1 }
 0x402   : > { %4412 = vst.msk [vmem:[%s6001_s8 + $0x680] sm:$0xff] %vm4203_vm7, %v4123_v54 }
 0x405   : > { %v4124_v6 = vpop.trf.xlu1 }
 0x406   : > { %4413 = vst.msk [vmem:[%s6001_s8 + $0x688] sm:$0xff] %vm4203_vm7, %v4124_v6 }
 0x409   : > { %v4125_v8 = vpop.trf.xlu1 }
 0x40a   : > { %4414 = vst.msk [vmem:[%s6001_s8 + $0x690] sm:$0xff] %vm4203_vm7, %v4125_v8 }
 0x40d   : > { %v4126_v25 = vpop.trf.xlu1 }
 0x40e   : > { %4415 = vst.msk [vmem:[%s6001_s8 + $0x698] sm:$0xff] %vm4203_vm7, %v4126_v25 }
 0x411   : > { %v4127_v22 = vpop.trf.xlu1 }
 0x412   : > { %4416 = vst.msk [vmem:[%s6001_s8 + $0x6a0] sm:$0xff] %vm4203_vm7, %v4127_v22 }
 0x415   : > { %v4128_v60 = vpop.trf.xlu1 }
 0x416   : > { %4417 = vst.msk [vmem:[%s6001_s8 + $0x6a8] sm:$0xff] %vm4203_vm7, %v4128_v60 }
 0x419   : > { %v4091_v63 = vpop.trf.xlu0  ;;  %v4129_v9 = vpop.trf.xlu1 }
 0x41a   : > { %4396 = vst.msk [vmem:[%s6001_s8 + $0x600] sm:$0xff] %vm4203_vm7, %v4091_v63  ;;  %4418 = vst.msk [vmem:[%s6001_s8 + $0x6b0] sm:$0xff] %vm4203_vm7, %v4129_v9 }
 0x41d   : > { %v4092_v40 = vpop.trf.xlu0  ;;  %v4130_v38 = vpop.trf.xlu1 }
 0x41e   : > { %4397 = vst.msk [vmem:[%s6001_s8 + $0x608] sm:$0xff] %vm4203_vm7, %v4092_v40  ;;  %4419 = vst.msk [vmem:[%s6001_s8 + $0x6b8] sm:$0xff] %vm4203_vm7, %v4130_v38 }
 0x421   : > { %v4093_v31 = vpop.trf.xlu0  ;;  %v4131_v4 = vpop.trf.xlu1 }
 0x422   : > { %4398 = vst.msk [vmem:[%s6001_s8 + $0x610] sm:$0xff] %vm4203_vm7, %v4093_v31  ;;  %4420 = vst.msk [vmem:[%s6001_s8 + $0x6c0] sm:$0xff] %vm4203_vm7, %v4131_v4 }
 0x425   : > { %v4094_v27 = vpop.trf.xlu0  ;;  %v4132_v36 = vpop.trf.xlu1 }
 0x426   : > { %4399 = vst.msk [vmem:[%s6001_s8 + $0x618] sm:$0xff] %vm4203_vm7, %v4094_v27  ;;  %4421 = vst.msk [vmem:[%s6001_s8 + $0x6c8] sm:$0xff] %vm4203_vm7, %v4132_v36 }
 0x429   : > { %v4095_v16 = vpop.trf.xlu0  ;;  %v4133_v46 = vpop.trf.xlu1 }
 0x42a   : > { %4400 = vst.msk [vmem:[%s6001_s8 + $0x620] sm:$0xff] %vm4203_vm7, %v4095_v16  ;;  %4422 = vst.msk [vmem:[%s6001_s8 + $0x6d0] sm:$0xff] %vm4203_vm7, %v4133_v46 }
 0x42d   : > { %v4096_v14 = vpop.trf.xlu0  ;;  %v4134_v7 = vpop.trf.xlu1 }
 0x42e   : > { %4401 = vst.msk [vmem:[%s6001_s8 + $0x628] sm:$0xff] %vm4203_vm7, %v4096_v14  ;;  %4423 = vst.msk [vmem:[%s6001_s8 + $0x6d8] sm:$0xff] %vm4203_vm7, %v4134_v7 }
 0x431   : > { %v4097_v20 = vpop.trf.xlu0  ;;  %v4135_v34 = vpop.trf.xlu1 }
 0x432   : > { %4402 = vst.msk [vmem:[%s6001_s8 + $0x630] sm:$0xff] %vm4203_vm7, %v4097_v20  ;;  %4424 = vst.msk [vmem:[%s6001_s8 + $0x6e0] sm:$0xff] %vm4203_vm7, %v4135_v34 }
 0x435   : > { %v4098_v1 = vpop.trf.xlu0  ;;  %v4136_v53 = vpop.trf.xlu1 }
 0x436   : > { %4403 = vst.msk [vmem:[%s6001_s8 + $0x638] sm:$0xff] %vm4203_vm7, %v4098_v1  ;;  %4425 = vst.msk [vmem:[%s6001_s8 + $0x6e8] sm:$0xff] %vm4203_vm7, %v4136_v53 }
 0x439   : > { %v4099_v49 = vpop.trf.xlu0  ;;  %v4137_v56 = vpop.trf.xlu1 }
 0x43a   : > { %4404 = vst.msk [vmem:[%s6001_s8 + $0x640] sm:$0xff] %vm4203_vm7, %v4099_v49  ;;  %4426 = vst.msk [vmem:[%s6001_s8 + $0x6f0] sm:$0xff] %vm4203_vm7, %v4137_v56 }
 0x43d   : > { %v4100_v41 = vpop.trf.xlu0  ;;  %v4138_v62 = vpop.trf.xlu1 }
 0x43e   : > { %4405 = vst.msk [vmem:[%s6001_s8 + $0x648] sm:$0xff] %vm4203_vm7, %v4100_v41  ;;  %4427 = vst.msk [vmem:[%s6001_s8 + $0x6f8] sm:$0xff] %vm4203_vm7, %v4138_v62 }
 0x441   : > { %v4101_v19 = vpop.trf.xlu0 }
 0x442   : > { %4406 = vst.msk [vmem:[%s6001_s8 + $0x650] sm:$0xff] %vm4203_vm7, %v4101_v19 }
 0x445   : > { %v4102_v51 = vpop.trf.xlu0 }
 0x446   : > { %4407 = vst.msk [vmem:[%s6001_s8 + $0x658] sm:$0xff] %vm4203_vm7, %v4102_v51 }
 0x449   : > { %v4103_v37 = vpop.trf.xlu0 }
 0x44a   : > { %4408 = vst.msk [vmem:[%s6001_s8 + $0x660] sm:$0xff] %vm4203_vm7, %v4103_v37 }
 0x44d   : > { %v4104_v45 = vpop.trf.xlu0 }
 0x44e   : > { %4409 = vst.msk [vmem:[%s6001_s8 + $0x668] sm:$0xff] %vm4203_vm7, %v4104_v45 }
 0x451   : > { %v4105_v52 = vpop.trf.xlu0 }
 0x452   : > { %4410 = vst.msk [vmem:[%s6001_s8 + $0x670] sm:$0xff] %vm4203_vm7, %v4105_v52 }
 0x455   : > { %v4106_v30 = vpop.trf.xlu0 }
 0x456   : > { %4411 = vst.msk [vmem:[%s6001_s8 + $0x678] sm:$0xff] %vm4203_vm7, %v4106_v30 }
 0x462   : > { %v4187_v18 = vpop.trf.xlu1 }
 0x463   : > { %4444 = vst.msk [vmem:[%s6001_s8 + $0x780] sm:$0xff] %vm4203_vm7, %v4187_v18 }
 0x466   : > { %v4188_v5 = vpop.trf.xlu1 }
 0x467   : > { %4445 = vst.msk [vmem:[%s6001_s8 + $0x788] sm:$0xff] %vm4203_vm7, %v4188_v5 }
 0x46a   : > { %v4189_v50 = vpop.trf.xlu1 }
 0x46b   : > { %4446 = vst.msk [vmem:[%s6001_s8 + $0x790] sm:$0xff] %vm4203_vm7, %v4189_v50 }
 0x46e   : > { %v4190_v11 = vpop.trf.xlu1 }
 0x46f   : > { %4447 = vst.msk [vmem:[%s6001_s8 + $0x798] sm:$0xff] %vm4203_vm7, %v4190_v11 }
 0x472   : > { %v4191_v2 = vpop.trf.xlu1 }
 0x473   : > { %4448 = vst.msk [vmem:[%s6001_s8 + $0x7a0] sm:$0xff] %vm4203_vm7, %v4191_v2 }
 0x476   : > { %v4192_v55 = vpop.trf.xlu1 }
 0x477   : > { %4449 = vst.msk [vmem:[%s6001_s8 + $0x7a8] sm:$0xff] %vm4203_vm7, %v4192_v55 }
 0x479   : > { %v4155_v12 = vpop.trf.xlu0 }
 0x47a   : > { %v4193_v35 = vpop.trf.xlu1  ;;  %4428 = vst.msk [vmem:[%s6001_s8 + $0x700] sm:$0xff] %vm4203_vm7, %v4155_v12 }
 0x47b   : > { %4450 = vst.msk [vmem:[%s6001_s8 + $0x7b0] sm:$0xff] %vm4203_vm7, %v4193_v35 }
 0x47d   : > { %v4156_v33 = vpop.trf.xlu0 }
 0x47e   : > { %v4194_v32 = vpop.trf.xlu1  ;;  %4429 = vst.msk [vmem:[%s6001_s8 + $0x708] sm:$0xff] %vm4203_vm7, %v4156_v33 }
 0x47f   : > { %4451 = vst.msk [vmem:[%s6001_s8 + $0x7b8] sm:$0xff] %vm4203_vm7, %v4194_v32 }
 0x481   : > { %v4157_v10 = vpop.trf.xlu0 }
 0x482   : > { %v4195_v3 = vpop.trf.xlu1  ;;  %4430 = vst.msk [vmem:[%s6001_s8 + $0x710] sm:$0xff] %vm4203_vm7, %v4157_v10 }
 0x483   : > { %4452 = vst.msk [vmem:[%s6001_s8 + $0x7c0] sm:$0xff] %vm4203_vm7, %v4195_v3 }
 0x485   : > { %v4158_v17 = vpop.trf.xlu0 }
 0x486   : > { %v4196_v23 = vpop.trf.xlu1  ;;  %4431 = vst.msk [vmem:[%s6001_s8 + $0x718] sm:$0xff] %vm4203_vm7, %v4158_v17 }
 0x487   : > { %4453 = vst.msk [vmem:[%s6001_s8 + $0x7c8] sm:$0xff] %vm4203_vm7, %v4196_v23 }
 0x489   : > { %v4159_v26 = vpop.trf.xlu0 }
 0x48a   : > { %v4197_v28 = vpop.trf.xlu1  ;;  %4432 = vst.msk [vmem:[%s6001_s8 + $0x720] sm:$0xff] %vm4203_vm7, %v4159_v26 }
 0x48b   : > { %4454 = vst.msk [vmem:[%s6001_s8 + $0x7d0] sm:$0xff] %vm4203_vm7, %v4197_v28 }
 0x48d   : > { %v4160_v57 = vpop.trf.xlu0 }
 0x48e   : > { %v4198_v58 = vpop.trf.xlu1  ;;  %4433 = vst.msk [vmem:[%s6001_s8 + $0x728] sm:$0xff] %vm4203_vm7, %v4160_v57 }
 0x48f   : > { %4455 = vst.msk [vmem:[%s6001_s8 + $0x7d8] sm:$0xff] %vm4203_vm7, %v4198_v58 }
 0x491   : > { %v4161_v21 = vpop.trf.xlu0 }
 0x492   : > { %v4199_v13 = vpop.trf.xlu1  ;;  %4434 = vst.msk [vmem:[%s6001_s8 + $0x730] sm:$0xff] %vm4203_vm7, %v4161_v21 }
 0x493   : > { %4456 = vst.msk [vmem:[%s6001_s8 + $0x7e0] sm:$0xff] %vm4203_vm7, %v4199_v13 }
 0x495   : > { %v4162_v42 = vpop.trf.xlu0 }
 0x496   : > { %v4200_v48 = vpop.trf.xlu1  ;;  %4435 = vst.msk [vmem:[%s6001_s8 + $0x738] sm:$0xff] %vm4203_vm7, %v4162_v42 }
 0x497   : > { %4457 = vst.msk [vmem:[%s6001_s8 + $0x7e8] sm:$0xff] %vm4203_vm7, %v4200_v48 }
 0x499   : > { %v4163_v61 = vpop.trf.xlu0 }
 0x49a   : > { %v4201_v59 = vpop.trf.xlu1  ;;  %4436 = vst.msk [vmem:[%s6001_s8 + $0x740] sm:$0xff] %vm4203_vm7, %v4163_v61 }
 0x49b   : > { %4458 = vst.msk [vmem:[%s6001_s8 + $0x7f0] sm:$0xff] %vm4203_vm7, %v4201_v59 }
 0x49d   : > { %v4164_v24 = vpop.trf.xlu0 }
 0x49e   : > { %v4202_v44 = vpop.trf.xlu1  ;;  %4437 = vst.msk [vmem:[%s6001_s8 + $0x748] sm:$0xff] %vm4203_vm7, %v4164_v24 }
 0x49f   : > { %4459 = vst.msk [vmem:[%s6001_s8 + $0x7f8] sm:$0xff] %vm4203_vm7, %v4202_v44 }
 0x4a1   : > { %v4165_v39 = vpop.trf.xlu0 }
 0x4a2   : > { %4438 = vst.msk [vmem:[%s6001_s8 + $0x750] sm:$0xff] %vm4203_vm7, %v4165_v39 }
 0x4a5   : > { %v4166_v47 = vpop.trf.xlu0 }
 0x4a6   : > { %4439 = vst.msk [vmem:[%s6001_s8 + $0x758] sm:$0xff] %vm4203_vm7, %v4166_v47 }
 0x4a9   : > { %v4167_v0 = vpop.trf.xlu0 }
 0x4aa   : > { %4440 = vst.msk [vmem:[%s6001_s8 + $0x760] sm:$0xff] %vm4203_vm7, %v4167_v0 }
 0x4ad   : > { %v4168_v15 = vpop.trf.xlu0 }
 0x4ae   : > { %4441 = vst.msk [vmem:[%s6001_s8 + $0x768] sm:$0xff] %vm4203_vm7, %v4168_v15 }
 0x4b1   : > { %v4169_v29 = vpop.trf.xlu0 }
 0x4b2   : > { %4442 = vst.msk [vmem:[%s6001_s8 + $0x770] sm:$0xff] %vm4203_vm7, %v4169_v29 }
 0x4b5   : > { %v4170_v43 = vpop.trf.xlu0 }
 0x4b6   : > { %4443 = vst.msk [vmem:[%s6001_s8 + $0x778] sm:$0xff] %vm4203_vm7, %v4170_v43 }
 0x4b7 PF: > { %p13_p8 = scmp.ge.s32.totalorder %s5091_s17, 4   ;;  %s8709_s12 = smov %s5033_s13 }
 0x4b8   : > { %s8710_s13 = smov %s5037_s14  ;;  %s8711_s14 = smov %s5101_s20 }
 0x4b9   : > { %s8712_s15 = smov %s5091_s17  ;;  %15 = sbr.rel (!%p13_p8) target bundleno = 3 (0x3), region = 72 }
 0x4c0   :  { %4482 = vsyncpa [#allocation3], 1 }
 0x4c1   :  { %4484 = vsyncpa [#allocation3 + $0x1], 1 }

</bundles_post_ra>
